<compile_context>
chip_gen: v7x
topology: tpu7x:2x2x1
jax: 0.10.0
libtpu: 0.0.40
codegen_flags: <defaults>
</compile_context>

<pallas_src>
import functools

import jax
import jax.numpy as jnp
from jax.experimental import pallas as pl
from jax.experimental.pallas import tpu as pltpu


def _evmp_kernel(bb, n, f, step_n,
                 v_ref, e_ref, vmask_ref, emask_ref,
                 wih_rz_v_ref, whh_rz_v_ref, wih_n_v_ref, whh_n_v_ref,
                 brz_v_ref, bin_v_ref, bhn_v_ref,
                 wih_rz_e_ref, whh_rz_e_ref, wih_n_e_ref, whh_n_e_ref,
                 brz_e_ref, bin_e_ref, bhn_e_ref,
                 e_out_ref, v_out_ref):
    f32 = jnp.float32
    bf16 = jnp.bfloat16

    v_h = v_ref[...]                      # (bb*n, f)     f32 hidden state
    e_h = e_ref[...]                      # (bb*n*n, f)   f32 hidden state
    vmask = vmask_ref[...]                # (bb*n, 1)     {0,1}
    emask4 = emask_ref[...]               # (bb, n, n, 1) {0,1}

    # Per-gate-group weights (bf16 MXU operands): rz fused (F,2F), n (F,F).
    wih_rz_v, whh_rz_v = wih_rz_v_ref[...], whh_rz_v_ref[...]
    wih_n_v, whh_n_v = wih_n_v_ref[...], whh_n_v_ref[...]
    wih_rz_e, whh_rz_e = wih_rz_e_ref[...], whh_rz_e_ref[...]
    wih_n_e, whh_n_e = wih_n_e_ref[...], whh_n_e_ref[...]
    # (1, X) biases; implicit sublane-broadcast in the adds -- no materialized
    # (M, X) broadcast held live across the unrolled loop.
    brz_v, bin_v, bhn_v = brz_v_ref[...], bin_v_ref[...], bhn_v_ref[...]
    brz_e, bin_e, bhn_e = brz_e_ref[...], bin_e_ref[...], bhn_e_ref[...]

    def gru(x, h, wih_rz, whh_rz, wih_n, whh_n, b_rz, b_in, b_hn):
        # PyTorch nn.GRUCell semantics; bf16 MXU operands, f32 accumulation
        # and f32 recurrent state.  Gate groups come from separate dots so
        # there is no slicing of a 3F=96-wide result inside the loop.
        x16 = x.astype(bf16)
        h16 = h.astype(bf16)
        rz = jax.nn.sigmoid(
            jnp.dot(x16, wih_rz, preferred_element_type=f32)
            + jnp.dot(h16, whh_rz, preferred_element_type=f32)
            + b_rz)                                   # (M, 2f) fused r|z gates
        r = rz[:, :f]
        z = rz[:, f:]
        gin = jnp.dot(x16, wih_n, preferred_element_type=f32) + b_in
        ghn = jnp.dot(h16, whh_n, preferred_element_type=f32) + b_hn
        ng = jnp.tanh(gin + r * ghn)
        return ng + z * (h - ng)          # == (1-z)*ng + z*h, one fewer VPU op

    e_v = jnp.zeros_like(v_h)
    v_h_up = v_h * vmask
    e_h_up4 = e_h.reshape(bb, n, n, f) * emask4

    # STEP_N is small & static -> unrolled.
    # TODO(synk): switch to a lax.fori_loop carry if STEP_N grows beyond ~4.
    for _ in range(step_n):
        # v_h = v_cell(e_v, v_h); v_h_up = vp.unpack(v_h)
        v_h = gru(e_v, v_h, wih_rz_v, whh_rz_v, wih_n_v, whh_n_v,
                  brz_v, bin_v, bhn_v)
        v_h_up = v_h * vmask
        # v_e[b, i, j, :] = v_h_up[b, j, :] * v_h_up[b, i, :]
        vhb = v_h_up.reshape(bb, n, f)
        v_e = (vhb[:, None, :, :] * vhb[:, :, None, :]).reshape(bb * n * n, f)
        # e_h = e_cell(v_e_p, e_h); e_h_up = ep.unpack(e_h)
        e_h = gru(v_e, e_h, wih_rz_e, whh_rz_e, wih_n_e, whh_n_e,
                  brz_e, bin_e, bhn_e)
        e_h_up4 = e_h.reshape(bb, n, n, f) * emask4
        # e_v = goodmax(e_h_up, dim=1)  (masked rows hold 0, as in the module)
        e_v = jnp.max(e_h_up4, axis=1).reshape(bb * n, f)

    # Lane-dense e writeback: the output block is (bb*n, n*f) so the HBM
    # writeback runs dense 128-lane stores.  Per-j column slabs confine the
    # relayout to the epilogue and avoid a minor-dim-merging reshape.
    for j in range(n):
        e_out_ref[:, j * f:(j + 1) * f] = e_h_up4[:, :, j, :].reshape(bb * n, f)
    v_out_ref[...] = v_h_up               # == vp.unpack(v_h)


def _prep_cell(w_ih, w_hh, b_ih, b_hh, F):
    """PyTorch GRUCell params (3F,F)/(3F,) -> kernel layout, gate order r|z|n."""
    w_ih = jnp.asarray(w_ih).astype(jnp.float32)
    w_hh = jnp.asarray(w_hh).astype(jnp.float32)
    b_ih = jnp.asarray(b_ih).astype(jnp.float32)
    b_hh = jnp.asarray(b_hh).astype(jnp.float32)
    wih_rz = w_ih[:2 * F].T.astype(jnp.bfloat16)      # (F, 2F)
    whh_rz = w_hh[:2 * F].T.astype(jnp.bfloat16)      # (F, 2F)
    wih_n = w_ih[2 * F:].T.astype(jnp.bfloat16)       # (F, F)
    whh_n = w_hh[2 * F:].T.astype(jnp.bfloat16)       # (F, F)
    # r/z biases are always summed -> fold; the n-gate hh bias stays separate
    # (it sits inside r * (h @ Whh_n + b_hh_n)).
    b_rz = (b_ih[:2 * F] + b_hh[:2 * F]).reshape(1, 2 * F)
    b_in = b_ih[2 * F:].reshape(1, F)
    b_hn = b_hh[2 * F:].reshape(1, F)
    return wih_rz, whh_rz, wih_n, whh_n, b_rz, b_in, b_hn


def _auto_batch_block(batch, max_bb=16):
    """Largest divisor of `batch` that is <= max_bb.

    Tiny batches collapse to a single grid step (best on single-TC v5e/v6e);
    production batches get BB=8..16 so per-step matmul M and DMA sizes are
    past the fixed-cost knee.  On v7x (2 TCs) pass batch_block explicitly so
    the grid length B//BB stays even and >= ~4 for megacore balance.
    """
    bb = 1
    for d in range(1, min(batch, max_bb) + 1):
        if batch % d == 0:
            bb = d
    return bb


def evmp_forward(e, v, e_mask, v_mask, params, step_n, *, batch_block=None):
    """e: (B,N,N,F), v: (B,N,F), e_mask: (B,N,N), v_mask: (B,N)."""
    B, N, _, F = e.shape
    f32 = jnp.float32
    BB = _auto_batch_block(B) if batch_block is None else batch_block
    assert B % BB == 0, "batch_block must divide the batch size"

    v_flat = v.reshape(B * N, F).astype(f32)
    e_flat = e.reshape(B * N * N, F).astype(f32)
    vmask = (v_mask > 0).astype(f32).reshape(B * N, 1)
    emask = (e_mask > 0).astype(f32).reshape(B, N, N, 1)   # compact mask layout

    cell_v = _prep_cell(params["w_ih_v"], params["w_hh_v"],
                        params["b_ih_v"], params["b_hh_v"], F)
    cell_e = _prep_cell(params["w_ih_e"], params["w_hh_e"],
                        params["b_ih_e"], params["b_hh_e"], F)

    inputs = (v_flat, e_flat, vmask, emask) + cell_v + cell_e

    blk2 = lambda b: (b, 0)       # batch-tiled 2D arrays
    cst2 = lambda b: (0, 0)       # grid-resident params: no re-DMA per step

    # Constant-index param specs (full arrays, VMEM-resident across the grid).
    # NOTE: pipeline_mode=pl.Buffered(1) would drop their second buffer; they
    # total < 64 KiB so it is skipped to keep compile risk at zero.
    param_specs = [pl.BlockSpec(p.shape, cst2) for p in cell_v + cell_e]

    in_specs = [
        pl.BlockSpec((BB * N, F), blk2),                      # v
        pl.BlockSpec((BB * N * N, F), blk2),                  # e
        pl.BlockSpec((BB * N, 1), blk2),                      # vmask
        pl.BlockSpec((BB, N, N, 1), lambda b: (b, 0, 0, 0)),  # emask
    ] + param_specs

    out_specs = (
        pl.BlockSpec((BB * N, N * F), blk2),   # lane-dense (256-wide) e out
        pl.BlockSpec((BB * N, F), blk2),       # v out
    )

    kernel = functools.partial(_evmp_kernel, BB, N, F, step_n)

    e_out, v_out = pl.pallas_call(
        kernel,
        out_shape=(jax.ShapeDtypeStruct((B * N, N * F), f32),
                   jax.ShapeDtypeStruct((B * N, F), f32)),
        grid=(B // BB,),
        in_specs=in_specs,
        out_specs=out_specs,
        compiler_params=pltpu.CompilerParams(
            # batch blocks are independent -> megacore-shardable on v7x;
            # harmless no-op on single-TC v5e/v6e.
            dimension_semantics=("parallel",),
            # explicit scoped-VMEM budget, safe on v5e/v6e (128 MiB) and
            # v7x (64 MiB physical) at these shapes and any reasonable BB.
            vmem_limit_bytes=32 * 1024 * 1024,
        ),
    )(*inputs)

    # (B*N, N*F) row-major == (B, N, N, F) row-major -> free metadata reshape.
    return e_out.reshape(B, N, N, F), v_out.reshape(B, N, F)


def _reference_dense(e, v, e_mask, v_mask, params, step_n):
    """Pure-JAX f32 reference with exact PyTorch-module math (for validation)."""
    B, N, _, F = e.shape
    f32 = jnp.float32

    def gru(x, h, w_ih, w_hh, b_ih, b_hh):
        gi = x @ w_ih.T + b_ih
        gh = h @ w_hh.T + b_hh
        r = jax.nn.sigmoid(gi[:, :F] + gh[:, :F])
        z = jax.nn.sigmoid(gi[:, F:2 * F] + gh[:, F:2 * F])
        n = jnp.tanh(gi[:, 2 * F:] + r * gh[:, 2 * F:])
        return (1.0 - z) * n + z * h

    vmask = (v_mask > 0).astype(f32).reshape(B * N, 1)
    emask = (e_mask > 0).astype(f32).reshape(B * N * N, 1)
    v_h = v.reshape(B * N, F).astype(f32)
    e_h = e.reshape(B * N * N, F).astype(f32)
    e_v = jnp.zeros_like(v_h)
    v_h_up = v_h * vmask
    e_h_up = e_h * emask
    for _ in range(step_n):
        v_h = gru(e_v, v_h, params["w_ih_v"], params["w_hh_v"],
                  params["b_ih_v"], params["b_hh_v"])
        v_h_up = v_h * vmask
        vhb = v_h_up.reshape(B, N, F)
        v_e = (vhb[:, None, :, :] * vhb[:, :, None, :]).reshape(B * N * N, F)
        e_h = gru(v_e, e_h, params["w_ih_e"], params["w_hh_e"],
                  params["b_ih_e"], params["b_hh_e"])
        e_h_up = e_h * emask
        e_v = jnp.max(e_h_up.reshape(B, N, N, F), axis=1).reshape(B * N, F)
    return e_h_up.reshape(B, N, N, F), v_h_up.reshape(B, N, F)


def init_params(F, key):
    """Deterministic synthetic GRUCell params (PyTorch shapes: (3F,F)/(3F,))."""
    bound = 1.0 / jnp.sqrt(jnp.float32(F))
    ks = jax.random.split(key, 8)
    u = lambda k, s: jax.random.uniform(k, s, jnp.float32, -bound, bound)
    return {
        "w_ih_v": u(ks[0], (3 * F, F)),
        "w_hh_v": u(ks[1], (3 * F, F)),
        "b_ih_v": u(ks[2], (3 * F,)),
        "b_hh_v": u(ks[3], (3 * F,)),
        "w_ih_e": u(ks[4], (3 * F, F)),
        "w_hh_e": u(ks[5], (3 * F, F)),
        "b_ih_e": u(ks[6], (3 * F,)),
        "b_hh_e": u(ks[7], (3 * F,)),
    }


if __name__ == "__main__":
    B, N, F, STEP_N = 2, 8, 32, 3
    key = jax.random.PRNGKey(0)
    k_e, k_v, k_p = jax.random.split(key, 3)

    e = jax.random.normal(k_e, (B, N, N, F), jnp.float32)
    v = jax.random.normal(k_v, (B, N, F), jnp.float32)

    # Valid-node masks (batch 0 has 6 valid nodes, batch 1 has all 8).
    n_valid = jnp.array([6, 8])
    idx = jnp.arange(N)
    v_mask = (idx[None, :] < n_valid[:, None]).astype(jnp.float32)   # (B, N)
    e_mask = v_mask[:, :, None] * v_mask[:, None, :]                 # (B, N, N)

    params = init_params(F, k_p)

    # batch_block=None -> auto (BB=B=2 here: single grid step on v5e/v6e).
    e_out, v_out = evmp_forward(e, v, e_mask, v_mask, params, STEP_N,
                                batch_block=None)
    jax.block_until_ready((e_out, v_out))

    e_ref, v_ref = _reference_dense(e, v, e_mask, v_mask, params, STEP_N)

    # Kernel uses bf16 MXU operands (f32 accumulation/state) -> relaxed
    # tolerance vs the exact-f32 reference.
    e_err = float(jnp.max(jnp.abs(e_out - e_ref)))
    v_err = float(jnp.max(jnp.abs(v_out - v_ref)))
    assert e_err < 5e-2, ("edge output mismatch", e_err)
    assert v_err < 5e-2, ("vertex output mismatch", v_err)

    # Structural check (exact, independent of bf16): masked positions are 0.
    assert bool(jnp.all(jnp.where(e_mask[..., None] > 0, True, e_out == 0.0)))
    assert bool(jnp.all(jnp.where(v_mask[..., None] > 0, True, v_out == 0.0)))

    print("KERNEL_OK")
</pallas_src>

<mosaic_0001>
module attributes {stable_mosaic.version = 11 : i64} {
  func.func @_evmp_kernel(%arg0: i32, %arg1: memref<16x32xf32, #tpu.memory_space<vmem>>, %arg2: memref<128x32xf32, #tpu.memory_space<vmem>>, %arg3: memref<16x1xf32, #tpu.memory_space<vmem>>, %arg4: memref<2x8x8x1xf32, #tpu.memory_space<vmem>>, %arg5: memref<32x64xbf16, #tpu.memory_space<vmem>>, %arg6: memref<32x64xbf16, #tpu.memory_space<vmem>>, %arg7: memref<32x32xbf16, #tpu.memory_space<vmem>>, %arg8: memref<32x32xbf16, #tpu.memory_space<vmem>>, %arg9: memref<1x64xf32, #tpu.memory_space<vmem>>, %arg10: memref<1x32xf32, #tpu.memory_space<vmem>>, %arg11: memref<1x32xf32, #tpu.memory_space<vmem>>, %arg12: memref<32x64xbf16, #tpu.memory_space<vmem>>, %arg13: memref<32x64xbf16, #tpu.memory_space<vmem>>, %arg14: memref<32x32xbf16, #tpu.memory_space<vmem>>, %arg15: memref<32x32xbf16, #tpu.memory_space<vmem>>, %arg16: memref<1x64xf32, #tpu.memory_space<vmem>>, %arg17: memref<1x32xf32, #tpu.memory_space<vmem>>, %arg18: memref<1x32xf32, #tpu.memory_space<vmem>>, %arg19: memref<16x256xf32, #tpu.memory_space<vmem>>, %arg20: memref<16x32xf32, #tpu.memory_space<vmem>>) attributes {dimension_semantics = [#tpu.dimension_semantics<parallel>], iteration_bounds = array<i64: 1>, scalar_prefetch = 0 : i64, scratch_operands = 0 : i64, tpu.core_type = #tpu.core_type<tc>, window_params = [{transform_indices = @transform_0, window_bounds = array<i64: 16, 32>}, {transform_indices = @transform_1, window_bounds = array<i64: 128, 32>}, {transform_indices = @transform_2, window_bounds = array<i64: 16, 1>}, {transform_indices = @transform_3, window_bounds = array<i64: 2, 8, 8, 1>}, {pipeline_mode = #tpu.pipeline_mode<synchronous>, transform_indices = @transform_4, window_bounds = array<i64: 32, 64>}, {pipeline_mode = #tpu.pipeline_mode<synchronous>, transform_indices = @transform_5, window_bounds = array<i64: 32, 64>}, {pipeline_mode = #tpu.pipeline_mode<synchronous>, transform_indices = @transform_6, window_bounds = array<i64: 32, 32>}, {pipeline_mode = #tpu.pipeline_mode<synchronous>, transform_indices = @transform_7, window_bounds = array<i64: 32, 32>}, {pipeline_mode = #tpu.pipeline_mode<synchronous>, transform_indices = @transform_8, window_bounds = array<i64: 1, 64>}, {pipeline_mode = #tpu.pipeline_mode<synchronous>, transform_indices = @transform_9, window_bounds = array<i64: 1, 32>}, {pipeline_mode = #tpu.pipeline_mode<synchronous>, transform_indices = @transform_10, window_bounds = array<i64: 1, 32>}, {pipeline_mode = #tpu.pipeline_mode<synchronous>, transform_indices = @transform_11, window_bounds = array<i64: 32, 64>}, {pipeline_mode = #tpu.pipeline_mode<synchronous>, transform_indices = @transform_12, window_bounds = array<i64: 32, 64>}, {pipeline_mode = #tpu.pipeline_mode<synchronous>, transform_indices = @transform_13, window_bounds = array<i64: 32, 32>}, {pipeline_mode = #tpu.pipeline_mode<synchronous>, transform_indices = @transform_14, window_bounds = array<i64: 32, 32>}, {pipeline_mode = #tpu.pipeline_mode<synchronous>, transform_indices = @transform_15, window_bounds = array<i64: 1, 64>}, {pipeline_mode = #tpu.pipeline_mode<synchronous>, transform_indices = @transform_16, window_bounds = array<i64: 1, 32>}, {pipeline_mode = #tpu.pipeline_mode<synchronous>, transform_indices = @transform_17, window_bounds = array<i64: 1, 32>}, {transform_indices = @transform_18, window_bounds = array<i64: 16, 256>}, {transform_indices = @transform_19, window_bounds = array<i64: 16, 32>}]} {
    %c0 = arith.constant 0 : index
    %c0_0 = arith.constant 0 : index
    %0 = vector.load %arg1[%c0, %c0_0] : memref<16x32xf32, #tpu.memory_space<vmem>>, vector<16x32xf32>
    %c0_1 = arith.constant 0 : index
    %c0_2 = arith.constant 0 : index
    %1 = vector.load %arg2[%c0_1, %c0_2] : memref<128x32xf32, #tpu.memory_space<vmem>>, vector<128x32xf32>
    %c0_3 = arith.constant 0 : index
    %c0_4 = arith.constant 0 : index
    %2 = vector.load %arg3[%c0_3, %c0_4] : memref<16x1xf32, #tpu.memory_space<vmem>>, vector<16x1xf32>
    %c0_5 = arith.constant 0 : index
    %c0_6 = arith.constant 0 : index
    %c0_7 = arith.constant 0 : index
    %c0_8 = arith.constant 0 : index
    %3 = vector.load %arg4[%c0_5, %c0_6, %c0_7, %c0_8] : memref<2x8x8x1xf32, #tpu.memory_space<vmem>>, vector<2x8x8x1xf32>
    %c0_9 = arith.constant 0 : index
    %c0_10 = arith.constant 0 : index
    %4 = vector.load %arg5[%c0_9, %c0_10] : memref<32x64xbf16, #tpu.memory_space<vmem>>, vector<32x64xbf16>
    %c0_11 = arith.constant 0 : index
    %c0_12 = arith.constant 0 : index
    %5 = vector.load %arg6[%c0_11, %c0_12] : memref<32x64xbf16, #tpu.memory_space<vmem>>, vector<32x64xbf16>
    %c0_13 = arith.constant 0 : index
    %c0_14 = arith.constant 0 : index
    %6 = vector.load %arg7[%c0_13, %c0_14] : memref<32x32xbf16, #tpu.memory_space<vmem>>, vector<32x32xbf16>
    %c0_15 = arith.constant 0 : index
    %c0_16 = arith.constant 0 : index
    %7 = vector.load %arg8[%c0_15, %c0_16] : memref<32x32xbf16, #tpu.memory_space<vmem>>, vector<32x32xbf16>
    %c0_17 = arith.constant 0 : index
    %c0_18 = arith.constant 0 : index
    %8 = vector.load %arg12[%c0_17, %c0_18] : memref<32x64xbf16, #tpu.memory_space<vmem>>, vector<32x64xbf16>
    %c0_19 = arith.constant 0 : index
    %c0_20 = arith.constant 0 : index
    %9 = vector.load %arg13[%c0_19, %c0_20] : memref<32x64xbf16, #tpu.memory_space<vmem>>, vector<32x64xbf16>
    %c0_21 = arith.constant 0 : index
    %c0_22 = arith.constant 0 : index
    %10 = vector.load %arg14[%c0_21, %c0_22] : memref<32x32xbf16, #tpu.memory_space<vmem>>, vector<32x32xbf16>
    %c0_23 = arith.constant 0 : index
    %c0_24 = arith.constant 0 : index
    %11 = vector.load %arg15[%c0_23, %c0_24] : memref<32x32xbf16, #tpu.memory_space<vmem>>, vector<32x32xbf16>
    %c0_25 = arith.constant 0 : index
    %c0_26 = arith.constant 0 : index
    %12 = vector.load %arg9[%c0_25, %c0_26] : memref<1x64xf32, #tpu.memory_space<vmem>>, vector<1x64xf32>
    %c0_27 = arith.constant 0 : index
    %c0_28 = arith.constant 0 : index
    %13 = vector.load %arg10[%c0_27, %c0_28] : memref<1x32xf32, #tpu.memory_space<vmem>>, vector<1x32xf32>
    %c0_29 = arith.constant 0 : index
    %c0_30 = arith.constant 0 : index
    %14 = vector.load %arg11[%c0_29, %c0_30] : memref<1x32xf32, #tpu.memory_space<vmem>>, vector<1x32xf32>
    %c0_31 = arith.constant 0 : index
    %c0_32 = arith.constant 0 : index
    %15 = vector.load %arg16[%c0_31, %c0_32] : memref<1x64xf32, #tpu.memory_space<vmem>>, vector<1x64xf32>
    %c0_33 = arith.constant 0 : index
    %c0_34 = arith.constant 0 : index
    %16 = vector.load %arg17[%c0_33, %c0_34] : memref<1x32xf32, #tpu.memory_space<vmem>>, vector<1x32xf32>
    %c0_35 = arith.constant 0 : index
    %c0_36 = arith.constant 0 : index
    %17 = vector.load %arg18[%c0_35, %c0_36] : memref<1x32xf32, #tpu.memory_space<vmem>>, vector<1x32xf32>
    %cst = arith.constant 0.000000e+00 : f32
    %18 = vector.broadcast %cst : f32 to vector<16x32xf32>
    %19 = arith.truncf %18 : vector<16x32xf32> to vector<16x32xbf16>
    %20 = arith.truncf %0 : vector<16x32xf32> to vector<16x32xbf16>
    %cst_37 = arith.constant dense<0.000000e+00> : vector<16x64xf32>
    %21 = tpu.matmul %19, %4, %cst_37 {dimension_numbers = #tpu.dot_dimension_numbers<[1], [0], [0], [1], [0, 0, 1, 1], [], []>} : vector<16x32xbf16>, vector<32x64xbf16>, vector<16x64xf32> -> vector<16x64xf32>
    %cst_38 = arith.constant dense<0.000000e+00> : vector<16x64xf32>
    %22 = tpu.matmul %20, %5, %cst_38 {dimension_numbers = #tpu.dot_dimension_numbers<[1], [0], [0], [1], [0, 0, 1, 1], [], []>} : vector<16x32xbf16>, vector<32x64xbf16>, vector<16x64xf32> -> vector<16x64xf32>
    %23 = arith.addf %21, %22 : vector<16x64xf32>
    %24 = vector.broadcast %12 : vector<1x64xf32> to vector<16x64xf32>
    %25 = arith.addf %23, %24 : vector<16x64xf32>
    %26 = arith.negf %25 : vector<16x64xf32>
    %27 = math.exp %26 : vector<16x64xf32>
    %cst_39 = arith.constant 1.000000e+00 : f32
    %28 = vector.broadcast %cst_39 : f32 to vector<16x64xf32>
    %29 = arith.addf %28, %27 : vector<16x64xf32>
    %30 = arith.divf %28, %29 : vector<16x64xf32>
    %31 = vector.extract_strided_slice %30 {offsets = [0, 0], sizes = [16, 32], strides = [1, 1]} : vector<16x64xf32> to vector<16x32xf32>
    %32 = vector.extract_strided_slice %30 {offsets = [0, 32], sizes = [16, 32], strides = [1, 1]} : vector<16x64xf32> to vector<16x32xf32>
    %cst_40 = arith.constant dense<0.000000e+00> : vector<16x32xf32>
    %33 = tpu.matmul %19, %6, %cst_40 {dimension_numbers = #tpu.dot_dimension_numbers<[1], [0], [0], [1], [0, 0, 1, 1], [], []>} : vector<16x32xbf16>, vector<32x32xbf16>, vector<16x32xf32> -> vector<16x32xf32>
    %34 = vector.broadcast %13 : vector<1x32xf32> to vector<16x32xf32>
    %35 = arith.addf %33, %34 : vector<16x32xf32>
    %cst_41 = arith.constant dense<0.000000e+00> : vector<16x32xf32>
    %36 = tpu.matmul %20, %7, %cst_41 {dimension_numbers = #tpu.dot_dimension_numbers<[1], [0], [0], [1], [0, 0, 1, 1], [], []>} : vector<16x32xbf16>, vector<32x32xbf16>, vector<16x32xf32> -> vector<16x32xf32>
    %37 = vector.broadcast %14 : vector<1x32xf32> to vector<16x32xf32>
    %38 = arith.addf %36, %37 : vector<16x32xf32>
    %39 = arith.mulf %31, %38 : vector<16x32xf32>
    %40 = arith.addf %35, %39 : vector<16x32xf32>
    %41 = math.tanh %40 : vector<16x32xf32>
    %42 = arith.subf %0, %41 : vector<16x32xf32>
    %43 = arith.mulf %32, %42 : vector<16x32xf32>
    %44 = arith.addf %41, %43 : vector<16x32xf32>
    %45 = vector.broadcast %2 : vector<16x1xf32> to vector<16x32xf32>
    %46 = arith.mulf %44, %45 : vector<16x32xf32>
    %47 = vector.shape_cast %46 : vector<16x32xf32> to vector<2x8x32xf32>
    %48 = vector.shape_cast %47 : vector<2x8x32xf32> to vector<2x1x8x32xf32>
    %49 = vector.shape_cast %47 : vector<2x8x32xf32> to vector<2x8x1x32xf32>
    %50 = vector.broadcast %48 : vector<2x1x8x32xf32> to vector<2x8x8x32xf32>
    %51 = vector.broadcast %49 : vector<2x8x1x32xf32> to vector<2x8x8x32xf32>
    %52 = arith.mulf %50, %51 : vector<2x8x8x32xf32>
    %53 = vector.shape_cast %52 : vector<2x8x8x32xf32> to vector<128x32xf32>
    %54 = arith.truncf %53 : vector<128x32xf32> to vector<128x32xbf16>
    %55 = arith.truncf %1 : vector<128x32xf32> to vector<128x32xbf16>
    %cst_42 = arith.constant dense<0.000000e+00> : vector<128x64xf32>
    %56 = tpu.matmul %54, %8, %cst_42 {dimension_numbers = #tpu.dot_dimension_numbers<[1], [0], [0], [1], [0, 0, 1, 1], [], []>} : vector<128x32xbf16>, vector<32x64xbf16>, vector<128x64xf32> -> vector<128x64xf32>
    %cst_43 = arith.constant dense<0.000000e+00> : vector<128x64xf32>
    %57 = tpu.matmul %55, %9, %cst_43 {dimension_numbers = #tpu.dot_dimension_numbers<[1], [0], [0], [1], [0, 0, 1, 1], [], []>} : vector<128x32xbf16>, vector<32x64xbf16>, vector<128x64xf32> -> vector<128x64xf32>
    %58 = arith.addf %56, %57 : vector<128x64xf32>
    %59 = vector.broadcast %15 : vector<1x64xf32> to vector<128x64xf32>
    %60 = arith.addf %58, %59 : vector<128x64xf32>
    %61 = arith.negf %60 : vector<128x64xf32>
    %62 = math.exp %61 : vector<128x64xf32>
    %cst_44 = arith.constant 1.000000e+00 : f32
    %63 = vector.broadcast %cst_44 : f32 to vector<128x64xf32>
    %64 = arith.addf %63, %62 : vector<128x64xf32>
    %65 = arith.divf %63, %64 : vector<128x64xf32>
    %66 = vector.extract_strided_slice %65 {offsets = [0, 0], sizes = [128, 32], strides = [1, 1]} : vector<128x64xf32> to vector<128x32xf32>
    %67 = vector.extract_strided_slice %65 {offsets = [0, 32], sizes = [128, 32], strides = [1, 1]} : vector<128x64xf32> to vector<128x32xf32>
    %cst_45 = arith.constant dense<0.000000e+00> : vector<128x32xf32>
    %68 = tpu.matmul %54, %10, %cst_45 {dimension_numbers = #tpu.dot_dimension_numbers<[1], [0], [0], [1], [0, 0, 1, 1], [], []>} : vector<128x32xbf16>, vector<32x32xbf16>, vector<128x32xf32> -> vector<128x32xf32>
    %69 = vector.broadcast %16 : vector<1x32xf32> to vector<128x32xf32>
    %70 = arith.addf %68, %69 : vector<128x32xf32>
    %cst_46 = arith.constant dense<0.000000e+00> : vector<128x32xf32>
    %71 = tpu.matmul %55, %11, %cst_46 {dimension_numbers = #tpu.dot_dimension_numbers<[1], [0], [0], [1], [0, 0, 1, 1], [], []>} : vector<128x32xbf16>, vector<32x32xbf16>, vector<128x32xf32> -> vector<128x32xf32>
    %72 = vector.broadcast %17 : vector<1x32xf32> to vector<128x32xf32>
    %73 = arith.addf %71, %72 : vector<128x32xf32>
    %74 = arith.mulf %66, %73 : vector<128x32xf32>
    %75 = arith.addf %70, %74 : vector<128x32xf32>
    %76 = math.tanh %75 : vector<128x32xf32>
    %77 = arith.subf %1, %76 : vector<128x32xf32>
    %78 = arith.mulf %67, %77 : vector<128x32xf32>
    %79 = arith.addf %76, %78 : vector<128x32xf32>
    %80 = vector.shape_cast %79 : vector<128x32xf32> to vector<2x8x8x32xf32>
    %81 = vector.broadcast %3 : vector<2x8x8x1xf32> to vector<2x8x8x32xf32>
    %82 = arith.mulf %80, %81 : vector<2x8x8x32xf32>
    %cst_47 = arith.constant dense<0xFF800000> : vector<2x8x32xf32>
    %83 = vector.multi_reduction <maximumf>, %82, %cst_47 [1] : vector<2x8x8x32xf32> to vector<2x8x32xf32>
    %84 = vector.shape_cast %83 : vector<2x8x32xf32> to vector<16x32xf32>
    %85 = arith.truncf %84 : vector<16x32xf32> to vector<16x32xbf16>
    %86 = arith.truncf %44 : vector<16x32xf32> to vector<16x32xbf16>
    %cst_48 = arith.constant dense<0.000000e+00> : vector<16x64xf32>
    %87 = tpu.matmul %85, %4, %cst_48 {dimension_numbers = #tpu.dot_dimension_numbers<[1], [0], [0], [1], [0, 0, 1, 1], [], []>} : vector<16x32xbf16>, vector<32x64xbf16>, vector<16x64xf32> -> vector<16x64xf32>
    %cst_49 = arith.constant dense<0.000000e+00> : vector<16x64xf32>
    %88 = tpu.matmul %86, %5, %cst_49 {dimension_numbers = #tpu.dot_dimension_numbers<[1], [0], [0], [1], [0, 0, 1, 1], [], []>} : vector<16x32xbf16>, vector<32x64xbf16>, vector<16x64xf32> -> vector<16x64xf32>
    %89 = arith.addf %87, %88 : vector<16x64xf32>
    %90 = vector.broadcast %12 : vector<1x64xf32> to vector<16x64xf32>
    %91 = arith.addf %89, %90 : vector<16x64xf32>
    %92 = arith.negf %91 : vector<16x64xf32>
    %93 = math.exp %92 : vector<16x64xf32>
    %cst_50 = arith.constant 1.000000e+00 : f32
    %94 = vector.broadcast %cst_50 : f32 to vector<16x64xf32>
    %95 = arith.addf %94, %93 : vector<16x64xf32>
    %96 = arith.divf %94, %95 : vector<16x64xf32>
    %97 = vector.extract_strided_slice %96 {offsets = [0, 0], sizes = [16, 32], strides = [1, 1]} : vector<16x64xf32> to vector<16x32xf32>
    %98 = vector.extract_strided_slice %96 {offsets = [0, 32], sizes = [16, 32], strides = [1, 1]} : vector<16x64xf32> to vector<16x32xf32>
    %cst_51 = arith.constant dense<0.000000e+00> : vector<16x32xf32>
    %99 = tpu.matmul %85, %6, %cst_51 {dimension_numbers = #tpu.dot_dimension_numbers<[1], [0], [0], [1], [0, 0, 1, 1], [], []>} : vector<16x32xbf16>, vector<32x32xbf16>, vector<16x32xf32> -> vector<16x32xf32>
    %100 = vector.broadcast %13 : vector<1x32xf32> to vector<16x32xf32>
    %101 = arith.addf %99, %100 : vector<16x32xf32>
    %cst_52 = arith.constant dense<0.000000e+00> : vector<16x32xf32>
    %102 = tpu.matmul %86, %7, %cst_52 {dimension_numbers = #tpu.dot_dimension_numbers<[1], [0], [0], [1], [0, 0, 1, 1], [], []>} : vector<16x32xbf16>, vector<32x32xbf16>, vector<16x32xf32> -> vector<16x32xf32>
    %103 = vector.broadcast %14 : vector<1x32xf32> to vector<16x32xf32>
    %104 = arith.addf %102, %103 : vector<16x32xf32>
    %105 = arith.mulf %97, %104 : vector<16x32xf32>
    %106 = arith.addf %101, %105 : vector<16x32xf32>
    %107 = math.tanh %106 : vector<16x32xf32>
    %108 = arith.subf %44, %107 : vector<16x32xf32>
    %109 = arith.mulf %98, %108 : vector<16x32xf32>
    %110 = arith.addf %107, %109 : vector<16x32xf32>
    %111 = vector.broadcast %2 : vector<16x1xf32> to vector<16x32xf32>
    %112 = arith.mulf %110, %111 : vector<16x32xf32>
    %113 = vector.shape_cast %112 : vector<16x32xf32> to vector<2x8x32xf32>
    %114 = vector.shape_cast %113 : vector<2x8x32xf32> to vector<2x1x8x32xf32>
    %115 = vector.shape_cast %113 : vector<2x8x32xf32> to vector<2x8x1x32xf32>
    %116 = vector.broadcast %114 : vector<2x1x8x32xf32> to vector<2x8x8x32xf32>
    %117 = vector.broadcast %115 : vector<2x8x1x32xf32> to vector<2x8x8x32xf32>
    %118 = arith.mulf %116, %117 : vector<2x8x8x32xf32>
    %119 = vector.shape_cast %118 : vector<2x8x8x32xf32> to vector<128x32xf32>
    %120 = arith.truncf %119 : vector<128x32xf32> to vector<128x32xbf16>
    %121 = arith.truncf %79 : vector<128x32xf32> to vector<128x32xbf16>
    %cst_53 = arith.constant dense<0.000000e+00> : vector<128x64xf32>
    %122 = tpu.matmul %120, %8, %cst_53 {dimension_numbers = #tpu.dot_dimension_numbers<[1], [0], [0], [1], [0, 0, 1, 1], [], []>} : vector<128x32xbf16>, vector<32x64xbf16>, vector<128x64xf32> -> vector<128x64xf32>
    %cst_54 = arith.constant dense<0.000000e+00> : vector<128x64xf32>
    %123 = tpu.matmul %121, %9, %cst_54 {dimension_numbers = #tpu.dot_dimension_numbers<[1], [0], [0], [1], [0, 0, 1, 1], [], []>} : vector<128x32xbf16>, vector<32x64xbf16>, vector<128x64xf32> -> vector<128x64xf32>
    %124 = arith.addf %122, %123 : vector<128x64xf32>
    %125 = vector.broadcast %15 : vector<1x64xf32> to vector<128x64xf32>
    %126 = arith.addf %124, %125 : vector<128x64xf32>
    %127 = arith.negf %126 : vector<128x64xf32>
    %128 = math.exp %127 : vector<128x64xf32>
    %cst_55 = arith.constant 1.000000e+00 : f32
    %129 = vector.broadcast %cst_55 : f32 to vector<128x64xf32>
    %130 = arith.addf %129, %128 : vector<128x64xf32>
    %131 = arith.divf %129, %130 : vector<128x64xf32>
    %132 = vector.extract_strided_slice %131 {offsets = [0, 0], sizes = [128, 32], strides = [1, 1]} : vector<128x64xf32> to vector<128x32xf32>
    %133 = vector.extract_strided_slice %131 {offsets = [0, 32], sizes = [128, 32], strides = [1, 1]} : vector<128x64xf32> to vector<128x32xf32>
    %cst_56 = arith.constant dense<0.000000e+00> : vector<128x32xf32>
    %134 = tpu.matmul %120, %10, %cst_56 {dimension_numbers = #tpu.dot_dimension_numbers<[1], [0], [0], [1], [0, 0, 1, 1], [], []>} : vector<128x32xbf16>, vector<32x32xbf16>, vector<128x32xf32> -> vector<128x32xf32>
    %135 = vector.broadcast %16 : vector<1x32xf32> to vector<128x32xf32>
    %136 = arith.addf %134, %135 : vector<128x32xf32>
    %cst_57 = arith.constant dense<0.000000e+00> : vector<128x32xf32>
    %137 = tpu.matmul %121, %11, %cst_57 {dimension_numbers = #tpu.dot_dimension_numbers<[1], [0], [0], [1], [0, 0, 1, 1], [], []>} : vector<128x32xbf16>, vector<32x32xbf16>, vector<128x32xf32> -> vector<128x32xf32>
    %138 = vector.broadcast %17 : vector<1x32xf32> to vector<128x32xf32>
    %139 = arith.addf %137, %138 : vector<128x32xf32>
    %140 = arith.mulf %132, %139 : vector<128x32xf32>
    %141 = arith.addf %136, %140 : vector<128x32xf32>
    %142 = math.tanh %141 : vector<128x32xf32>
    %143 = arith.subf %79, %142 : vector<128x32xf32>
    %144 = arith.mulf %133, %143 : vector<128x32xf32>
    %145 = arith.addf %142, %144 : vector<128x32xf32>
    %146 = vector.shape_cast %145 : vector<128x32xf32> to vector<2x8x8x32xf32>
    %147 = vector.broadcast %3 : vector<2x8x8x1xf32> to vector<2x8x8x32xf32>
    %148 = arith.mulf %146, %147 : vector<2x8x8x32xf32>
    %cst_58 = arith.constant dense<0xFF800000> : vector<2x8x32xf32>
    %149 = vector.multi_reduction <maximumf>, %148, %cst_58 [1] : vector<2x8x8x32xf32> to vector<2x8x32xf32>
    %150 = vector.shape_cast %149 : vector<2x8x32xf32> to vector<16x32xf32>
    %151 = arith.truncf %150 : vector<16x32xf32> to vector<16x32xbf16>
    %152 = arith.truncf %110 : vector<16x32xf32> to vector<16x32xbf16>
    %cst_59 = arith.constant dense<0.000000e+00> : vector<16x64xf32>
    %153 = tpu.matmul %151, %4, %cst_59 {dimension_numbers = #tpu.dot_dimension_numbers<[1], [0], [0], [1], [0, 0, 1, 1], [], []>} : vector<16x32xbf16>, vector<32x64xbf16>, vector<16x64xf32> -> vector<16x64xf32>
    %cst_60 = arith.constant dense<0.000000e+00> : vector<16x64xf32>
    %154 = tpu.matmul %152, %5, %cst_60 {dimension_numbers = #tpu.dot_dimension_numbers<[1], [0], [0], [1], [0, 0, 1, 1], [], []>} : vector<16x32xbf16>, vector<32x64xbf16>, vector<16x64xf32> -> vector<16x64xf32>
    %155 = arith.addf %153, %154 : vector<16x64xf32>
    %156 = vector.broadcast %12 : vector<1x64xf32> to vector<16x64xf32>
    %157 = arith.addf %155, %156 : vector<16x64xf32>
    %158 = arith.negf %157 : vector<16x64xf32>
    %159 = math.exp %158 : vector<16x64xf32>
    %cst_61 = arith.constant 1.000000e+00 : f32
    %160 = vector.broadcast %cst_61 : f32 to vector<16x64xf32>
    %161 = arith.addf %160, %159 : vector<16x64xf32>
    %162 = arith.divf %160, %161 : vector<16x64xf32>
    %163 = vector.extract_strided_slice %162 {offsets = [0, 0], sizes = [16, 32], strides = [1, 1]} : vector<16x64xf32> to vector<16x32xf32>
    %164 = vector.extract_strided_slice %162 {offsets = [0, 32], sizes = [16, 32], strides = [1, 1]} : vector<16x64xf32> to vector<16x32xf32>
    %cst_62 = arith.constant dense<0.000000e+00> : vector<16x32xf32>
    %165 = tpu.matmul %151, %6, %cst_62 {dimension_numbers = #tpu.dot_dimension_numbers<[1], [0], [0], [1], [0, 0, 1, 1], [], []>} : vector<16x32xbf16>, vector<32x32xbf16>, vector<16x32xf32> -> vector<16x32xf32>
    %166 = vector.broadcast %13 : vector<1x32xf32> to vector<16x32xf32>
    %167 = arith.addf %165, %166 : vector<16x32xf32>
    %cst_63 = arith.constant dense<0.000000e+00> : vector<16x32xf32>
    %168 = tpu.matmul %152, %7, %cst_63 {dimension_numbers = #tpu.dot_dimension_numbers<[1], [0], [0], [1], [0, 0, 1, 1], [], []>} : vector<16x32xbf16>, vector<32x32xbf16>, vector<16x32xf32> -> vector<16x32xf32>
    %169 = vector.broadcast %14 : vector<1x32xf32> to vector<16x32xf32>
    %170 = arith.addf %168, %169 : vector<16x32xf32>
    %171 = arith.mulf %163, %170 : vector<16x32xf32>
    %172 = arith.addf %167, %171 : vector<16x32xf32>
    %173 = math.tanh %172 : vector<16x32xf32>
    %174 = arith.subf %110, %173 : vector<16x32xf32>
    %175 = arith.mulf %164, %174 : vector<16x32xf32>
    %176 = arith.addf %173, %175 : vector<16x32xf32>
    %177 = vector.broadcast %2 : vector<16x1xf32> to vector<16x32xf32>
    %178 = arith.mulf %176, %177 : vector<16x32xf32>
    %179 = vector.shape_cast %178 : vector<16x32xf32> to vector<2x8x32xf32>
    %180 = vector.shape_cast %179 : vector<2x8x32xf32> to vector<2x1x8x32xf32>
    %181 = vector.shape_cast %179 : vector<2x8x32xf32> to vector<2x8x1x32xf32>
    %182 = vector.broadcast %180 : vector<2x1x8x32xf32> to vector<2x8x8x32xf32>
    %183 = vector.broadcast %181 : vector<2x8x1x32xf32> to vector<2x8x8x32xf32>
    %184 = arith.mulf %182, %183 : vector<2x8x8x32xf32>
    %185 = vector.shape_cast %184 : vector<2x8x8x32xf32> to vector<128x32xf32>
    %186 = arith.truncf %185 : vector<128x32xf32> to vector<128x32xbf16>
    %187 = arith.truncf %145 : vector<128x32xf32> to vector<128x32xbf16>
    %cst_64 = arith.constant dense<0.000000e+00> : vector<128x64xf32>
    %188 = tpu.matmul %186, %8, %cst_64 {dimension_numbers = #tpu.dot_dimension_numbers<[1], [0], [0], [1], [0, 0, 1, 1], [], []>} : vector<128x32xbf16>, vector<32x64xbf16>, vector<128x64xf32> -> vector<128x64xf32>
    %cst_65 = arith.constant dense<0.000000e+00> : vector<128x64xf32>
    %189 = tpu.matmul %187, %9, %cst_65 {dimension_numbers = #tpu.dot_dimension_numbers<[1], [0], [0], [1], [0, 0, 1, 1], [], []>} : vector<128x32xbf16>, vector<32x64xbf16>, vector<128x64xf32> -> vector<128x64xf32>
    %190 = arith.addf %188, %189 : vector<128x64xf32>
    %191 = vector.broadcast %15 : vector<1x64xf32> to vector<128x64xf32>
    %192 = arith.addf %190, %191 : vector<128x64xf32>
    %193 = arith.negf %192 : vector<128x64xf32>
    %194 = math.exp %193 : vector<128x64xf32>
    %cst_66 = arith.constant 1.000000e+00 : f32
    %195 = vector.broadcast %cst_66 : f32 to vector<128x64xf32>
    %196 = arith.addf %195, %194 : vector<128x64xf32>
    %197 = arith.divf %195, %196 : vector<128x64xf32>
    %198 = vector.extract_strided_slice %197 {offsets = [0, 0], sizes = [128, 32], strides = [1, 1]} : vector<128x64xf32> to vector<128x32xf32>
    %199 = vector.extract_strided_slice %197 {offsets = [0, 32], sizes = [128, 32], strides = [1, 1]} : vector<128x64xf32> to vector<128x32xf32>
    %cst_67 = arith.constant dense<0.000000e+00> : vector<128x32xf32>
    %200 = tpu.matmul %186, %10, %cst_67 {dimension_numbers = #tpu.dot_dimension_numbers<[1], [0], [0], [1], [0, 0, 1, 1], [], []>} : vector<128x32xbf16>, vector<32x32xbf16>, vector<128x32xf32> -> vector<128x32xf32>
    %201 = vector.broadcast %16 : vector<1x32xf32> to vector<128x32xf32>
    %202 = arith.addf %200, %201 : vector<128x32xf32>
    %cst_68 = arith.constant dense<0.000000e+00> : vector<128x32xf32>
    %203 = tpu.matmul %187, %11, %cst_68 {dimension_numbers = #tpu.dot_dimension_numbers<[1], [0], [0], [1], [0, 0, 1, 1], [], []>} : vector<128x32xbf16>, vector<32x32xbf16>, vector<128x32xf32> -> vector<128x32xf32>
    %204 = vector.broadcast %17 : vector<1x32xf32> to vector<128x32xf32>
    %205 = arith.addf %203, %204 : vector<128x32xf32>
    %206 = arith.mulf %198, %205 : vector<128x32xf32>
    %207 = arith.addf %202, %206 : vector<128x32xf32>
    %208 = math.tanh %207 : vector<128x32xf32>
    %209 = arith.subf %145, %208 : vector<128x32xf32>
    %210 = arith.mulf %199, %209 : vector<128x32xf32>
    %211 = arith.addf %208, %210 : vector<128x32xf32>
    %212 = vector.shape_cast %211 : vector<128x32xf32> to vector<2x8x8x32xf32>
    %213 = vector.broadcast %3 : vector<2x8x8x1xf32> to vector<2x8x8x32xf32>
    %214 = arith.mulf %212, %213 : vector<2x8x8x32xf32>
    %215 = vector.extract_strided_slice %214 {offsets = [0, 0, 0, 0], sizes = [2, 8, 1, 32], strides = [1, 1, 1, 1]} : vector<2x8x8x32xf32> to vector<2x8x1x32xf32>
    %216 = vector.shape_cast %215 : vector<2x8x1x32xf32> to vector<2x8x32xf32>
    %217 = vector.shape_cast %216 : vector<2x8x32xf32> to vector<16x32xf32>
    %c0_69 = arith.constant 0 : index
    %c0_70 = arith.constant 0 : index
    %218 = vector.load %arg19[%c0_69, %c0_70] : memref<16x256xf32, #tpu.memory_space<vmem>>, vector<16x32xf32>
    tpu.vector_store %arg19[%c0_69, %c0_70], %217 {strides = array<i32>} : memref<16x256xf32, #tpu.memory_space<vmem>>, vector<16x32xf32>,
    %219 = vector.extract_strided_slice %214 {offsets = [0, 0, 1, 0], sizes = [2, 8, 1, 32], strides = [1, 1, 1, 1]} : vector<2x8x8x32xf32> to vector<2x8x1x32xf32>
    %220 = vector.shape_cast %219 : vector<2x8x1x32xf32> to vector<2x8x32xf32>
    %221 = vector.shape_cast %220 : vector<2x8x32xf32> to vector<16x32xf32>
    %c0_71 = arith.constant 0 : index
    %c32 = arith.constant 32 : index
    %222 = vector.load %arg19[%c0_71, %c32] : memref<16x256xf32, #tpu.memory_space<vmem>>, vector<16x32xf32>
    tpu.vector_store %arg19[%c0_71, %c32], %221 {strides = array<i32>} : memref<16x256xf32, #tpu.memory_space<vmem>>, vector<16x32xf32>,
    %223 = vector.extract_strided_slice %214 {offsets = [0, 0, 2, 0], sizes = [2, 8, 1, 32], strides = [1, 1, 1, 1]} : vector<2x8x8x32xf32> to vector<2x8x1x32xf32>
    %224 = vector.shape_cast %223 : vector<2x8x1x32xf32> to vector<2x8x32xf32>
    %225 = vector.shape_cast %224 : vector<2x8x32xf32> to vector<16x32xf32>
    %c0_72 = arith.constant 0 : index
    %c64 = arith.constant 64 : index
    %226 = vector.load %arg19[%c0_72, %c64] : memref<16x256xf32, #tpu.memory_space<vmem>>, vector<16x32xf32>
    tpu.vector_store %arg19[%c0_72, %c64], %225 {strides = array<i32>} : memref<16x256xf32, #tpu.memory_space<vmem>>, vector<16x32xf32>,
    %227 = vector.extract_strided_slice %214 {offsets = [0, 0, 3, 0], sizes = [2, 8, 1, 32], strides = [1, 1, 1, 1]} : vector<2x8x8x32xf32> to vector<2x8x1x32xf32>
    %228 = vector.shape_cast %227 : vector<2x8x1x32xf32> to vector<2x8x32xf32>
    %229 = vector.shape_cast %228 : vector<2x8x32xf32> to vector<16x32xf32>
    %c0_73 = arith.constant 0 : index
    %c96 = arith.constant 96 : index
    %230 = vector.load %arg19[%c0_73, %c96] : memref<16x256xf32, #tpu.memory_space<vmem>>, vector<16x32xf32>
    tpu.vector_store %arg19[%c0_73, %c96], %229 {strides = array<i32>} : memref<16x256xf32, #tpu.memory_space<vmem>>, vector<16x32xf32>,
    %231 = vector.extract_strided_slice %214 {offsets = [0, 0, 4, 0], sizes = [2, 8, 1, 32], strides = [1, 1, 1, 1]} : vector<2x8x8x32xf32> to vector<2x8x1x32xf32>
    %232 = vector.shape_cast %231 : vector<2x8x1x32xf32> to vector<2x8x32xf32>
    %233 = vector.shape_cast %232 : vector<2x8x32xf32> to vector<16x32xf32>
    %c0_74 = arith.constant 0 : index
    %c128 = arith.constant 128 : index
    %234 = vector.load %arg19[%c0_74, %c128] : memref<16x256xf32, #tpu.memory_space<vmem>>, vector<16x32xf32>
    tpu.vector_store %arg19[%c0_74, %c128], %233 {strides = array<i32>} : memref<16x256xf32, #tpu.memory_space<vmem>>, vector<16x32xf32>,
    %235 = vector.extract_strided_slice %214 {offsets = [0, 0, 5, 0], sizes = [2, 8, 1, 32], strides = [1, 1, 1, 1]} : vector<2x8x8x32xf32> to vector<2x8x1x32xf32>
    %236 = vector.shape_cast %235 : vector<2x8x1x32xf32> to vector<2x8x32xf32>
    %237 = vector.shape_cast %236 : vector<2x8x32xf32> to vector<16x32xf32>
    %c0_75 = arith.constant 0 : index
    %c160 = arith.constant 160 : index
    %238 = vector.load %arg19[%c0_75, %c160] : memref<16x256xf32, #tpu.memory_space<vmem>>, vector<16x32xf32>
    tpu.vector_store %arg19[%c0_75, %c160], %237 {strides = array<i32>} : memref<16x256xf32, #tpu.memory_space<vmem>>, vector<16x32xf32>,
    %239 = vector.extract_strided_slice %214 {offsets = [0, 0, 6, 0], sizes = [2, 8, 1, 32], strides = [1, 1, 1, 1]} : vector<2x8x8x32xf32> to vector<2x8x1x32xf32>
    %240 = vector.shape_cast %239 : vector<2x8x1x32xf32> to vector<2x8x32xf32>
    %241 = vector.shape_cast %240 : vector<2x8x32xf32> to vector<16x32xf32>
    %c0_76 = arith.constant 0 : index
    %c192 = arith.constant 192 : index
    %242 = vector.load %arg19[%c0_76, %c192] : memref<16x256xf32, #tpu.memory_space<vmem>>, vector<16x32xf32>
    tpu.vector_store %arg19[%c0_76, %c192], %241 {strides = array<i32>} : memref<16x256xf32, #tpu.memory_space<vmem>>, vector<16x32xf32>,
    %243 = vector.extract_strided_slice %214 {offsets = [0, 0, 7, 0], sizes = [2, 8, 1, 32], strides = [1, 1, 1, 1]} : vector<2x8x8x32xf32> to vector<2x8x1x32xf32>
    %244 = vector.shape_cast %243 : vector<2x8x1x32xf32> to vector<2x8x32xf32>
    %245 = vector.shape_cast %244 : vector<2x8x32xf32> to vector<16x32xf32>
    %c0_77 = arith.constant 0 : index
    %c224 = arith.constant 224 : index
    %246 = vector.load %arg19[%c0_77, %c224] : memref<16x256xf32, #tpu.memory_space<vmem>>, vector<16x32xf32>
    tpu.vector_store %arg19[%c0_77, %c224], %245 {strides = array<i32>} : memref<16x256xf32, #tpu.memory_space<vmem>>, vector<16x32xf32>,
    %c0_78 = arith.constant 0 : index
    %c0_79 = arith.constant 0 : index
    %247 = vector.load %arg20[%c0_78, %c0_79] : memref<16x32xf32, #tpu.memory_space<vmem>>, vector<16x32xf32>
    tpu.vector_store %arg20[%c0_78, %c0_79], %178 {strides = array<i32>} : memref<16x32xf32, #tpu.memory_space<vmem>>, vector<16x32xf32>,
    return
  }
  func.func @transform_0(%arg0: i32) -> (i32, i32) {
    %c0_i32 = arith.constant 0 : i32
    %c0_i32_0 = arith.constant 0 : i32
    return %arg0, %c0_i32 : i32, i32
  }
  func.func @transform_1(%arg0: i32) -> (i32, i32) {
    %c0_i32 = arith.constant 0 : i32
    %c0_i32_0 = arith.constant 0 : i32
    return %arg0, %c0_i32 : i32, i32
  }
  func.func @transform_2(%arg0: i32) -> (i32, i32) {
    %c0_i32 = arith.constant 0 : i32
    %c0_i32_0 = arith.constant 0 : i32
    return %arg0, %c0_i32 : i32, i32
  }
  func.func @transform_3(%arg0: i32) -> (i32, i32, i32, i32) {
    %c0_i32 = arith.constant 0 : i32
    %c0_i32_0 = arith.constant 0 : i32
    %c0_i32_1 = arith.constant 0 : i32
    %c0_i32_2 = arith.constant 0 : i32
    return %arg0, %c0_i32, %c0_i32_0, %c0_i32_1 : i32, i32, i32, i32
  }
  func.func @transform_4(%arg0: i32) -> (i32, i32) {
    %c0_i32 = arith.constant 0 : i32
    %c0_i32_0 = arith.constant 0 : i32
    %c0_i32_1 = arith.constant 0 : i32
    return %c0_i32, %c0_i32_0 : i32, i32
  }
  func.func @transform_5(%arg0: i32) -> (i32, i32) {
    %c0_i32 = arith.constant 0 : i32
    %c0_i32_0 = arith.constant 0 : i32
    %c0_i32_1 = arith.constant 0 : i32
    return %c0_i32, %c0_i32_0 : i32, i32
  }
  func.func @transform_6(%arg0: i32) -> (i32, i32) {
    %c0_i32 = arith.constant 0 : i32
    %c0_i32_0 = arith.constant 0 : i32
    %c0_i32_1 = arith.constant 0 : i32
    return %c0_i32, %c0_i32_0 : i32, i32
  }
  func.func @transform_7(%arg0: i32) -> (i32, i32) {
    %c0_i32 = arith.constant 0 : i32
    %c0_i32_0 = arith.constant 0 : i32
    %c0_i32_1 = arith.constant 0 : i32
    return %c0_i32, %c0_i32_0 : i32, i32
  }
  func.func @transform_8(%arg0: i32) -> (i32, i32) {
    %c0_i32 = arith.constant 0 : i32
    %c0_i32_0 = arith.constant 0 : i32
    %c0_i32_1 = arith.constant 0 : i32
    return %c0_i32, %c0_i32_0 : i32, i32
  }
  func.func @transform_9(%arg0: i32) -> (i32, i32) {
    %c0_i32 = arith.constant 0 : i32
    %c0_i32_0 = arith.constant 0 : i32
    %c0_i32_1 = arith.constant 0 : i32
    return %c0_i32, %c0_i32_0 : i32, i32
  }
  func.func @transform_10(%arg0: i32) -> (i32, i32) {
    %c0_i32 = arith.constant 0 : i32
    %c0_i32_0 = arith.constant 0 : i32
    %c0_i32_1 = arith.constant 0 : i32
    return %c0_i32, %c0_i32_0 : i32, i32
  }
  func.func @transform_11(%arg0: i32) -> (i32, i32) {
    %c0_i32 = arith.constant 0 : i32
    %c0_i32_0 = arith.constant 0 : i32
    %c0_i32_1 = arith.constant 0 : i32
    return %c0_i32, %c0_i32_0 : i32, i32
  }
  func.func @transform_12(%arg0: i32) -> (i32, i32) {
    %c0_i32 = arith.constant 0 : i32
    %c0_i32_0 = arith.constant 0 : i32
    %c0_i32_1 = arith.constant 0 : i32
    return %c0_i32, %c0_i32_0 : i32, i32
  }
  func.func @transform_13(%arg0: i32) -> (i32, i32) {
    %c0_i32 = arith.constant 0 : i32
    %c0_i32_0 = arith.constant 0 : i32
    %c0_i32_1 = arith.constant 0 : i32
    return %c0_i32, %c0_i32_0 : i32, i32
  }
  func.func @transform_14(%arg0: i32) -> (i32, i32) {
    %c0_i32 = arith.constant 0 : i32
    %c0_i32_0 = arith.constant 0 : i32
    %c0_i32_1 = arith.constant 0 : i32
    return %c0_i32, %c0_i32_0 : i32, i32
  }
  func.func @transform_15(%arg0: i32) -> (i32, i32) {
    %c0_i32 = arith.constant 0 : i32
    %c0_i32_0 = arith.constant 0 : i32
    %c0_i32_1 = arith.constant 0 : i32
    return %c0_i32, %c0_i32_0 : i32, i32
  }
  func.func @transform_16(%arg0: i32) -> (i32, i32) {
    %c0_i32 = arith.constant 0 : i32
    %c0_i32_0 = arith.constant 0 : i32
    %c0_i32_1 = arith.constant 0 : i32
    return %c0_i32, %c0_i32_0 : i32, i32
  }
  func.func @transform_17(%arg0: i32) -> (i32, i32) {
    %c0_i32 = arith.constant 0 : i32
    %c0_i32_0 = arith.constant 0 : i32
    %c0_i32_1 = arith.constant 0 : i32
    return %c0_i32, %c0_i32_0 : i32, i32
  }
  func.func @transform_18(%arg0: i32) -> (i32, i32) {
    %c0_i32 = arith.constant 0 : i32
    %c0_i32_0 = arith.constant 0 : i32
    return %arg0, %c0_i32 : i32, i32
  }
  func.func @transform_19(%arg0: i32) -> (i32, i32) {
    %c0_i32 = arith.constant 0 : i32
    %c0_i32_0 = arith.constant 0 : i32
    return %arg0, %c0_i32 : i32, i32
  }
}

</mosaic_0001>

<bundles_post_ra>
// kernel: tpu_custom_call.1
= control target key start
LH: loop header
LB: loop body
LE: loop exit
PB: predicated region body
PF: predicated region fallthrough
CT: control target
= control target key end

     0   :  { %s7933_s0 = inlined_call_operand.vmem [shape: f32[16,32], index: 0, kind: input, shape index: {}]   ;;  %s7934_s1 = inlined_call_operand.vmem [shape: f32[128,32], index: 1, kind: input, shape index: {}]   ;;  %s7935_s2 = inlined_call_operand.vmem [shape: f32[16,1], index: 2, kind: input, shape index: {}]   ;;  %s7936_s3 = inlined_call_operand.vmem [shape: f32[2,8,8,1], index: 3, kind: input, shape index: {}]   ;;  %s7937_s4 = inlined_call_operand.vmem [shape: bf16[32,64], index: 4, kind: input, shape index: {}]   ;;  %s7938_s5 = inlined_call_operand.vmem [shape: bf16[32,64], index: 5, kind: input, shape index: {}]   ;;  %s7939_s6 = inlined_call_operand.vmem [shape: bf16[32,32], index: 6, kind: input, shape index: {}]   ;;  %s7940_s7 = inlined_call_operand.vmem [shape: bf16[32,32], index: 7, kind: input, shape index: {}]   ;;  %s7941_s8 = inlined_call_operand.vmem [shape: f32[1,64], index: 8, kind: input, shape index: {}]   ;;  %s7942_s9 = inlined_call_operand.vmem [shape: f32[1,32], index: 9, kind: input, shape index: {}]   ;;  %s7943_s10 = inlined_call_operand.vmem [shape: f32[1,32], index: 10, kind: input, shape index: {}]   ;;  %s7944_s11 = inlined_call_operand.vmem [shape: bf16[32,64], index: 11, kind: input, shape index: {}]   ;;  %s7945_s12 = inlined_call_operand.vmem [shape: bf16[32,64], index: 12, kind: input, shape index: {}]   ;;  %s7946_s13 = inlined_call_operand.vmem [shape: bf16[32,32], index: 13, kind: input, shape index: {}]   ;;  %s7947_s14 = inlined_call_operand.vmem [shape: bf16[32,32], index: 14, kind: input, shape index: {}]   ;;  %s7948_s15 = inlined_call_operand.vmem [shape: f32[1,64], index: 15, kind: input, shape index: {}]   ;;  %s7949_s16 = inlined_call_operand.vmem [shape: f32[1,32], index: 16, kind: input, shape index: {}]   ;;  %s7950_s17 = inlined_call_operand.vmem [shape: f32[1,32], index: 17, kind: input, shape index: {}]   ;;  %s7951_s18 = inlined_call_operand.hbm [shape: f32[16,256], index: 18, kind: output, shape index: {0}]   ;;  %s7952_s19 = inlined_call_operand.hbm [shape: f32[16,32], index: 19, kind: output, shape index: {1}]  }
   0x1   :  { %7990 = sst [smem:[#allocation27_spill]] %s7933_s0 }
   0x2   :  { %7991 = sst [smem:[#allocation28_spill]] %s7934_s1 }
   0x3   :  { %7992 = sst [smem:[#allocation29_spill]] %s7935_s2 }
   0x4   :  { %7993 = sst [smem:[#allocation30_spill]] %s7936_s3 }
   0x5   :  { %25 = vsyncpa [#allocation3], 0  ;;  %v5687_v0 = vld [vmem:[%s7938_s5] sm:$0xff]   ;;  %v7957_v1 = vmov 0.0   ;;  %v5700_v3 = vld [vmem:[%s7938_s5 + $0x8] sm:$0xff]   ;;  %vm5572_vm0 = vmmov 0  }
   0x6   :  { %4746 = vmatprep.subr.bf16.mxu0 %v7957_v1  ;;  %4754 = vmatprep.subr.bf16.mxu1 %v7957_v1  ;;  %v5694_v2 = vld [vmem:[%s7937_s4] sm:$0xff]   ;;  %v5709_v4 = vld [vmem:[%s7937_s4 + $0x8] sm:$0xff]   ;;  %s7994_s3 = sld [smem:[#allocation27_spill]]  ;;  %v5573_v8 = vmov 0   ;;  %vm151_vm1 = vcmask 261120  }
   0x7   :  { %4747 = vmatpush3.bf16.msra.mxu0 %v5687_v0  ;;  %4750 = vmatprep.mubr.msk.bf16.mxu0 %vm5572_vm0, %v7957_v1  ;;  %v5730_v9 = vld [vmem:[%s7939_s6] sm:$0xff]   ;;  %v5741_v11 = vld [vmem:[%s7939_s6 + $0x8] sm:$0xff]  }
   0x8   :  { %4755 = vmatpush3.bf16.msra.mxu1 %v5694_v2  ;;  %4748 = vmatprep.subr.bf16.mxu0 %v7957_v1  ;;  %v5149_v10 = vld [vmem:[%s7940_s7] sm:$0xff]   ;;  %v5151_v12 = vld [vmem:[%s7940_s7 + $0x8] sm:$0xff]  }
   0x9   :  { %4756 = vmatprep.subr.bf16.mxu1 %v7957_v1  ;;  %4758 = vmatprep.mubr.msk.bf16.mxu1 %vm5572_vm0, %v7957_v1 }
   0xa   :  { %5143 = vset.pattern.permute.xlu1 %v5573_v8  ;;  %5144 = vset.pattern.permute.xlu0 %v5573_v8 }
   0xb   :  { %4749 = vmatpush3.bf16.msra.mxu0 %v5700_v3 }
   0xc   :  { %v5717_v5 = vld [vmem:[%s7994_s3] sm:$0xff]  ;;  %v5722_v6 = vld [vmem:[%s7994_s3 + $0x8] sm:$0xff]  ;;  %4757 = vmatpush3.bf16.msra.mxu1 %v5709_v4  ;;  %4762 = vmatprep.subr.bf16.mxu0 %v7957_v1 }
   0xd   :  { %v138_v7 = vpack.c.bf16 %v5722_v6, %v5717_v5  ;;  %4770 = vmatprep.subr.bf16.mxu1 %v7957_v1 }
   0xf   :  { %4751 = vmatmul.mubr.msk.bf16.vlgmr.msra.gmra.mrb[0].mxu0 %vm151_vm1, %v138_v7  ;;  %4759 = vmatmul.mubr.bf16.vlgmr.msra.gmra.mrb[0].mxu1 %v5573_v8 }
  0x10   :  { %4763 = vmatpush3.bf16.msra.mxu0 %v5730_v9  ;;  %4771 = vmatpush3.bf16.msra.mxu1 %v5149_v10 }
  0x11   :  { %4764 = vmatprep.subr.bf16.mxu0 %v7957_v1  ;;  %4772 = vmatprep.subr.bf16.mxu1 %v7957_v1 }
  0x12   :  { %4774 = vmatprep.mubr.msk.bf16.mxu1 %vm5572_vm0, %v7957_v1  ;;  %4766 = vmatprep.mubr.msk.bf16.mxu0 %vm5572_vm0, %v7957_v1 }
  0x14   :  { %4765 = vmatpush3.bf16.msra.mxu0 %v5741_v11 }
  0x15   :  { %26 = vsyncpa [#allocation5], 0  ;;  %4773 = vmatpush3.bf16.msra.mxu1 %v5151_v12  ;;  %s7995_s24 = sld [smem:[#allocation29_spill]]  ;;  %v4413_v15 = vld [vmem:[%s7941_s8] ss:$0 sm:$0xff]  ;;  %v5154_v54 = vld [vmem:[%s7945_s12 + $0x8] sm:$0xff]  }
  0x16   :  { %v4419_v41 = vld [vmem:[%s7943_s10] ss:$0 sm:$0xff]  ;;  %s7996_s2 = sld [smem:[#allocation28_spill]]  ;;  %s5574_s22 = smov 32   ;;  %vm4085_vm2 = vcmask 1041409   ;;  %vm4088_vm3 = vcmask 1042434  }
  0x17   :  { %4767 = vmatmul.mubr.bf16.vlgmr.msra.gmra.mrb[4].mxu0 %v5573_v8  ;;  %v4416_v42 = vld [vmem:[%s7942_s9] ss:$0 sm:$0xff]  ;;  %s8001_s25 = sld [smem:[#allocation30_spill]]  ;;  %vm4091_vm4 = vcmask 1043459   ;;  %vm4094_vm5 = vcmask 1044484   ;;  %vm4097_vm6 = vcmask 1045509  }
  0x18   :  { %4775 = vmatmul.mubr.msk.bf16.vlgmr.msra.gmra.mrb[4].mxu1 %vm151_vm1, %v138_v7  ;;  %v5777_v53 = vld [vmem:[%s7945_s12] sm:$0xff]   ;;  %vm4100_vm7 = vcmask 1046534   ;;  %vm4103_vm8 = vcmask 1047559  }
  0x19   :  { %4778 = vmatprep.subr.bf16.mxu0 %v5777_v53  ;;  %v5155_v61 = vld [vmem:[%s7944_s11] sm:$0xff]  }
  0x1a   :  { %4779 = vmatpush3.bf16.msra.mxu0 %v5777_v53 }
  0x1b   :  { %v82_v13 = vld [vmem:[%s7995_s24] sm:$0xff]  ;;  %4780 = vmatprep.subr.bf16.mxu0 %v5154_v54 }
  0x1c   :  { %420 = vperm.xlu1 %5143, %v82_v13   ;;  %v5785_v55 = vld [vmem:[%s7996_s2] sm:$0xff]  ;;  %v5790_v56 = vld [vmem:[%s7996_s2 + $0x8] sm:$0xff]  ;;  %v5801_v58 = vld [vmem:[%s7996_s2 + $0x10] sm:$0xff] }
  0x1d   :  { %v5795_v57 = vpack.c.bf16 %v5790_v56, %v5785_v55  ;;  %v5806_v59 = vld [vmem:[%s7996_s2 + $0x18] sm:$0xff]  ;;  %v5820_v63 = vld [vmem:[%s7996_s2 + $0x20] sm:$0xff]  ;;  %v5825_v7 = vld [vmem:[%s7996_s2 + $0x28] sm:$0xff] }
  0x1e   :  { %v5831_v10 = vpack.c.bf16 %v5806_v59, %v5801_v58  ;;  %4781 = vmatpush3.bf16.msra.mxu0 %v5154_v54  ;;  %v5846_v13 = vld [vmem:[%s7996_s2 + $0x30] sm:$0xff] }
  0x1f   :  { %4782 = vmatprep.mubr.msk.bf16.mxu0 %vm151_vm1, %v5795_v57  ;;  %4798 = vmatprep.subr.bf16.mxu0 %v5155_v61 }
  0x21   :  { %4783 = vmatmul.mubr.msk.bf16.vlgmr.msra.gmra.mrb[8].mxu0 %vm151_vm1, %v5831_v10 }
  0x22   :  { %4799 = vmatpush3.bf16.msra.mxu0 %v5155_v61 }
  0xe2   :  { %v189_v14 = vpop.f32.mrb[0].mxu0  ;;  %v245_v16 = vpop.f32.mrb[0].mxu1 }
  0xe3   :  { %v4752_v17 = vpop.f32.mrb[1].mxu0  ;;  %v246_v18 = vadd.f32 %v245_v16, %v189_v14  ;;  %v4760_v19 = vpop.f32.mrb[1].mxu1  ;;  %v5851_v14 = vld [vmem:[%s7996_s2 + $0x38] sm:$0xff]  ;;  %v5867_v16 = vld [vmem:[%s7996_s2 + $0x40] sm:$0xff] }
  0xe4   :  { %v192_v20 = vpop.f32.mrb[2].mxu0  ;;  %v248_v21 = vpop.f32.mrb[2].mxu1  ;;  %v5872_v17 = vld [vmem:[%s7996_s2 + $0x48] sm:$0xff]  ;;  %v5881_v19 = vld [vmem:[%s7996_s2 + $0x50] sm:$0xff] }
  0xe5   :  { %v4753_v22 = vpop.f32.mrb[3].mxu0  ;;  %v258_v23 = vadd.f32 %v4413_v15, %v246_v18  ;;  %v249_v24 = vadd.f32 %v248_v21, %v192_v20  ;;  %v4761_v25 = vpop.f32.mrb[3].mxu1  ;;  %v5876_v18 = vpack.c.bf16 %v5872_v17, %v5867_v16  ;;  %v5886_v20 = vld [vmem:[%s7996_s2 + $0x58] sm:$0xff] }
  0xe6   :  { %v5890_v21 = vpack.c.bf16 %v5886_v20, %v5881_v19  ;;  %v5156_v22 = vld [vmem:[%s7944_s11 + $0x8] sm:$0xff]  }
  0xe7   :  { %v4414_v26 = vmul.f32 -1.442695, %v258_v23  ;;  %v259_v27 = vadd.f32 %v4413_v15, %v249_v24  ;;  %v5860_v15 = vpack.c.bf16 %v5851_v14, %v5846_v13  ;;  %v5902_v23 = vld [vmem:[%s7996_s2 + $0x60] sm:$0xff]  ;;  %v5907_v24 = vld [vmem:[%s7996_s2 + $0x68] sm:$0xff]  ;;  %4800 = vmatprep.subr.bf16.mxu0 %v5156_v22 }
  0xe8   :  { %v5911_v25 = vpack.c.bf16 %v5907_v24, %v5902_v23  ;;  %4801 = vmatpush3.bf16.msra.mxu0 %v5156_v22 }
  0xe9   :  { %5161 = vpow2.f32 %v4414_v26  ;;  %v4415_v28 = vmul.f32 -1.442695, %v259_v27  ;;  %v5157_v26 = vld [vmem:[%s7946_s13] sm:$0xff]   ;;  %v5919_v27 = vld [vmem:[%s7996_s2 + $0x70] sm:$0xff]  ;;  %4858 = vmatprep.subr.bf16.mxu0 %v7957_v1 }
  0xea   :  { %v324_v29 = vpop.f32.mrb[4].mxu0  ;;  %4818 = vmatprep.subr.bf16.mxu1 %v5157_v26 }
  0xeb   :  { %v383_v30 = vpop.f32.mrb[4].mxu1  ;;  %v4768_v31 = vpop.f32.mrb[5].mxu0  ;;  %5163 = vpow2.f32 %v4415_v28  ;;  %v325_v44 = vadd.f32 %v4416_v42, %v324_v29  ;;  %v5924_v28 = vld [vmem:[%s7996_s2 + $0x78] sm:$0xff]  ;;  %4819 = vmatpush3.bf16.msra.mxu1 %v5157_v26  ;;  %s5575_s2 = smov 96  }
  0xec   :  { %v4776_v32 = vpop.f32.mrb[5].mxu1  ;;  %v327_v33 = vpop.f32.mrb[6].mxu0  ;;  %v384_v43 = vadd.f32 %v4419_v41, %v383_v30  ;;  %v5928_v29 = vpack.c.bf16 %v5924_v28, %v5919_v27  ;;  %v5158_v30 = vld [vmem:[%s7946_s13 + $0x8] sm:$0xff]  }
  0xed   :  { %v386_v34 = vpop.f32.mrb[6].mxu1  ;;  %v4769_v35 = vpop.f32.mrb[7].mxu0  ;;  %v328_v51 = vadd.f32 %v4416_v42, %v327_v33  ;;  %4820 = vmatprep.subr.bf16.mxu1 %v5158_v30 }
  0xee   :  { %v4777_v36 = vpop.f32.mrb[7].mxu1  ;;  %v387_v47 = vadd.f32 %v4419_v41, %v386_v34  ;;  %v5159_v35 = vld [vmem:[%s7947_s14] sm:$0xff]  }
  0xef   :  { %4821 = vmatpush3.bf16.msra.mxu1 %v5158_v30  ;;  %v5576_v36 = vmov 1966171168  }
  0xf0   :  { %4838 = vmatprep.subr.bf16.mxu1 %v5159_v35 }
  0xf3   :  { %v5162_v37 = vpop.eup %5161 }
  0xf4   :  { %v266_v38 = vadd.f32 1.0, %v5162_v37  ;;  %v434_v37 = vunpack.c.l.s4 %v5576_v36 }
  0xf5   :  { %v5164_v39 = vpop.eup %5163 }
  0xf6   :  { %5165 = vrcp.f32 %v266_v38  ;;  %v267_v40 = vadd.f32 1.0, %v5164_v39  ;;  %v436_v38 = vlaneseq  ;;  %v5945_v39 = vpop.permute.xlu1 %420 }
  0xf7   :  { %7997 = vst [vmem:[#allocation8_spill] sm:$0xff] %v5945_v39 }
  0xf8   :  { %5167 = vrcp.f32 %v267_v40  ;;  %v435_v40 = vunpack.c.0.s8 %v434_v37  ;;  %v437_v41 = vshrl.u32 %v436_v38, 7 }
 0x100   :  { %v5768_v45 = vpop.eup %5165 }
 0x101   :  { %v390_v46 = vmul.f32 %v5768_v45, %v384_v43 }
 0x102   :  { %v5771_v48 = vpop.eup %5167 }
 0x103   :  { %v392_v49 = vadd.f32 %v390_v46, %v325_v44  ;;  %v391_v50 = vmul.f32 %v5771_v48, %v387_v47  ;;  %v5950_v44 = vsub.s32 %v435_v40, %v437_v41 }
 0x105   :  { %5169 = vtanh.f32 %v392_v49  ;;  %v393_v52 = vadd.f32 %v391_v50, %v328_v51  ;;  %7998 = vst [vmem:[#allocation9_spill] sm:$0xff] %v5950_v44  ;;  %v5960_v50 = vsub.s32 0, %v437_v41 }
 0x107   :  { %5171 = vtanh.f32 %v393_v52  ;;  %8000 = vst [vmem:[#allocation11_spill] sm:$0xff] %v5960_v50 }
 0x10f   :  { %v5808_v60 = vpop.eup %5169 }
 0x110   :  { %v396_v62 = vsub.f32 %v5717_v5, %v5808_v60  ;;  %v5836_v5 = vpack.c.bf16 %v5825_v7, %v5820_v63 }
 0x111   :  { %v5827_v8 = vpop.eup %5171 }
 0x112   :  { %400 = vrot.lane.b32.xlu0 %v396_v62, %s5574_s22  ;;  %v397_v12 = vsub.f32 %v5722_v6, %v5827_v8  ;;  %v83_v6 = vld [vmem:[%s7995_s24 + $0x8] sm:$0xff]  ;;  %4786 = vmatprep.mubr.msk.bf16.mxu0 %vm151_vm1, %v5836_v5 }
 0x113   :  { %4787 = vmatmul.mubr.msk.bf16.gmra.mrb[12].mxu0 %vm151_vm1, %v5860_v15 }
 0x114   :  { %4790 = vmatprep.mubr.msk.bf16.mxu0 %vm151_vm1, %v5876_v18 }
 0x116   :  { %402 = vrot.lane.b32.xlu0 %v397_v12, %s5574_s22 }
 0x11a   :  { %425 = vperm.xlu0 %5144, %v83_v6  }
 0x11b   :  { %4791 = vmatmul.mubr.msk.bf16.gmra.mrb[16].mxu0 %vm151_vm1, %v5890_v21 }
 0x11c   :  { %4794 = vmatprep.mubr.msk.bf16.mxu0 %vm151_vm1, %v5911_v25 }
 0x123   :  { %4795 = vmatmul.mubr.msk.bf16.gmra.mrb[20].mxu0 %vm151_vm1, %v5928_v29 }
 0x184   :  { %v401_v31 = vpop.permute.xlu0 %400 }
 0x185   :  { %v406_v32 = vmul.f32 %v5768_v45, %v401_v31 }
 0x187   :  { %410 = vrot.lane.b32.xlu1 %v406_v32, %s5575_s2 }
 0x188   :  { %v403_v33 = vpop.permute.xlu0 %402 }
 0x189   :  { %v407_v34 = vmul.f32 %v5771_v48, %v403_v33 }
 0x18b   :  { %412 = vrot.lane.b32.xlu1 %v407_v34, %s5575_s2 }
 0x199   :  { %v5954_v47 = vpop.permute.xlu0 %425 }
 0x19a   :  { %7999 = vst [vmem:[#allocation10_spill] sm:$0xff] %v5954_v47 }
 0x1f9   :  { %v411_v42 = vpop.permute.xlu1 %410 }
 0x1fa   :  { %v5948_v43 = vadd.f32 %v5808_v60, %v411_v42 }
 0x1fc   :  { %v428_v45 = vmul.f32 %v5945_v39, %v5948_v43 }
 0x1fd   :  { %v413_v46 = vpop.permute.xlu1 %412 }
 0x1fe   :  { %v5957_v48 = vadd.f32 %v5827_v8, %v413_v46  ;;  %v439_v49 = vrot.slane %v428_v45, %v5950_v44  ;;  %v432_v51 = vcombine.high %v428_v45, %v428_v45 }
 0x200   :  { %v5964_v52 = vmul.f32 %v5954_v47, %v5957_v48  ;;  %v447_v54 = vcombine.high %v439_v49, %v439_v49  ;;  %v455_v60 = vrot.slane %v439_v49, %v5950_v44  ;;  %v446_v61 = vrot.slane %v432_v51, %v5950_v44 }
 0x202   :  { %v469_v62 = vrot.slane %v447_v54, %v5950_v44  ;;  %v477_v12 = vcombine.high %v455_v60, %v455_v60  ;;  %v533_v8 = vrot.slane %v455_v60, %v5960_v50  ;;  %v488_v6 = vrot.slane %v5964_v52, %v5950_v44 }
 0x203   :  { %v448_v22 = vcombine.high %v446_v61, %v446_v61  ;;  %v462_v26 = vrot.slane %v446_v61, %v5950_v44  ;;  %v481_v49 = vcombine.high %v5964_v52, %v5964_v52 }
 0x204   :  { %v479_v30 = vcombine.high %v469_v62, %v469_v62  ;;  %v537_v31 = vrot.slane %v469_v62, %v5960_v50  ;;  %v541_v32 = vrot.slane %v477_v12, %v5960_v50  ;;  %v496_v36 = vcombine.high %v488_v6, %v488_v6 }
 0x205   :  { %v476_v33 = vrot.slane %v448_v22, %v5950_v44  ;;  %v549_v34 = vrot.slane %v462_v26, %v5960_v50  ;;  %v610_v38 = vmul.f32 %v533_v8, %v428_v45  ;;  %v478_v42 = vcombine.high %v462_v26, %v462_v26 }
 0x206   :  { %v545_v37 = vrot.slane %v479_v30, %v5960_v50  ;;  %v611_v40 = vmul.f32 %v537_v31, %v428_v45  ;;  %v612_v54 = vmul.f32 %v541_v32, %v428_v45  ;;  %v518_v61 = vrot.slane %v496_v36, %v5950_v44  ;;  %v5160_v30 = vld [vmem:[%s7947_s14 + $0x8] sm:$0xff]  }
 0x207   :  { %v553_v41 = vrot.slane %v476_v33, %v5960_v50  ;;  %v480_v46 = vcombine.high %v476_v33, %v476_v33  ;;  %v614_v62 = vmul.f32 %v549_v34, %v428_v45  ;;  %v504_v22 = vrot.slane %v488_v6, %v5950_v44 }
 0x208   :  { %v626_v51 = vpack.c.bf16 %v611_v40, %v610_v38  ;;  %v613_v60 = vmul.f32 %v545_v37, %v428_v45  ;;  %v569_v32 = vrot.slane %v518_v61, %v5960_v50  ;;  %v557_v6 = vrot.slane %v478_v42, %v5960_v50 }
 0x209   :  { %v615_v12 = vmul.f32 %v553_v41, %v428_v45  ;;  %v561_v26 = vrot.slane %v480_v46, %v5960_v50  ;;  %v495_v33 = vrot.slane %v481_v49, %v5950_v44  ;;  %v565_v34 = vrot.slane %v504_v22, %v5960_v50 }
 0x20a   :  { %4802 = vmatprep.mubr.msk.bf16.mxu0 %vm151_vm1, %v626_v51  ;;  %4822 = vmatprep.mubr.msk.bf16.mxu1 %vm151_vm1, %v626_v51  ;;  %v627_v8 = vpack.c.bf16 %v613_v60, %v612_v54  ;;  %v528_v37 = vcombine.high %v518_v61, %v518_v61  ;;  %v619_v40 = vmul.f32 %v569_v32, %v5964_v52 }
 0x20b   :  { %v628_v31 = vpack.c.bf16 %v615_v12, %v614_v62  ;;  %v617_v36 = vmul.f32 %v561_v26, %v428_v45  ;;  %v497_v38 = vcombine.high %v495_v33, %v495_v33  ;;  %v616_v41 = vmul.f32 %v557_v6, %v428_v45 }
 0x20c   :  { %4803 = vmatmul.mubr.msk.bf16.vlgmr.msra.gmra.mrb[8].mxu0 %vm151_vm1, %v627_v8  ;;  %4823 = vmatmul.mubr.msk.bf16.vlgmr.msra.gmra.mrb[8].mxu1 %vm151_vm1, %v627_v8  ;;  %v526_v46 = vcombine.high %v504_v22, %v504_v22  ;;  %v511_v49 = vrot.slane %v495_v33, %v5950_v44  ;;  %v577_v54 = vrot.slane %v528_v37, %v5960_v50 }
 0x20d   :  { %4839 = vmatpush3.bf16.msra.mxu1 %v5159_v35  ;;  %4806 = vmatprep.mubr.msk.bf16.mxu0 %vm151_vm1, %v628_v31  ;;  %v525_v42 = vrot.slane %v497_v38, %v5950_v44  ;;  %v618_v35 = vmul.f32 %v565_v34, %v5964_v52  ;;  %v629_v51 = vpack.c.bf16 %v617_v36, %v616_v41 }
 0x20e   :  { %4826 = vmatprep.mubr.msk.bf16.mxu1 %vm151_vm1, %v628_v31  ;;  %4840 = vmatprep.subr.bf16.mxu1 %v5160_v30  ;;  %v581_v45 = vrot.slane %v511_v49, %v5960_v50  ;;  %v621_v62 = vmul.f32 %v577_v54, %v5964_v52  ;;  %v527_v8 = vcombine.high %v511_v49, %v511_v49 }
 0x20f   :  { %4859 = vmatpush3.bf16.msra.mxu0 %v5687_v0  ;;  %v630_v60 = vpack.c.bf16 %v619_v40, %v618_v35  ;;  %v585_v61 = vrot.slane %v525_v42, %v5960_v50  ;;  %v573_v0 = vrot.slane %v526_v46, %v5960_v50  ;;  %v529_v12 = vcombine.high %v525_v42, %v525_v42 }
 0x210   :  { %4860 = vmatprep.subr.bf16.mxu0 %v7957_v1  ;;  %v622_v26 = vmul.f32 %v581_v45, %v5964_v52  ;;  %v589_v6 = vrot.slane %v527_v8, %v5960_v50  ;;  %v6034_v37 = vpack.c.bf16 %v5957_v48, %v5948_v43 }
 0x211   :  { %4841 = vmatpush3.bf16.msra.mxu1 %v5160_v30  ;;  %v623_v22 = vmul.f32 %v585_v61, %v5964_v52  ;;  %v593_v31 = vrot.slane %v529_v12, %v5960_v50 }
 0x212   :  { %4866 = vmatprep.subr.bf16.mxu1 %v7957_v1  ;;  %v624_v34 = vmul.f32 %v589_v6, %v5964_v52 }
 0x213   :  { %4861 = vmatpush3.bf16.msra.mxu0 %v5700_v3  ;;  %v620_v3 = vmul.f32 %v573_v0, %v5964_v52  ;;  %v632_v32 = vpack.c.bf16 %v623_v22, %v622_v26  ;;  %v625_v33 = vmul.f32 %v593_v31, %v5964_v52 }
 0x214   :  { %4807 = vmatmul.mubr.msk.bf16.gmra.mrb[12].mxu0 %vm151_vm1, %v629_v51  ;;  %4827 = vmatmul.mubr.msk.bf16.gmra.mrb[12].mxu1 %vm151_vm1, %v629_v51 }
 0x215   :  { %4810 = vmatprep.mubr.msk.bf16.mxu0 %vm151_vm1, %v630_v60  ;;  %4830 = vmatprep.mubr.msk.bf16.mxu1 %vm151_vm1, %v630_v60  ;;  %v631_v30 = vpack.c.bf16 %v621_v62, %v620_v3  ;;  %v633_v36 = vpack.c.bf16 %v625_v33, %v624_v34 }
 0x216   :  { %4874 = vmatprep.subr.bf16.mxu0 %v7957_v1 }
 0x21c   :  { %4811 = vmatmul.mubr.msk.bf16.gmra.mrb[16].mxu0 %vm151_vm1, %v631_v30  ;;  %4831 = vmatmul.mubr.msk.bf16.gmra.mrb[16].mxu1 %vm151_vm1, %v631_v30 }
 0x21d   :  { %4814 = vmatprep.mubr.msk.bf16.mxu0 %vm151_vm1, %v632_v32  ;;  %4834 = vmatprep.mubr.msk.bf16.mxu1 %vm151_vm1, %v632_v32 }
 0x224   :  { %4815 = vmatmul.mubr.msk.bf16.gmra.mrb[20].mxu0 %vm151_vm1, %v633_v36  ;;  %4835 = vmatmul.mubr.msk.bf16.gmra.mrb[20].mxu1 %vm151_vm1, %v633_v36 }
 0x225   :  { %4842 = vmatprep.mubr.msk.bf16.mxu1 %vm151_vm1, %v5795_v57  ;;  %4862 = vmatprep.mubr.msk.bf16.mxu0 %vm5572_vm0, %v7957_v1 }
 0x22c   :  { %4843 = vmatmul.mubr.msk.bf16.vlgmr.msra.gmra.mrb[24].mxu1 %vm151_vm1, %v5831_v10  ;;  %4863 = vmatmul.mubr.msk.bf16.vlgmr.msra.gmra.mrb[24].mxu0 %vm151_vm1, %v6034_v37 }
 0x22d   :  { %4846 = vmatprep.mubr.msk.bf16.mxu1 %vm151_vm1, %v5836_v5  ;;  %4867 = vmatpush3.bf16.msra.mxu1 %v5694_v2  ;;  %v6067_v2 = vld [vmem:[%s7948_s15] ss:$0 sm:$0xff] }
 0x22e   :  { %4868 = vmatprep.subr.bf16.mxu1 %v7957_v1  ;;  %4875 = vmatpush3.bf16.msra.mxu0 %v5730_v9 }
 0x22f   :  { %4876 = vmatprep.subr.bf16.mxu0 %v7957_v1  ;;  %4878 = vmatprep.mubr.msk.bf16.mxu0 %vm5572_vm0, %v7957_v1 }
 0x231   :  { %4869 = vmatpush3.bf16.msra.mxu1 %v5709_v4 }
 0x232   :  { %4877 = vmatpush3.bf16.msra.mxu0 %v5741_v11  ;;  %4882 = vmatprep.subr.bf16.mxu1 %v7957_v1 }
 0x233   :  { %4890 = vmatprep.subr.bf16.mxu0 %v5777_v53 }
 0x234   :  { %4847 = vmatmul.mubr.msk.bf16.gmra.mrb[28].mxu1 %vm151_vm1, %v5860_v15 }
 0x235   :  { %4850 = vmatprep.mubr.msk.bf16.mxu1 %vm151_vm1, %v5876_v18 }
 0x23c   :  { %4851 = vmatmul.mubr.msk.bf16.gmra.mrb[32].mxu1 %vm151_vm1, %v5890_v21 }
 0x23d   :  { %4854 = vmatprep.mubr.msk.bf16.mxu1 %vm151_vm1, %v5911_v25 }
 0x244   :  { %4855 = vmatmul.mubr.msk.bf16.gmra.mrb[36].mxu1 %vm151_vm1, %v5928_v29 }
 0x245   :  { %4870 = vmatprep.mubr.msk.bf16.mxu1 %vm5572_vm0, %v7957_v1 }
 0x2df   :  { %v4804_v4 = vpop.f32.mrb[8].mxu0  ;;  %v6069_v9 = vpop.f32.mrb[8].mxu1 }
 0x2e0   :  { %v916_v11 = vadd.f32 %v4804_v4, %v6067_v2  ;;  %v845_v53 = vpop.f32.mrb[9].mxu0  ;;  %v6072_v57 = vpop.f32.mrb[9].mxu1 }
 0x2e1   :  { %v914_v10 = vadd.f32 %v6067_v2, %v845_v53  ;;  %v4805_v5 = vpop.f32.mrb[10].mxu0  ;;  %v6075_v15 = vpop.f32.mrb[10].mxu1 }
 0x2e2   :  { %v4446_v18 = vmul.f32 -1.442695, %v916_v11  ;;  %v917_v21 = vadd.f32 %v4805_v5, %v6067_v2  ;;  %v848_v25 = vpop.f32.mrb[11].mxu0  ;;  %v6078_v29 = vpop.f32.mrb[11].mxu1 }
 0x2e3   :  { %v4444_v52 = vmul.f32 -1.442695, %v914_v10  ;;  %v915_v38 = vadd.f32 %v6067_v2, %v848_v25 }
 0x2e4   :  { %5173 = vpow2.f32 %v4446_v18  ;;  %v4447_v40 = vmul.f32 -1.442695, %v917_v21 }
 0x2e5   :  { %5175 = vpow2.f32 %v4444_v52  ;;  %v4445_v41 = vmul.f32 -1.442695, %v915_v38 }
 0x2e6   :  { %5177 = vpow2.f32 %v4447_v40 }
 0x2e7   :  { %v4808_v46 = vpop.f32.mrb[12].mxu0  ;;  %v6081_v42 = vpop.f32.mrb[12].mxu1  ;;  %5179 = vpow2.f32 %v4445_v41 }
 0x2e8   :  { %v920_v35 = vadd.f32 %v4808_v46, %v6067_v2  ;;  %v861_v49 = vpop.f32.mrb[13].mxu0  ;;  %v6084_v51 = vpop.f32.mrb[13].mxu1 }
 0x2e9   :  { %v918_v54 = vadd.f32 %v6067_v2, %v861_v49  ;;  %v4809_v60 = vpop.f32.mrb[14].mxu0  ;;  %v6087_v61 = vpop.f32.mrb[14].mxu1 }
 0x2ea   :  { %v4450_v0 = vmul.f32 -1.442695, %v920_v35  ;;  %v921_v45 = vadd.f32 %v4809_v60, %v6067_v2  ;;  %v864_v62 = vpop.f32.mrb[15].mxu0  ;;  %v6090_v12 = vpop.f32.mrb[15].mxu1 }
 0x2eb   :  { %v4448_v22 = vmul.f32 -1.442695, %v918_v54  ;;  %v919_v3 = vadd.f32 %v6067_v2, %v864_v62 }
 0x2ec   :  { %5181 = vpow2.f32 %v4450_v0  ;;  %v4451_v8 = vmul.f32 -1.442695, %v921_v45 }
 0x2ed   :  { %5183 = vpow2.f32 %v4448_v22  ;;  %v4449_v26 = vmul.f32 -1.442695, %v919_v3 }
 0x2ee   :  { %v5174_v30 = vpop.eup %5173  ;;  %5185 = vpow2.f32 %v4451_v8 }
 0x2ef   :  { %v5176_v31 = vpop.eup %5175  ;;  %v980_v32 = vadd.f32 1.0, %v5174_v30  ;;  %v4812_v6 = vpop.f32.mrb[16].mxu0  ;;  %5187 = vpow2.f32 %v4449_v26 }
 0x2f0   :  { %v6093_v33 = vpop.f32.mrb[16].mxu1  ;;  %v978_v34 = vadd.f32 1.0, %v5176_v31  ;;  %v924_v36 = vadd.f32 %v4812_v6, %v6067_v2  ;;  %v877_v4 = vpop.f32.mrb[17].mxu0 }
 0x2f1   :  { %v6096_v11 = vpop.f32.mrb[17].mxu1  ;;  %v922_v53 = vadd.f32 %v6067_v2, %v877_v4  ;;  %v4813_v10 = vpop.f32.mrb[18].mxu0  ;;  %5189 = vrcp.f32 %v980_v32 }
 0x2f2   :  { %v6099_v5 = vpop.f32.mrb[18].mxu1  ;;  %v5178_v18 = vpop.eup %5177  ;;  %v4454_v21 = vmul.f32 -1.442695, %v924_v36  ;;  %v925_v25 = vadd.f32 %v4813_v10, %v6067_v2  ;;  %5191 = vrcp.f32 %v978_v34 }
 0x2f3   :  { %v880_v52 = vpop.f32.mrb[19].mxu0  ;;  %v6102_v38 = vpop.f32.mrb[19].mxu1  ;;  %v4452_v41 = vmul.f32 -1.442695, %v922_v53  ;;  %v981_v49 = vadd.f32 1.0, %v5178_v18 }
 0x2f4   :  { %v5180_v40 = vpop.eup %5179  ;;  %v923_v46 = vadd.f32 %v6067_v2, %v880_v52  ;;  %v4455_v35 = vmul.f32 -1.442695, %v925_v25  ;;  %5193 = vpow2.f32 %v4454_v21 }
 0x2f5   :  { %v979_v0 = vadd.f32 1.0, %v5180_v40  ;;  %5195 = vpow2.f32 %v4452_v41  ;;  %v6120_v40 = vld [vmem:[%s7949_s16] ss:$0 sm:$0xff] }
 0x2f6   :  { %v4453_v54 = vmul.f32 -1.442695, %v923_v46  ;;  %v5182_v60 = vpop.eup %5181  ;;  %5197 = vpow2.f32 %v4455_v35 }
 0x2f7   :  { %v5184_v45 = vpop.eup %5183  ;;  %v984_v62 = vadd.f32 1.0, %v5182_v60  ;;  %v4816_v22 = vpop.f32.mrb[20].mxu0 }
 0x2f8   :  { %v6105_v3 = vpop.f32.mrb[20].mxu1  ;;  %v982_v8 = vadd.f32 1.0, %v5184_v45  ;;  %5199 = vpow2.f32 %v4453_v54  ;;  %v928_v26 = vadd.f32 %v4816_v22, %v6067_v2  ;;  %v893_v30 = vpop.f32.mrb[21].mxu0  ;;  %v6127_v54 = vld [vmem:[%s7950_s17] ss:$0 sm:$0xff] }
 0x2f9   :  { %v6108_v31 = vpop.f32.mrb[21].mxu1  ;;  %5201 = vrcp.f32 %v981_v49  ;;  %v926_v32 = vadd.f32 %v6067_v2, %v893_v30  ;;  %v4817_v6 = vpop.f32.mrb[22].mxu0 }
 0x2fa   :  { %v6111_v34 = vpop.f32.mrb[22].mxu1  ;;  %v5186_v36 = vpop.eup %5185  ;;  %5203 = vrcp.f32 %v979_v0  ;;  %v4458_v4 = vmul.f32 -1.442695, %v928_v26  ;;  %v929_v53 = vadd.f32 %v4817_v6, %v6067_v2 }
 0x2fb   :  { %v896_v10 = vpop.f32.mrb[23].mxu0  ;;  %v6114_v18 = vpop.f32.mrb[23].mxu1  ;;  %5205 = vrcp.f32 %v984_v62  ;;  %v4456_v25 = vmul.f32 -1.442695, %v926_v32  ;;  %v985_v35 = vadd.f32 1.0, %v5186_v36 }
 0x2fc   :  { %v5188_v21 = vpop.eup %5187  ;;  %v927_v52 = vadd.f32 %v6067_v2, %v896_v10  ;;  %5207 = vrcp.f32 %v982_v8  ;;  %v4459_v41 = vmul.f32 -1.442695, %v929_v53  ;;  %v1087_v8 = vadd.f32 %v6069_v9, %v6120_v40 }
 0x2fd   :  { %v6122_v46 = vpop.eup %5189  ;;  %5209 = vpow2.f32 %v4458_v4  ;;  %v983_v2 = vadd.f32 1.0, %v5188_v21  ;;  %v1079_v4 = vadd.f32 %v6120_v40, %v6072_v57  ;;  %v1090_v57 = vadd.f32 %v6075_v15, %v6120_v40 }
 0x2fe   :  { %v4457_v49 = vmul.f32 -1.442695, %v927_v52  ;;  %v6129_v60 = vpop.eup %5191  ;;  %5211 = vpow2.f32 %v4456_v25 }
 0x2ff   :  { %v5194_v0 = vpop.eup %5193  ;;  %5213 = vpow2.f32 %v4459_v41  ;;  %v4844_v45 = vpop.f32.mrb[24].mxu1 }
 0x300   :  { %v6131_v62 = vpop.f32.mrb[24].mxu0  ;;  %v5196_v22 = vpop.eup %5195  ;;  %v988_v26 = vadd.f32 1.0, %v5194_v0  ;;  %5215 = vpow2.f32 %v4457_v49  ;;  %v1202_v30 = vadd.f32 %v4844_v45, %v6127_v54 }
 0x301   :  { %v1193_v32 = vpop.f32.mrb[25].mxu1  ;;  %v4864_v6 = vpop.f32.mrb[25].mxu0  ;;  %5217 = vrcp.f32 %v985_v35  ;;  %v986_v53 = vadd.f32 1.0, %v5196_v22 }
 0x302   :  { %v5198_v36 = vpop.eup %5197  ;;  %v1194_v10 = vadd.f32 %v6127_v54, %v1193_v32  ;;  %v4845_v21 = vpop.f32.mrb[26].mxu1  ;;  %5219 = vrcp.f32 %v983_v2  ;;  %v1258_v41 = vmul.f32 %v6122_v46, %v1202_v30  ;;  %v1082_v2 = vadd.f32 %v6120_v40, %v6078_v29 }
 0x303   :  { %v6139_v25 = vpop.f32.mrb[26].mxu0  ;;  %v5200_v52 = vpop.eup %5199  ;;  %v989_v9 = vadd.f32 1.0, %v5198_v36  ;;  %v1205_v49 = vadd.f32 %v4845_v21, %v6127_v54  ;;  %5221 = vrcp.f32 %v988_v26 }
 0x304   :  { %v1196_v0 = vpop.f32.mrb[27].mxu1  ;;  %v4865_v45 = vpop.f32.mrb[27].mxu0  ;;  %v1256_v35 = vmul.f32 %v6129_v60, %v1194_v10  ;;  %5223 = vrcp.f32 %v986_v53  ;;  %v1274_v30 = vadd.f32 %v1258_v41, %v1087_v8  ;;  %v1103_v8 = vadd.f32 %v6081_v42, %v6120_v40 }
 0x305   :  { %v6143_v6 = vpop.eup %5201  ;;  %v1197_v22 = vadd.f32 %v6127_v54, %v1196_v0  ;;  %5225 = vrcp.f32 %v989_v9  ;;  %v987_v45 = vadd.f32 1.0, %v5200_v52  ;;  %v1095_v41 = vadd.f32 %v6120_v40, %v6084_v51 }
 0x306   :  { %v6149_v32 = vpop.eup %5203  ;;  %v1259_v36 = vmul.f32 %v6143_v6, %v1205_v49  ;;  %v1272_v1 = vadd.f32 %v1256_v35, %v1079_v4  ;;  %5227 = vtanh.f32 %v1274_v30 }
 0x307   :  { %v6154_v21 = vpop.eup %5205  ;;  %v1257_v15 = vmul.f32 %v6149_v32, %v1197_v22  ;;  %v4848_v44 = vpop.f32.mrb[28].mxu1 }
 0x308   :  { %v6157_v26 = vpop.eup %5207  ;;  %v1275_v10 = vadd.f32 %v1259_v36, %v1090_v57  ;;  %5229 = vtanh.f32 %v1272_v1  ;;  %v1218_v9 = vadd.f32 %v4848_v44, %v6127_v54  ;;  %v1209_v52 = vpop.f32.mrb[29].mxu1  ;;  %v1106_v44 = vadd.f32 %v6087_v61, %v6120_v40 }
 0x309   :  { %v5210_v0 = vpop.eup %5209  ;;  %v1273_v50 = vadd.f32 %v1257_v15, %v1082_v2  ;;  %v1210_v57 = vadd.f32 %v6127_v54, %v1209_v52  ;;  %v4849_v1 = vpop.f32.mrb[30].mxu1 }
 0x30a   :  { %v5212_v29 = vpop.eup %5211  ;;  %v992_v53 = vadd.f32 1.0, %v5210_v0  ;;  %5231 = vtanh.f32 %v1275_v10  ;;  %v1262_v2 = vmul.f32 %v6154_v21, %v1218_v9  ;;  %v1221_v42 = vadd.f32 %v4849_v1, %v6127_v54  ;;  %v1212_v30 = vpop.f32.mrb[31].mxu1 }
 0x30b   :  { %v5214_v4 = vpop.eup %5213  ;;  %5233 = vrcp.f32 %v987_v45  ;;  %v990_v49 = vadd.f32 1.0, %v5212_v29  ;;  %v1260_v51 = vmul.f32 %v6157_v26, %v1210_v57  ;;  %v1213_v45 = vadd.f32 %v6127_v54, %v1212_v30 }
 0x30c   :  { %v5216_v35 = vpop.eup %5215  ;;  %v993_v22 = vadd.f32 1.0, %v5214_v4  ;;  %5235 = vtanh.f32 %v1273_v50  ;;  %v1098_v50 = vadd.f32 %v6120_v40, %v6090_v12  ;;  %v1278_v10 = vadd.f32 %v1262_v2, %v1103_v8 }
 0x30d   :  { %v6167_v36 = vpop.eup %5217  ;;  %5237 = vrcp.f32 %v992_v53  ;;  %v991_v9 = vadd.f32 1.0, %v5216_v35  ;;  %v1276_v52 = vadd.f32 %v1260_v51, %v1095_v41 }
 0x30e   :  { %v6173_v15 = vpop.eup %5219  ;;  %5239 = vrcp.f32 %v990_v49  ;;  %v1263_v0 = vmul.f32 %v6167_v36, %v1221_v42 }
 0x30f   :  { %v6178_v29 = vpop.eup %5221  ;;  %5241 = vrcp.f32 %v993_v22  ;;  %v1261_v61 = vmul.f32 %v6173_v15, %v1213_v45  ;;  %v4852_v12 = vpop.f32.mrb[32].mxu1 }
 0x310   :  { %v6181_v53 = vpop.eup %5223  ;;  %5243 = vtanh.f32 %v1278_v10  ;;  %v1279_v4 = vadd.f32 %v1263_v0, %v1106_v44  ;;  %v1234_v8 = vadd.f32 %v4852_v12, %v6127_v54  ;;  %v1225_v2 = vpop.f32.mrb[33].mxu1  ;;  %v1119_v44 = vadd.f32 %v6093_v33, %v6120_v40 }
 0x311   :  { %v6183_v57 = vpop.eup %5225  ;;  %5245 = vtanh.f32 %v1276_v52  ;;  %v1277_v1 = vadd.f32 %v1261_v61, %v1098_v50  ;;  %v1226_v41 = vadd.f32 %v6127_v54, %v1225_v2  ;;  %v4853_v35 = vpop.f32.mrb[34].mxu1  ;;  %v1111_v0 = vadd.f32 %v6120_v40, %v6096_v11 }
 0x312   :  { %v6185_v49 = vpop.eup %5227  ;;  %5247 = vtanh.f32 %v1279_v4  ;;  %v1266_v51 = vmul.f32 %v6178_v29, %v1234_v8  ;;  %v1237_v45 = vadd.f32 %v4853_v35, %v6127_v54  ;;  %v1228_v50 = vpop.f32.mrb[35].mxu1  ;;  %v1122_v61 = vadd.f32 %v6099_v5, %v6120_v40 }
 0x313   :  { %v6188_v22 = vpop.eup %5229  ;;  %5249 = vrcp.f32 %v991_v9  ;;  %v1306_v42 = vsub.f32 %v5801_v58, %v6185_v49  ;;  %v1264_v9 = vmul.f32 %v6181_v53, %v1226_v41  ;;  %v1229_v58 = vadd.f32 %v6127_v54, %v1228_v50 }
 0x314   :  { %v6193_v30 = vpop.eup %5231  ;;  %5251 = vtanh.f32 %v1277_v1  ;;  %v1282_v4 = vadd.f32 %v1266_v51, %v1119_v44  ;;  %v1267_v1 = vmul.f32 %v6183_v57, %v1237_v45  ;;  %v1114_v11 = vadd.f32 %v6120_v40, %v6102_v38 }
 0x315   :  { %v6199_v10 = vpop.eup %5233  ;;  %1340 = vrot.lane.b32.xlu1 %v1306_v42, %s5574_s22  ;;  %v1307_v33 = vsub.f32 %v5806_v59, %v6193_v30  ;;  %v1280_v8 = vadd.f32 %v1264_v9, %v1111_v0  ;;  %v1304_v59 = vsub.f32 %v5785_v55, %v6188_v22 }
 0x316   :  { %v6208_v52 = vpop.eup %5235  ;;  %v1265_v2 = vmul.f32 %v6199_v10, %v1229_v58  ;;  %5253 = vtanh.f32 %v1282_v4  ;;  %v1283_v5 = vadd.f32 %v1267_v1, %v1122_v61 }
 0x317   :  { %v6213_v12 = vpop.eup %5237  ;;  %1342 = vrot.lane.b32.xlu0 %v1307_v33, %s5574_s22  ;;  %5255 = vtanh.f32 %v1280_v8  ;;  %v4856_v44 = vpop.f32.mrb[36].mxu1  ;;  %v1305_v38 = vsub.f32 %v5790_v56, %v6208_v52  ;;  %v1135_v56 = vadd.f32 %v6105_v3, %v6120_v40  ;;  %v1127_v8 = vadd.f32 %v6120_v40, %v6108_v31 }
 0x318   :  { %v6221_v41 = vpop.eup %5239  ;;  %v1281_v42 = vadd.f32 %v1265_v2, %v1114_v11  ;;  %5257 = vtanh.f32 %v1283_v5  ;;  %v1250_v45 = vadd.f32 %v4856_v44, %v6127_v54  ;;  %v1241_v55 = vpop.f32.mrb[37].mxu1  ;;  %v1138_v5 = vadd.f32 %v6111_v34, %v6120_v40 }
 0x319   :  { %v6223_v35 = vpop.eup %5241  ;;  %1336 = vrot.lane.b32.xlu1 %v1304_v59, %s5574_s22  ;;  %v1242_v0 = vadd.f32 %v6127_v54, %v1241_v55  ;;  %v4857_v9 = vpop.f32.mrb[38].mxu1  ;;  %v1130_v31 = vadd.f32 %v6120_v40, %v6114_v18 }
 0x31a   :  { %v6228_v51 = vpop.eup %5243  ;;  %5259 = vtanh.f32 %v1281_v42  ;;  %v1270_v61 = vmul.f32 %v6213_v12, %v1250_v45  ;;  %v1253_v4 = vadd.f32 %v4857_v9, %v6127_v54  ;;  %v1244_v1 = vpop.f32.mrb[39].mxu1 }
 0x31b   :  { %v6231_v50 = vpop.eup %5245  ;;  %1338 = vrot.lane.b32.xlu0 %v1305_v38, %s5574_s22  ;;  %v1310_v58 = vsub.f32 %v5846_v13, %v6228_v51  ;;  %v1268_v2 = vmul.f32 %v6221_v41, %v1242_v0  ;;  %v1245_v13 = vadd.f32 %v6127_v54, %v1244_v1 }
 0x31c   :  { %v6237_v33 = vpop.eup %5247  ;;  %v1286_v42 = vadd.f32 %v1270_v61, %v1135_v56  ;;  %v1271_v44 = vmul.f32 %v6223_v35, %v1253_v4  ;;  %v1308_v54 = vsub.f32 %v5820_v63, %v6231_v50  ;;  %v85_v4 = vld [vmem:[%s8001_s25 + $0x8] sm:$0xff] }
 0x31d   :  { %v6243_v11 = vpop.eup %5249  ;;  %1348 = vrot.lane.b32.xlu1 %v1310_v58, %s5574_s22  ;;  %v1311_v3 = vsub.f32 %v5851_v14, %v6237_v33  ;;  %v1284_v38 = vadd.f32 %v1268_v2, %v1127_v8  ;;  %v84_v8 = vld [vmem:[%s8001_s25] sm:$0xff] }
 0x31e   :  { %v6252_v59 = vpop.eup %5251  ;;  %v1269_v45 = vmul.f32 %v6243_v11, %v1245_v13  ;;  %5261 = vtanh.f32 %v1286_v42  ;;  %v1287_v14 = vadd.f32 %v1271_v44, %v1138_v5  ;;  %v92_v13 = vld [vmem:[%s8001_s25 + $0x40] sm:$0xff]  ;;  %v95_v5 = vld [vmem:[%s8001_s25 + $0x58] sm:$0xff]  ;;  %v89_v44 = vld [vmem:[%s8001_s25 + $0x28] sm:$0xff] }
 0x31f   :  { %1350 = vrot.lane.b32.xlu0 %v1311_v3, %s5574_s22  ;;  %v1309_v34 = vsub.f32 %v5825_v7, %v6252_v59  ;;  %5263 = vtanh.f32 %v1284_v38  ;;  %v94_v3 = vld [vmem:[%s8001_s25 + $0x50] sm:$0xff]  ;;  %v88_v42 = vld [vmem:[%s8001_s25 + $0x20] sm:$0xff]  ;;  %v97_v38 = vld [vmem:[%s8001_s25 + $0x68] sm:$0xff] }
 0x320   :  { %v1285_v55 = vadd.f32 %v1269_v45, %v1130_v31  ;;  %v6266_v0 = vpop.eup %5253  ;;  %5265 = vtanh.f32 %v1287_v14  ;;  %v96_v31 = vld [vmem:[%s8001_s25 + $0x60] sm:$0xff]  ;;  %v90_v45 = vld [vmem:[%s8001_s25 + $0x30] sm:$0xff] }
 0x321   :  { %1344 = vrot.lane.b32.xlu1 %v1308_v54, %s5574_s22  ;;  %v6268_v18 = vpop.eup %5255  ;;  %v1314_v40 = vsub.f32 %v5881_v19, %v6266_v0  ;;  %v91_v54 = vld [vmem:[%s8001_s25 + $0x38] sm:$0xff]  ;;  %v98_v14 = vld [vmem:[%s8001_s25 + $0x70] sm:$0xff] }
 0x322   :  { %v6273_v9 = vpop.eup %5257  ;;  %v1312_v7 = vsub.f32 %v5867_v16, %v6268_v18  ;;  %5267 = vtanh.f32 %v1285_v55  ;;  %v99_v55 = vld [vmem:[%s8001_s25 + $0x78] sm:$0xff] }
 0x323   :  { %1346 = vrot.lane.b32.xlu0 %v1309_v34, %s5574_s22  ;;  %v1315_v63 = vsub.f32 %v5886_v20, %v6273_v9 }
 0x324   :  { %v6278_v58 = vpop.eup %5259 }
 0x325   :  { %1356 = vrot.lane.b32.xlu1 %v1314_v40, %s5574_s22  ;;  %v1313_v19 = vsub.f32 %v5872_v17, %v6278_v58 }
 0x327   :  { %1358 = vrot.lane.b32.xlu0 %v1315_v63, %s5574_s22 }
 0x328   :  { %v6286_v56 = vpop.eup %5261 }
 0x329   :  { %1352 = vrot.lane.b32.xlu1 %v1312_v7, %s5574_s22  ;;  %v1318_v20 = vsub.f32 %v5919_v27, %v6286_v56  ;;  %v6291_v61 = vpop.eup %5263 }
 0x32a   :  { %v6297_v16 = vpop.eup %5265  ;;  %v1316_v17 = vsub.f32 %v5902_v23, %v6291_v61  ;;  %v86_v23 = vld [vmem:[%s8001_s25 + $0x10] sm:$0xff] }
 0x32b   :  { %1354 = vrot.lane.b32.xlu0 %v1313_v19, %s5574_s22  ;;  %v1319_v1 = vsub.f32 %v5924_v28, %v6297_v16  ;;  %v87_v28 = vld [vmem:[%s8001_s25 + $0x18] sm:$0xff] }
 0x32c   :  { %v6304_v27 = vpop.eup %5267 }
 0x32d   :  { %1364 = vrot.lane.b32.xlu1 %v1318_v20, %s5574_s22  ;;  %v1317_v2 = vsub.f32 %v5907_v24, %v6304_v27  ;;  %v93_v24 = vld [vmem:[%s8001_s25 + $0x48] sm:$0xff] }
 0x32f   :  { %1487 = vperm.xlu0 %5144, %v85_v4  }
 0x331   :  { %1360 = vrot.lane.b32.xlu1 %v1316_v17, %s5574_s22 }
 0x333   :  { %1366 = vrot.lane.b32.xlu0 %v1319_v1, %s5574_s22 }
 0x335   :  { %1482 = vperm.xlu1 %5143, %v84_v8  }
 0x337   :  { %1362 = vrot.lane.b32.xlu0 %v1317_v2, %s5574_s22 }
 0x339   :  { %1492 = vperm.xlu1 %5143, %v86_v23  }
 0x33b   :  { %1497 = vperm.xlu0 %5144, %v87_v28  }
 0x33d   :  { %1522 = vperm.xlu1 %5143, %v92_v13  }
 0x33f   :  { %1527 = vperm.xlu0 %5144, %v93_v24  }
 0x341   :  { %1532 = vperm.xlu1 %5143, %v94_v3  }
 0x343   :  { %1537 = vperm.xlu0 %5144, %v95_v5  }
 0x345   :  { %1502 = vperm.xlu1 %5143, %v88_v42  }
 0x347   :  { %1507 = vperm.xlu0 %5144, %v89_v44  }
 0x349   :  { %1542 = vperm.xlu1 %5143, %v96_v31  }
 0x34b   :  { %1547 = vperm.xlu0 %5144, %v97_v38  }
 0x34d   :  { %1512 = vperm.xlu1 %5143, %v90_v45  }
 0x34f   :  { %1517 = vperm.xlu0 %5144, %v91_v54  }
 0x351   :  { %1552 = vperm.xlu1 %5143, %v98_v14  }
 0x353   :  { %1557 = vperm.xlu0 %5144, %v99_v55  }
 0x387   :  { %v1341_v34 = vpop.permute.xlu1 %1340 }
 0x388   :  { %v1386_v40 = vmul.f32 %v6122_v46, %v1341_v34 }
 0x389   :  { %v1343_v63 = vpop.permute.xlu0 %1342 }
 0x38a   :  { %v1387_v7 = vmul.f32 %v6143_v6, %v1343_v63  ;;  %1420 = vrot.lane.b32.xlu1 %v1386_v40, %s5575_s2 }
 0x38b   :  { %v1337_v19 = vpop.permute.xlu1 %1336 }
 0x38c   :  { %v1384_v20 = vmul.f32 %v6129_v60, %v1337_v19  ;;  %1422 = vrot.lane.b32.xlu0 %v1387_v7, %s5575_s2 }
 0x38d   :  { %v1339_v4 = vpop.permute.xlu0 %1338 }
 0x38e   :  { %v1385_v17 = vmul.f32 %v6149_v32, %v1339_v4  ;;  %1416 = vrot.lane.b32.xlu1 %v1384_v20, %s5575_s2 }
 0x38f   :  { %v1349_v1 = vpop.permute.xlu1 %1348 }
 0x390   :  { %v1390_v8 = vmul.f32 %v6154_v21, %v1349_v1  ;;  %1418 = vrot.lane.b32.xlu0 %v1385_v17, %s5575_s2 }
 0x391   :  { %v1351_v46 = vpop.permute.xlu0 %1350 }
 0x392   :  { %v1391_v6 = vmul.f32 %v6167_v36, %v1351_v46  ;;  %1428 = vrot.lane.b32.xlu1 %v1390_v8, %s5575_s2 }
 0x393   :  { %v1345_v2 = vpop.permute.xlu1 %1344 }
 0x394   :  { %v1388_v60 = vmul.f32 %v6157_v26, %v1345_v2  ;;  %1430 = vrot.lane.b32.xlu0 %v1391_v6, %s5575_s2 }
 0x395   :  { %v1347_v23 = vpop.permute.xlu0 %1346 }
 0x396   :  { %v1389_v32 = vmul.f32 %v6173_v15, %v1347_v23  ;;  %1424 = vrot.lane.b32.xlu1 %v1388_v60, %s5575_s2 }
 0x397   :  { %v1357_v28 = vpop.permute.xlu1 %1356 }
 0x398   :  { %v1394_v21 = vmul.f32 %v6178_v29, %v1357_v28  ;;  %1426 = vrot.lane.b32.xlu0 %v1389_v32, %s5575_s2 }
 0x399   :  { %v1359_v13 = vpop.permute.xlu0 %1358 }
 0x39a   :  { %v1395_v36 = vmul.f32 %v6183_v57, %v1359_v13  ;;  %1436 = vrot.lane.b32.xlu1 %v1394_v21, %s5575_s2 }
 0x39b   :  { %v1353_v24 = vpop.permute.xlu1 %1352 }
 0x39c   :  { %v1392_v26 = vmul.f32 %v6181_v53, %v1353_v24  ;;  %1438 = vrot.lane.b32.xlu0 %v1395_v36, %s5575_s2 }
 0x39d   :  { %v1355_v3 = vpop.permute.xlu0 %1354 }
 0x39e   :  { %v1393_v15 = vmul.f32 %v6199_v10, %v1355_v3  ;;  %1432 = vrot.lane.b32.xlu1 %v1392_v26, %s5575_s2 }
 0x39f   :  { %v1365_v5 = vpop.permute.xlu1 %1364 }
 0x3a0   :  { %1434 = vrot.lane.b32.xlu0 %v1393_v15, %s5575_s2  ;;  %v1398_v57 = vmul.f32 %v6213_v12, %v1365_v5 }
 0x3a3   :  { %v1361_v29 = vpop.permute.xlu1 %1360 }
 0x3a4   :  { %v1396_v42 = vmul.f32 %v6221_v41, %v1361_v29 }
 0x3a6   :  { %1440 = vrot.lane.b32.xlu1 %v1396_v42, %s5575_s2 }
 0x3aa   :  { %1444 = vrot.lane.b32.xlu1 %v1398_v57, %s5575_s2 }
 0x3ae   :  { %v6383_v53 = vpop.permute.xlu0 %1487 }
 0x3b2   :  { %v1367_v44 = vpop.permute.xlu0 %1366 }
 0x3b3   :  { %v1399_v38 = vmul.f32 %v6223_v35, %v1367_v44 }
 0x3b4   :  { %v6389_v45 = vpop.permute.xlu1 %1482 }
 0x3b6   :  { %v1363_v31 = vpop.permute.xlu0 %1362 }
 0x3b7   :  { %v1397_v10 = vmul.f32 %v6243_v11, %v1363_v31 }
 0x3b8   :  { %v6391_v41 = vpop.permute.xlu1 %1492 }
 0x3b9   :  { %1442 = vrot.lane.b32.xlu0 %v1397_v10, %s5575_s2 }
 0x3ba   :  { %v6393_v54 = vpop.permute.xlu0 %1497 }
 0x3bc   :  { %v6395_v12 = vpop.permute.xlu1 %1522 }
 0x3bd   :  { %1446 = vrot.lane.b32.xlu0 %v1399_v38, %s5575_s2  ;;  %8002 = vst [vmem:[#allocation12_spill] sm:$0xff] %v6395_v12 }
 0x3be   :  { %v6397_v14 = vpop.permute.xlu0 %1527 }
 0x3bf   :  { %8003 = vst [vmem:[#allocation13_spill] sm:$0xff] %v6397_v14 }
 0x3c0   :  { %v6399_v55 = vpop.permute.xlu1 %1532 }
 0x3c1   :  { %8004 = vst [vmem:[#allocation14_spill] sm:$0xff] %v6399_v55 }
 0x3c2   :  { %v6401_v34 = vpop.permute.xlu0 %1537 }
 0x3c3   :  { %8005 = vst [vmem:[#allocation15_spill] sm:$0xff] %v6401_v34 }
 0x3c4   :  { %v6403_v11 = vpop.permute.xlu1 %1502 }
 0x3c6   :  { %v6405_v40 = vpop.permute.xlu0 %1507 }
 0x3c8   :  { %v6407_v35 = vpop.permute.xlu1 %1542 }
 0x3c9   :  { %8006 = vst [vmem:[#allocation16_spill] sm:$0xff] %v6407_v35 }
 0x3ca   :  { %v6409_v63 = vpop.permute.xlu0 %1547 }
 0x3cb   :  { %8007 = vst [vmem:[#allocation17_spill] sm:$0xff] %v6409_v63 }
 0x3cc   :  { %v6411_v7 = vpop.permute.xlu1 %1512 }
 0x3cd   :  { %8008 = vst [vmem:[#allocation18_spill] sm:$0xff] %v6411_v7 }
 0x3ce   :  { %v6413_v19 = vpop.permute.xlu0 %1517 }
 0x3cf   :  { %8009 = vst [vmem:[#allocation19_spill] sm:$0xff] %v6413_v19 }
 0x3d0   :  { %v6415_v20 = vpop.permute.xlu1 %1552 }
 0x3d1   :  { %8010 = vst [vmem:[#allocation20_spill] sm:$0xff] %v6415_v20 }
 0x3d2   :  { %v6417_v17 = vpop.permute.xlu0 %1557 }
 0x3d3   :  { %8011 = vst [vmem:[#allocation21_spill] sm:$0xff] %v6417_v17 }
 0x3fc   :  { %v1421_v4 = vpop.permute.xlu1 %1420 }
 0x3fd   :  { %v6432_v5 = vadd.f32 %v6185_v49, %v1421_v4 }
 0x3fe   :  { %v1423_v1 = vpop.permute.xlu0 %1422 }
 0x3ff   :  { %v6423_v24 = vadd.f32 %v6193_v30, %v1423_v1 }
 0x400   :  { %v1417_v8 = vpop.permute.xlu1 %1416 }
 0x401   :  { %v6426_v26 = vadd.f32 %v6188_v22, %v1417_v8  ;;  %v1563_v22 = vmul.f32 %v6393_v54, %v6423_v24 }
 0x402   :  { %v1419_v46 = vpop.permute.xlu0 %1418 }
 0x403   :  { %v6420_v36 = vadd.f32 %v6208_v52, %v1419_v46  ;;  %v1580_v4 = vsel %vm151_vm1, %v1563_v22, -inf }
 0x404   :  { %v1429_v6 = vpop.permute.xlu1 %1428 }
 0x405   :  { %v1561_v52 = vmul.f32 %v6383_v53, %v6420_v36 }
 0x406   :  { %v1431_v2 = vpop.permute.xlu0 %1430 }
 0x407   :  { %v6463_v31 = vadd.f32 %v6237_v33, %v1431_v2  ;;  %v1577_v10 = vsel %vm151_vm1, %v1561_v52, -inf  ;;  %v6478_v33 = vadd.f32 %v6228_v51, %v1429_v6 }
 0x408   :  { %v1425_v60 = vpop.permute.xlu1 %1424 }
 0x409   :  { %v6435_v29 = vadd.f32 %v6231_v50, %v1425_v60  ;;  %v1567_v51 = vmul.f32 %v6413_v19, %v6463_v31  ;;  %v1566_v22 = vmul.f32 %v6411_v7, %v6478_v33 }
 0x40a   :  { %v1427_v23 = vpop.permute.xlu0 %1426 }
 0x40b   :  { %v6429_v15 = vadd.f32 %v6252_v59, %v1427_v23  ;;  %v1560_v59 = vmul.f32 %v6389_v45, %v6426_v26 }
 0x40c   :  { %v1437_v32 = vpop.permute.xlu1 %1436 }
 0x40d   :  { %v6450_v49 = vadd.f32 %v6266_v0, %v1437_v32  ;;  %v1565_v57 = vmul.f32 %v6405_v40, %v6429_v15  ;;  %v1564_v0 = vmul.f32 %v6403_v11, %v6435_v29  ;;  %v1576_v1 = vsel %vm151_vm1, %v1560_v59, -inf }
 0x40e   :  { %v1439_v28 = vpop.permute.xlu0 %1438 }
 0x40f   :  { %v6455_v44 = vadd.f32 %v6273_v9, %v1439_v28  ;;  %v1570_v8 = vmul.f32 %v6399_v55, %v6450_v49  ;;  %v1584_v2 = vsel %vm151_vm1, %v1565_v57, -inf  ;;  %v1581_v28 = vmax.f32 %v1577_v10, %v1580_v4 }
 0x410   :  { %v1433_v21 = vpop.permute.xlu1 %1432  ;;  %v1582_v6 = vsel %vm151_vm1, %v1564_v0, -inf }
 0x411   :  { %v6440_v42 = vadd.f32 %v6268_v18, %v1433_v21  ;;  %v1571_v60 = vmul.f32 %v6401_v34, %v6455_v44  ;;  %v1585_v59 = vmax.f32 %v1581_v28, %v1584_v2 }
 0x412   :  { %v1435_v3 = vpop.permute.xlu0 %1434 }
 0x413   :  { %v6443_v30 = vadd.f32 %v6278_v58, %v1435_v3  ;;  %v1562_v58 = vmul.f32 %v6391_v41, %v6432_v5  ;;  %v1568_v38 = vmul.f32 %v6395_v12, %v6440_v42 }
 0x415   :  { %v1569_v9 = vmul.f32 %v6397_v14, %v6443_v30  ;;  %v1578_v32 = vsel %vm151_vm1, %v1562_v58, -inf  ;;  %v1591_v21 = vsel %vm151_vm1, %v1568_v38, -inf  ;;  %v1595_v58 = vsel %vm151_vm1, %v1571_v60, -inf }
 0x418   :  { %v1441_v13 = vpop.permute.xlu1 %1440 }
 0x419   :  { %v6458_v18 = vadd.f32 %v6291_v61, %v1441_v13  ;;  %v1592_v13 = vsel %vm151_vm1, %v1569_v9, -inf }
 0x41c   :  { %v1445_v50 = vpop.permute.xlu1 %1444 }
 0x41d   :  { %v6473_v61 = vadd.f32 %v6286_v56, %v1445_v50  ;;  %v1572_v56 = vmul.f32 %v6407_v35, %v6458_v18  ;;  %v1593_v50 = vsel %vm151_vm1, %v1570_v8, -inf }
 0x41e   :  { %v1594_v4 = vmax.f32 %v1591_v21, %v1593_v50  ;;  %v6543_v50 = vpack.c.bf16 %v6423_v24, %v6432_v5 }
 0x41f   :  { %v1574_v3 = vmul.f32 %v6415_v20, %v6473_v61  ;;  %v1597_v0 = vsel %vm151_vm1, %v1572_v56, -inf  ;;  %v1586_v56 = vsel %vm151_vm1, %v1566_v22, -inf  ;;  %v5487_v22 = vld [vmem:[%s7945_s12 + $0x8] sm:$0xff]  }
 0x420   :  { %v1598_v28 = vmax.f32 %v1594_v4, %v1597_v0  ;;  %v5490_v0 = vld [vmem:[%s7946_s13] sm:$0xff]   ;;  %v5492_v4 = vld [vmem:[%s7946_s13 + $0x8] sm:$0xff]  }
 0x42b   :  { %v1443_v46 = vpop.permute.xlu0 %1442 }
 0x42c   :  { %v6488_v23 = vadd.f32 %v6304_v27, %v1443_v46  ;;  %v1579_v27 = vmax.f32 %v1576_v1, %v1578_v32  ;;  %v1596_v46 = vmax.f32 %v1592_v13, %v1595_v58  ;;  %v1588_v1 = vsel %vm151_vm1, %v1567_v51, -inf  ;;  %v5489_v58 = vld [vmem:[%s7944_s11] sm:$0xff]  }
 0x42d   :  { %v1601_v32 = vsel %vm151_vm1, %v1574_v3, -inf  ;;  %v1589_v2 = vmax.f32 %v1585_v59, %v1588_v1  ;;  %v6517_v51 = vpack.c.bf16 %v6420_v36, %v6426_v26  ;;  %v5485_v3 = vld [vmem:[%s7940_s7] sm:$0xff]   ;;  %v5488_v59 = vld [vmem:[%s7940_s7 + $0x8] sm:$0xff]  }
 0x42e   :  { %v1573_v52 = vmul.f32 %v6409_v63, %v6488_v23  ;;  %v1583_v9 = vmax.f32 %v1579_v27, %v1582_v6  ;;  %v6527_v27 = vld [vmem:[%s7945_s12] sm:$0xff]  }
 0x42f   :  { %v1447_v57 = vpop.permute.xlu0 %1446  ;;  %v6579_v1 = vld [vmem:[%s7947_s14] sm:$0xff]  }
 0x430   :  { %v1599_v10 = vsel %vm151_vm1, %v1573_v52, -inf  ;;  %v6507_v38 = vadd.f32 %v6297_v16, %v1447_v57  ;;  %v1587_v20 = vmax.f32 %v1583_v9, %v1586_v56  ;;  %v1602_v16 = vmax.f32 %v1598_v28, %v1601_v32  ;;  %v5491_v9 = vld [vmem:[%s7944_s11 + $0x8] sm:$0xff]  }
 0x431   :  { %v1600_v60 = vmax.f32 %v1596_v46, %v1599_v10  ;;  %v6553_v10 = vpack.c.bf16 %v6429_v15, %v6435_v29  ;;  %v6574_v46 = vpack.c.bf16 %v6443_v30, %v6440_v42  ;;  %v6588_v32 = vpack.c.bf16 %v6455_v44, %v6450_v49 }
 0x432   :  { %v1575_v8 = vmul.f32 %v6417_v17, %v6507_v38  ;;  %v1590_v6 = vmax.f32 %v1587_v20, %v1589_v2  ;;  %v8012_v20 = vmov 0.0   ;;  %v6600_v2 = vpack.c.bf16 %v6507_v38, %v6473_v61 }
 0x434   :  { %v1603_v52 = vsel %vm151_vm1, %v1575_v8, -inf  ;;  %v6592_v8 = vpack.c.bf16 %v6488_v23, %v6458_v18 }
 0x435   :  { %v1604_v57 = vmax.f32 %v1600_v60, %v1603_v52 }
 0x437   :  { %v1605_v21 = vmax.f32 %v1602_v16, %v1604_v57 }
 0x439   :  { %v1606_v13 = vpack.c.bf16 %v1605_v21, %v1590_v6  ;;  %v5494_v21 = vld [vmem:[%s7941_s8] ss:$0 sm:$0xff] }
 0x43b   :  { %4871 = vmatmul.mubr.msk.bf16.vlgmr.msra.gmra.mrb[40].mxu1 %vm151_vm1, %v1606_v13  ;;  %4879 = vmatmul.mubr.msk.bf16.vlgmr.msra.gmra.mrb[28].mxu0 %vm151_vm1, %v1606_v13 }
 0x43c   :  { %4883 = vmatpush3.bf16.msra.mxu1 %v5485_v3  ;;  %4891 = vmatpush3.bf16.msra.mxu0 %v6527_v27 }
 0x43d   :  { %4894 = vmatprep.mubr.msk.bf16.mxu0 %vm151_vm1, %v6517_v51  ;;  %4884 = vmatprep.subr.bf16.mxu1 %v8012_v20 }
 0x43e   :  { %4892 = vmatprep.subr.bf16.mxu0 %v5487_v22  ;;  %4886 = vmatprep.mubr.msk.bf16.mxu1 %vm5572_vm0, %v8012_v20 }
 0x440   :  { %4885 = vmatpush3.bf16.msra.mxu1 %v5488_v59  ;;  %4893 = vmatpush3.bf16.msra.mxu0 %v5487_v22 }
 0x441   :  { %4910 = vmatprep.subr.bf16.mxu0 %v5489_v58  ;;  %4930 = vmatprep.subr.bf16.mxu1 %v5490_v0 }
 0x443   :  { %4887 = vmatmul.mubr.msk.bf16.vlgmr.msra.gmra.mrb[44].mxu1 %vm151_vm1, %v6034_v37  ;;  %4895 = vmatmul.mubr.msk.bf16.vlgmr.msra.gmra.mrb[32].mxu0 %vm151_vm1, %v6543_v50  ;;  %v6569_v37 = vpack.c.bf16 %v6463_v31, %v6478_v33 }
 0x444   :  { %4898 = vmatprep.mubr.msk.bf16.mxu0 %vm151_vm1, %v6553_v10  ;;  %4911 = vmatpush3.bf16.msra.mxu0 %v5489_v58 }
 0x445   :  { %4912 = vmatprep.subr.bf16.mxu0 %v5491_v9  ;;  %4931 = vmatpush3.bf16.msra.mxu1 %v5490_v0 }
 0x446   :  { %4932 = vmatprep.subr.bf16.mxu1 %v5492_v4 }
 0x448   :  { %4913 = vmatpush3.bf16.msra.mxu0 %v5491_v9 }
 0x449   :  { %4933 = vmatpush3.bf16.msra.mxu1 %v5492_v4  ;;  %4970 = vmatprep.subr.bf16.mxu0 %v8012_v20 }
 0x44a   :  { %4950 = vmatprep.subr.bf16.mxu1 %v6579_v1 }
 0x44b   :  { %4899 = vmatmul.mubr.msk.bf16.gmra.mrb[36].mxu0 %vm151_vm1, %v6569_v37 }
 0x44c   :  { %4902 = vmatprep.mubr.msk.bf16.mxu0 %vm151_vm1, %v6574_v46 }
 0x453   :  { %4903 = vmatmul.mubr.msk.bf16.gmra.mrb[40].mxu0 %vm151_vm1, %v6588_v32 }
 0x454   :  { %4906 = vmatprep.mubr.msk.bf16.mxu0 %vm151_vm1, %v6592_v8 }
 0x45b   :  { %4907 = vmatmul.mubr.msk.bf16.gmra.mrb[44].mxu0 %vm151_vm1, %v6600_v2 }
 0x50e   :  { %v1689_v28 = vpop.f32.mrb[40].mxu1  ;;  %v1744_v60 = vpop.f32.mrb[28].mxu0 }
 0x50f   :  { %v1690_v56 = vadd.f32 %v1689_v28, %v6131_v62  ;;  %v4872_v52 = vpop.f32.mrb[41].mxu1  ;;  %v4880_v16 = vpop.f32.mrb[29].mxu0 }
 0x510   :  { %v1692_v57 = vpop.f32.mrb[42].mxu1  ;;  %v1747_v6 = vpop.f32.mrb[30].mxu0 }
 0x511   :  { %v1696_v13 = vadd.f32 %v5494_v21, %v1690_v56  ;;  %v1693_v3 = vadd.f32 %v1692_v57, %v6139_v25  ;;  %v4873_v22 = vpop.f32.mrb[43].mxu1  ;;  %v4881_v59 = vpop.f32.mrb[31].mxu0  ;;  %v5495_v25 = vld [vmem:[%s7943_s10] ss:$0 sm:$0xff] }
 0x513   :  { %v4484_v58 = vmul.f32 -1.442695, %v1696_v13  ;;  %v1697_v0 = vadd.f32 %v5494_v21, %v1693_v3  ;;  %v5496_v21 = vld [vmem:[%s7942_s9] ss:$0 sm:$0xff] }
 0x514   :  { %v1745_v13 = vadd.f32 %v5496_v21, %v1744_v60 }
 0x515   :  { %5269 = vpow2.f32 %v4484_v58  ;;  %v4485_v9 = vmul.f32 -1.442695, %v1697_v0  ;;  %v1748_v58 = vadd.f32 %v5496_v21, %v1747_v6 }
 0x516   :  { %v1785_v4 = vpop.f32.mrb[44].mxu1 }
 0x517   :  { %5271 = vpow2.f32 %v4485_v9  ;;  %v4888_v62 = vpop.f32.mrb[45].mxu1  ;;  %v1786_v56 = vadd.f32 %v5495_v25, %v1785_v4 }
 0x518   :  { %v1788_v28 = vpop.f32.mrb[46].mxu1 }
 0x519   :  { %v4889_v52 = vpop.f32.mrb[47].mxu1  ;;  %v1789_v22 = vadd.f32 %v5495_v25, %v1788_v28 }
 0x51f   :  { %v5270_v16 = vpop.eup %5269 }
 0x520   :  { %v1704_v17 = vadd.f32 1.0, %v5270_v16 }
 0x521   :  { %v5272_v7 = vpop.eup %5271 }
 0x522   :  { %5273 = vrcp.f32 %v1704_v17  ;;  %v1705_v63 = vadd.f32 1.0, %v5272_v7 }
 0x524   :  { %5275 = vrcp.f32 %v1705_v63 }
 0x52c   :  { %v5274_v57 = vpop.eup %5273 }
 0x52d   :  { %v1792_v3 = vmul.f32 %v5274_v57, %v1786_v56 }
 0x52e   :  { %v5276_v59 = vpop.eup %5275 }
 0x52f   :  { %v1794_v0 = vadd.f32 %v1792_v3, %v1745_v13  ;;  %v1793_v9 = vmul.f32 %v5276_v59, %v1789_v22 }
 0x531   :  { %5277 = vtanh.f32 %v1794_v0  ;;  %v1795_v7 = vadd.f32 %v1793_v9, %v1748_v58 }
 0x533   :  { %5279 = vtanh.f32 %v1795_v7 }
 0x53b   :  { %v5278_v63 = vpop.eup %5277 }
 0x53c   :  { %v1798_v17 = vsub.f32 %v5948_v43, %v5278_v63 }
 0x53d   :  { %v5280_v62 = vpop.eup %5279 }
 0x53e   :  { %1802 = vrot.lane.b32.xlu1 %v1798_v17, %s5574_s22  ;;  %v1799_v4 = vsub.f32 %v5957_v48, %v5280_v62 }
 0x540   :  { %1804 = vrot.lane.b32.xlu0 %v1799_v4, %s5574_s22 }
 0x5b0   :  { %v1803_v60 = vpop.permute.xlu1 %1802 }
 0x5b1   :  { %v1808_v52 = vmul.f32 %v5274_v57, %v1803_v60  ;;  %v8015_v57 = vld [vmem:[#allocation9_spill] sm:$0xff] }
 0x5b2   :  { %v1805_v28 = vpop.permute.xlu0 %1804 }
 0x5b3   :  { %v1809_v16 = vmul.f32 %v5276_v59, %v1805_v28  ;;  %1812 = vrot.lane.b32.xlu1 %v1808_v52, %s5575_s2 }
 0x5b5   :  { %1814 = vrot.lane.b32.xlu0 %v1809_v16, %s5575_s2 }
 0x625   :  { %v1813_v6 = vpop.permute.xlu1 %1812 }
 0x626   :  { %v6621_v25 = vadd.f32 %v5278_v63, %v1813_v6  ;;  %v8016_v63 = vld [vmem:[#allocation11_spill] sm:$0xff] }
 0x627   :  { %v1815_v56 = vpop.permute.xlu0 %1814 }
 0x628   :  { %8013 = vst [vmem:[#allocation22_spill] sm:$0xff] %v6621_v25  ;;  %v1820_v43 = vmul.f32 %v6621_v25, %v5945_v39  ;;  %v6625_v21 = vadd.f32 %v5280_v62, %v1815_v56 }
 0x62a   :  { %8014 = vst [vmem:[#allocation23_spill] sm:$0xff] %v6625_v21  ;;  %v6629_v48 = vmul.f32 %v6625_v21, %v5954_v47  ;;  %v1831_v13 = vrot.slane %v1820_v43, %v8015_v57  ;;  %v1824_v3 = vcombine.high %v1820_v43, %v1820_v43 }
 0x62c   :  { %v1839_v22 = vcombine.high %v1831_v13, %v1831_v13  ;;  %v1847_v59 = vrot.slane %v1831_v13, %v8015_v57  ;;  %v1838_v58 = vrot.slane %v1824_v3, %v8015_v57  ;;  %v1880_v0 = vrot.slane %v6629_v48, %v8015_v57 }
 0x62d   :  { %v1873_v52 = vcombine.high %v6629_v48, %v6629_v48 }
 0x62e   :  { %v1861_v9 = vrot.slane %v1839_v22, %v8015_v57  ;;  %v1869_v7 = vcombine.high %v1847_v59, %v1847_v59  ;;  %v1925_v17 = vrot.slane %v1847_v59, %v8016_v63  ;;  %v1840_v62 = vcombine.high %v1838_v58, %v1838_v58 }
 0x62f   :  { %v1854_v4 = vrot.slane %v1838_v58, %v8015_v57  ;;  %v1888_v60 = vcombine.high %v1880_v0, %v1880_v0  ;;  %v1887_v19 = vrot.slane %v1873_v52, %v8015_v57 }
 0x630   :  { %v1871_v28 = vcombine.high %v1861_v9, %v1861_v9  ;;  %v1929_v16 = vrot.slane %v1861_v9, %v8016_v63  ;;  %v1933_v6 = vrot.slane %v1869_v7, %v8016_v63  ;;  %v1868_v56 = vrot.slane %v1840_v62, %v8015_v57 }
 0x631   :  { %v1941_v13 = vrot.slane %v1854_v4, %v8016_v63  ;;  %v2002_v22 = vmul.f32 %v1925_v17, %v1820_v43  ;;  %v1910_v39 = vrot.slane %v1888_v60, %v8015_v57  ;;  %v1870_v55 = vcombine.high %v1854_v4, %v1854_v4 }
 0x632   :  { %v1937_v3 = vrot.slane %v1871_v28, %v8016_v63  ;;  %v2003_v59 = vmul.f32 %v1929_v16, %v1820_v43  ;;  %v1945_v47 = vrot.slane %v1868_v56, %v8016_v63  ;;  %v1872_v58 = vcombine.high %v1868_v56, %v1868_v56 }
 0x633   :  { %v2004_v34 = vmul.f32 %v1933_v6, %v1820_v43  ;;  %v2006_v7 = vmul.f32 %v1941_v13, %v1820_v43  ;;  %v1896_v62 = vrot.slane %v1880_v0, %v8015_v57  ;;  %v1961_v60 = vrot.slane %v1910_v39, %v8016_v63 }
 0x634   :  { %v2018_v35 = vpack.c.bf16 %v2003_v59, %v2002_v22  ;;  %v2005_v9 = vmul.f32 %v1937_v3, %v1820_v43  ;;  %v2007_v14 = vmul.f32 %v1945_v47, %v1820_v43  ;;  %v1953_v28 = vrot.slane %v1872_v58, %v8016_v63 }
 0x635   :  { %v1889_v56 = vcombine.high %v1887_v19, %v1887_v19  ;;  %v1949_v4 = vrot.slane %v1870_v55, %v8016_v63  ;;  %v1957_v47 = vrot.slane %v1896_v62, %v8016_v63  ;;  %v2011_v0 = vmul.f32 %v1961_v60, %v6629_v48  ;;  %v5498_v55 = vld [vmem:[%s7938_s5] sm:$0xff]  }
 0x636   :  { %4914 = vmatprep.mubr.msk.bf16.mxu0 %vm151_vm1, %v2018_v35  ;;  %4934 = vmatprep.mubr.msk.bf16.mxu1 %vm151_vm1, %v2018_v35  ;;  %v2019_v17 = vpack.c.bf16 %v2005_v9, %v2004_v34  ;;  %v2020_v16 = vpack.c.bf16 %v2007_v14, %v2006_v7  ;;  %v2009_v34 = vmul.f32 %v1953_v28, %v1820_v43  ;;  %v5497_v14 = vld [vmem:[%s7947_s14 + $0x8] sm:$0xff]  }
 0x637   :  { %v1920_v35 = vcombine.high %v1910_v39, %v1910_v39  ;;  %v1917_v52 = vrot.slane %v1889_v56, %v8015_v57  ;;  %v1918_v6 = vcombine.high %v1896_v62, %v1896_v62  ;;  %v2010_v13 = vmul.f32 %v1957_v47, %v6629_v48 }
 0x638   :  { %4915 = vmatmul.mubr.msk.bf16.vlgmr.msra.gmra.mrb[32].mxu0 %vm151_vm1, %v2019_v17  ;;  %4935 = vmatmul.mubr.msk.bf16.vlgmr.msra.gmra.mrb[48].mxu1 %vm151_vm1, %v2019_v17  ;;  %v1903_v3 = vrot.slane %v1887_v19, %v8015_v57 }
 0x639   :  { %4951 = vmatpush3.bf16.msra.mxu1 %v6579_v1  ;;  %4918 = vmatprep.mubr.msk.bf16.mxu0 %vm151_vm1, %v2020_v16  ;;  %v2008_v1 = vmul.f32 %v1949_v4, %v1820_v43  ;;  %v1969_v39 = vrot.slane %v1920_v35, %v8016_v63  ;;  %v2022_v59 = vpack.c.bf16 %v2011_v0, %v2010_v13  ;;  %v5499_v43 = vld [vmem:[%s7938_s5 + $0x8] sm:$0xff]  }
 0x63a   :  { %4938 = vmatprep.mubr.msk.bf16.mxu1 %vm151_vm1, %v2020_v16  ;;  %4952 = vmatprep.subr.bf16.mxu1 %v5497_v14  ;;  %v1977_v58 = vrot.slane %v1917_v52, %v8016_v63  ;;  %v1965_v9 = vrot.slane %v1918_v6, %v8016_v63  ;;  %v1973_v19 = vrot.slane %v1903_v3, %v8016_v63 }
 0x63b   :  { %4971 = vmatpush3.bf16.msra.mxu0 %v5498_v55  ;;  %v2021_v22 = vpack.c.bf16 %v2009_v34, %v2008_v1  ;;  %v2013_v7 = vmul.f32 %v1969_v39, %v6629_v48  ;;  %v1921_v62 = vcombine.high %v1917_v52, %v1917_v52  ;;  %v1919_v16 = vcombine.high %v1903_v3, %v1903_v3 }
 0x63c   :  { %4972 = vmatprep.subr.bf16.mxu0 %v8012_v20  ;;  %v2015_v17 = vmul.f32 %v1977_v58, %v6629_v48  ;;  %v2012_v28 = vmul.f32 %v1965_v9, %v6629_v48  ;;  %v2014_v60 = vmul.f32 %v1973_v19, %v6629_v48  ;;  %v6705_v52 = vpack.c.bf16 %v6625_v21, %v6621_v25 }
 0x63d   :  { %4953 = vmatpush3.bf16.msra.mxu1 %v5497_v14  ;;  %v1985_v4 = vrot.slane %v1921_v62, %v8016_v63  ;;  %v1981_v34 = vrot.slane %v1919_v16, %v8016_v63 }
 0x63e   :  { %4978 = vmatprep.subr.bf16.mxu1 %v8012_v20  ;;  %v2023_v56 = vpack.c.bf16 %v2013_v7, %v2012_v28  ;;  %v2024_v47 = vpack.c.bf16 %v2015_v17, %v2014_v60  ;;  %8017 = vst [vmem:[#allocation24_spill] sm:$0xff] %v6705_v52 }
 0x63f   :  { %4973 = vmatpush3.bf16.msra.mxu0 %v5499_v43  ;;  %v2017_v14 = vmul.f32 %v1985_v4, %v6629_v48  ;;  %v2016_v35 = vmul.f32 %v1981_v34, %v6629_v48  ;;  %v5501_v48 = vld [vmem:[%s7939_s6] sm:$0xff]  }
 0x640   :  { %4919 = vmatmul.mubr.msk.bf16.gmra.mrb[36].mxu0 %vm151_vm1, %v2021_v22  ;;  %4939 = vmatmul.mubr.msk.bf16.gmra.mrb[52].mxu1 %vm151_vm1, %v2021_v22 }
 0x641   :  { %4922 = vmatprep.mubr.msk.bf16.mxu0 %vm151_vm1, %v2022_v59  ;;  %4942 = vmatprep.mubr.msk.bf16.mxu1 %vm151_vm1, %v2022_v59  ;;  %v2025_v0 = vpack.c.bf16 %v2017_v14, %v2016_v35 }
 0x642   :  { %4986 = vmatprep.subr.bf16.mxu0 %v8012_v20 }
 0x648   :  { %4923 = vmatmul.mubr.msk.bf16.gmra.mrb[40].mxu0 %vm151_vm1, %v2023_v56  ;;  %4943 = vmatmul.mubr.msk.bf16.gmra.mrb[56].mxu1 %vm151_vm1, %v2023_v56 }
 0x649   :  { %4926 = vmatprep.mubr.msk.bf16.mxu0 %vm151_vm1, %v2024_v47  ;;  %4946 = vmatprep.mubr.msk.bf16.mxu1 %vm151_vm1, %v2024_v47 }
 0x650   :  { %4927 = vmatmul.mubr.msk.bf16.gmra.mrb[44].mxu0 %vm151_vm1, %v2025_v0  ;;  %4947 = vmatmul.mubr.msk.bf16.gmra.mrb[60].mxu1 %vm151_vm1, %v2025_v0 }
 0x651   :  { %4954 = vmatprep.mubr.msk.bf16.mxu1 %vm151_vm1, %v6517_v51  ;;  %4974 = vmatprep.mubr.msk.bf16.mxu0 %vm5572_vm0, %v8012_v20  ;;  %v5500_v51 = vld [vmem:[%s7937_s4] sm:$0xff]  }
 0x658   :  { %4955 = vmatmul.mubr.msk.bf16.vlgmr.msra.gmra.mrb[64].mxu1 %vm151_vm1, %v6543_v50  ;;  %4975 = vmatmul.mubr.msk.bf16.vlgmr.msra.gmra.mrb[48].mxu0 %vm151_vm1, %v6705_v52  ;;  %v5502_v50 = vld [vmem:[%s7937_s4 + $0x8] sm:$0xff]  }
 0x659   :  { %4958 = vmatprep.mubr.msk.bf16.mxu1 %vm151_vm1, %v6553_v10  ;;  %4979 = vmatpush3.bf16.msra.mxu1 %v5500_v51  ;;  %v5503_v10 = vld [vmem:[%s7939_s6 + $0x8] sm:$0xff]  }
 0x65a   :  { %4980 = vmatprep.subr.bf16.mxu1 %v8012_v20  ;;  %4987 = vmatpush3.bf16.msra.mxu0 %v5501_v48 }
 0x65b   :  { %4988 = vmatprep.subr.bf16.mxu0 %v8012_v20  ;;  %4990 = vmatprep.mubr.msk.bf16.mxu0 %vm5572_vm0, %v8012_v20 }
 0x65d   :  { %4981 = vmatpush3.bf16.msra.mxu1 %v5502_v50 }
 0x65e   :  { %4989 = vmatpush3.bf16.msra.mxu0 %v5503_v10  ;;  %4994 = vmatprep.subr.bf16.mxu1 %v8012_v20 }
 0x65f   :  { %5002 = vmatprep.subr.bf16.mxu0 %v6527_v27 }
 0x660   :  { %4959 = vmatmul.mubr.msk.bf16.gmra.mrb[68].mxu1 %vm151_vm1, %v6569_v37  ;;  %v6748_v37 = vld [vmem:[%s7948_s15] ss:$0 sm:$0xff] }
 0x661   :  { %4962 = vmatprep.mubr.msk.bf16.mxu1 %vm151_vm1, %v6574_v46 }
 0x668   :  { %4963 = vmatmul.mubr.msk.bf16.gmra.mrb[72].mxu1 %vm151_vm1, %v6588_v32 }
 0x669   :  { %4966 = vmatprep.mubr.msk.bf16.mxu1 %vm151_vm1, %v6592_v8 }
 0x670   :  { %4967 = vmatmul.mubr.msk.bf16.gmra.mrb[76].mxu1 %vm151_vm1, %v6600_v2 }
 0x671   :  { %4982 = vmatprep.mubr.msk.bf16.mxu1 %vm5572_vm0, %v8012_v20 }
 0x70b   :  { %v4916_v55 = vpop.f32.mrb[32].mxu0  ;;  %v6743_v27 = vpop.f32.mrb[48].mxu1 }
 0x70c   :  { %v2278_v46 = vadd.f32 %v6748_v37, %v4916_v55  ;;  %v2213_v32 = vpop.f32.mrb[33].mxu0  ;;  %v6751_v1 = vpop.f32.mrb[49].mxu1 }
 0x70d   :  { %v2276_v8 = vadd.f32 %v6748_v37, %v2213_v32  ;;  %v4917_v6 = vpop.f32.mrb[34].mxu0  ;;  %v6754_v2 = vpop.f32.mrb[50].mxu1 }
 0x70e   :  { %v4506_v13 = vmul.f32 -1.442695, %v2278_v46  ;;  %v2279_v3 = vadd.f32 %v6748_v37, %v4917_v6  ;;  %v2216_v22 = vpop.f32.mrb[35].mxu0  ;;  %v6757_v39 = vpop.f32.mrb[51].mxu1 }
 0x70f   :  { %v4504_v59 = vmul.f32 -1.442695, %v2276_v8  ;;  %v2277_v58 = vadd.f32 %v6748_v37, %v2216_v22 }
 0x710   :  { %5281 = vpow2.f32 %v4506_v13  ;;  %v4507_v43 = vmul.f32 -1.442695, %v2279_v3 }
 0x711   :  { %5283 = vpow2.f32 %v4504_v59  ;;  %v4505_v9 = vmul.f32 -1.442695, %v2277_v58 }
 0x712   :  { %5285 = vpow2.f32 %v4507_v43 }
 0x713   :  { %v4920_v19 = vpop.f32.mrb[36].mxu0  ;;  %v6760_v7 = vpop.f32.mrb[52].mxu1  ;;  %5287 = vpow2.f32 %v4505_v9 }
 0x714   :  { %v2282_v62 = vadd.f32 %v6748_v37, %v4920_v19  ;;  %v2229_v17 = vpop.f32.mrb[37].mxu0  ;;  %v6763_v28 = vpop.f32.mrb[53].mxu1 }
 0x715   :  { %v2280_v16 = vadd.f32 %v6748_v37, %v2229_v17  ;;  %v4921_v60 = vpop.f32.mrb[38].mxu0  ;;  %v6766_v56 = vpop.f32.mrb[54].mxu1 }
 0x716   :  { %v4510_v4 = vmul.f32 -1.442695, %v2282_v62  ;;  %v2283_v47 = vadd.f32 %v6748_v37, %v4921_v60  ;;  %v2232_v34 = vpop.f32.mrb[39].mxu0  ;;  %v6769_v14 = vpop.f32.mrb[55].mxu1 }
 0x717   :  { %v4508_v35 = vmul.f32 -1.442695, %v2280_v16  ;;  %v2281_v0 = vadd.f32 %v6748_v37, %v2232_v34 }
 0x718   :  { %5289 = vpow2.f32 %v4510_v4  ;;  %v4511_v51 = vmul.f32 -1.442695, %v2283_v47 }
 0x719   :  { %5291 = vpow2.f32 %v4508_v35  ;;  %v4509_v48 = vmul.f32 -1.442695, %v2281_v0 }
 0x71a   :  { %v5282_v50 = vpop.eup %5281  ;;  %5293 = vpow2.f32 %v4511_v51 }
 0x71b   :  { %v5284_v10 = vpop.eup %5283  ;;  %v2342_v55 = vadd.f32 1.0, %v5282_v50  ;;  %v4924_v46 = vpop.f32.mrb[40].mxu0  ;;  %5295 = vpow2.f32 %v4509_v48 }
 0x71c   :  { %v6772_v32 = vpop.f32.mrb[56].mxu1  ;;  %v2340_v8 = vadd.f32 1.0, %v5284_v10  ;;  %v2286_v6 = vadd.f32 %v6748_v37, %v4924_v46  ;;  %v2245_v13 = vpop.f32.mrb[41].mxu0 }
 0x71d   :  { %v6775_v3 = vpop.f32.mrb[57].mxu1  ;;  %v2284_v22 = vadd.f32 %v6748_v37, %v2245_v13  ;;  %v4925_v59 = vpop.f32.mrb[42].mxu0  ;;  %5297 = vrcp.f32 %v2342_v55 }
 0x71e   :  { %v6778_v58 = vpop.f32.mrb[58].mxu1  ;;  %v5286_v43 = vpop.eup %5285  ;;  %v4514_v9 = vmul.f32 -1.442695, %v2286_v6  ;;  %v2287_v19 = vadd.f32 %v6748_v37, %v4925_v59  ;;  %5299 = vrcp.f32 %v2340_v8 }
 0x71f   :  { %v2248_v62 = vpop.f32.mrb[43].mxu0  ;;  %v6781_v17 = vpop.f32.mrb[59].mxu1  ;;  %v4512_v60 = vmul.f32 -1.442695, %v2284_v22  ;;  %v2343_v34 = vadd.f32 1.0, %v5286_v43 }
 0x720   :  { %v5288_v16 = vpop.eup %5287  ;;  %v2285_v4 = vadd.f32 %v6748_v37, %v2248_v62  ;;  %v4515_v47 = vmul.f32 -1.442695, %v2287_v19  ;;  %5301 = vpow2.f32 %v4514_v9 }
 0x721   :  { %v2341_v51 = vadd.f32 1.0, %v5288_v16  ;;  %5303 = vpow2.f32 %v4512_v60 }
 0x722   :  { %v4513_v35 = vmul.f32 -1.442695, %v2285_v4  ;;  %v5290_v0 = vpop.eup %5289  ;;  %5305 = vpow2.f32 %v4515_v47 }
 0x723   :  { %v5292_v48 = vpop.eup %5291  ;;  %v2346_v50 = vadd.f32 1.0, %v5290_v0  ;;  %v4928_v10 = vpop.f32.mrb[44].mxu0 }
 0x724   :  { %v6784_v46 = vpop.f32.mrb[60].mxu1  ;;  %v2344_v6 = vadd.f32 1.0, %v5292_v48  ;;  %5307 = vpow2.f32 %v4513_v35  ;;  %v2290_v55 = vadd.f32 %v6748_v37, %v4928_v10  ;;  %v2261_v13 = vpop.f32.mrb[45].mxu0 }
 0x725   :  { %v6787_v22 = vpop.f32.mrb[61].mxu1  ;;  %5309 = vrcp.f32 %v2343_v34  ;;  %v2288_v8 = vadd.f32 %v6748_v37, %v2261_v13  ;;  %v4929_v59 = vpop.f32.mrb[46].mxu0 }
 0x726   :  { %v6790_v43 = vpop.f32.mrb[62].mxu1  ;;  %v5294_v9 = vpop.eup %5293  ;;  %5311 = vrcp.f32 %v2341_v51  ;;  %v4518_v19 = vmul.f32 -1.442695, %v2290_v55  ;;  %v2291_v62 = vadd.f32 %v6748_v37, %v4929_v59 }
 0x727   :  { %v2264_v16 = vpop.f32.mrb[47].mxu0  ;;  %v6793_v60 = vpop.f32.mrb[63].mxu1  ;;  %5313 = vrcp.f32 %v2346_v50  ;;  %v4516_v47 = vmul.f32 -1.442695, %v2288_v8  ;;  %v2347_v48 = vadd.f32 1.0, %v5294_v9 }
 0x728   :  { %v5296_v4 = vpop.eup %5295  ;;  %v2289_v35 = vadd.f32 %v6748_v37, %v2264_v16  ;;  %5315 = vrcp.f32 %v2344_v6  ;;  %v4519_v34 = vmul.f32 -1.442695, %v2291_v62  ;;  %v6805_v37 = vld [vmem:[%s7949_s16] ss:$0 sm:$0xff] }
 0x729   :  { %v6796_v0 = vpop.eup %5297  ;;  %5317 = vpow2.f32 %v4518_v19  ;;  %v2345_v51 = vadd.f32 1.0, %v5296_v4  ;;  %v2431_v6 = vadd.f32 %v6805_v37, %v6743_v27  ;;  %v6812_v9 = vld [vmem:[%s7950_s17] ss:$0 sm:$0xff] }
 0x72a   :  { %v4517_v10 = vmul.f32 -1.442695, %v2289_v35  ;;  %v6798_v13 = vpop.eup %5299  ;;  %5319 = vpow2.f32 %v4516_v47  ;;  %v2423_v47 = vadd.f32 %v6805_v37, %v6751_v1  ;;  %v2434_v1 = vadd.f32 %v6805_v37, %v6754_v2 }
 0x72b   :  { %v5302_v55 = vpop.eup %5301  ;;  %5321 = vpow2.f32 %v4519_v34  ;;  %v4956_v59 = vpop.f32.mrb[64].mxu1 }
 0x72c   :  { %v6800_v63 = vpop.f32.mrb[48].mxu0  ;;  %v5304_v50 = vpop.eup %5303  ;;  %v2350_v8 = vadd.f32 1.0, %v5302_v55  ;;  %5323 = vpow2.f32 %v4517_v10  ;;  %v2528_v19 = vadd.f32 %v6812_v9, %v4956_v59 }
 0x72d   :  { %8018 = vst [vmem:[#allocation25_spill] sm:$0xff] %v6800_v63  ;;  %v2519_v62 = vpop.f32.mrb[65].mxu1  ;;  %v4976_v16 = vpop.f32.mrb[49].mxu0  ;;  %5325 = vrcp.f32 %v2347_v48  ;;  %v2348_v35 = vadd.f32 1.0, %v5304_v50 }
 0x72e   :  { %v5306_v4 = vpop.eup %5305  ;;  %v2520_v34 = vadd.f32 %v6812_v9, %v2519_v62  ;;  %v4957_v27 = vpop.f32.mrb[66].mxu1  ;;  %5327 = vrcp.f32 %v2345_v51  ;;  %v2584_v21 = vmul.f32 %v6796_v0, %v2528_v19  ;;  %v2426_v51 = vadd.f32 %v6805_v37, %v6757_v39 }
 0x72f   :  { %v6818_v55 = vpop.f32.mrb[50].mxu0  ;;  %v5308_v10 = vpop.eup %5307  ;;  %v2351_v57 = vadd.f32 1.0, %v5306_v4  ;;  %v2531_v59 = vadd.f32 %v6812_v9, %v4957_v27  ;;  %5329 = vrcp.f32 %v2350_v8 }
 0x730   :  { %8019 = vst [vmem:[#allocation26_spill] sm:$0xff] %v6818_v55  ;;  %v2522_v25 = vpop.f32.mrb[67].mxu1  ;;  %v4977_v16 = vpop.f32.mrb[51].mxu0  ;;  %v2582_v48 = vmul.f32 %v6798_v13, %v2520_v34  ;;  %5331 = vrcp.f32 %v2348_v35  ;;  %v2600_v19 = vadd.f32 %v2584_v21, %v2431_v6  ;;  %v2447_v21 = vadd.f32 %v6805_v37, %v6760_v7 }
 0x731   :  { %v6822_v63 = vpop.eup %5309  ;;  %v2523_v50 = vadd.f32 %v6812_v9, %v2522_v25  ;;  %5333 = vrcp.f32 %v2351_v57  ;;  %v2349_v16 = vadd.f32 1.0, %v5308_v10  ;;  %v2439_v10 = vadd.f32 %v6805_v37, %v6763_v28 }
 0x732   :  { %v6828_v62 = vpop.eup %5311  ;;  %v2585_v4 = vmul.f32 %v6822_v63, %v2531_v59  ;;  %v2598_v55 = vadd.f32 %v2582_v48, %v2423_v47  ;;  %5335 = vtanh.f32 %v2600_v19 }
 0x733   :  { %v6833_v27 = vpop.eup %5313  ;;  %v2583_v2 = vmul.f32 %v6828_v62, %v2523_v50  ;;  %v4960_v20 = vpop.f32.mrb[68].mxu1 }
 0x734   :  { %v6836_v8 = vpop.eup %5315  ;;  %v2601_v25 = vadd.f32 %v2585_v4, %v2434_v1  ;;  %5337 = vtanh.f32 %v2598_v55  ;;  %v2544_v57 = vadd.f32 %v6812_v9, %v4960_v20  ;;  %v2535_v35 = vpop.f32.mrb[69].mxu1  ;;  %v2450_v20 = vadd.f32 %v6805_v37, %v6766_v56 }
 0x735   :  { %v5318_v34 = vpop.eup %5317  ;;  %v2599_v52 = vadd.f32 %v2583_v2, %v2426_v51  ;;  %v2536_v1 = vadd.f32 %v6812_v9, %v2535_v35  ;;  %v4961_v55 = vpop.f32.mrb[70].mxu1 }
 0x736   :  { %v5320_v39 = vpop.eup %5319  ;;  %v2354_v6 = vadd.f32 1.0, %v5318_v34  ;;  %5339 = vtanh.f32 %v2601_v25  ;;  %v2588_v51 = vmul.f32 %v6833_v27, %v2544_v57  ;;  %v2547_v7 = vadd.f32 %v6812_v9, %v4961_v55  ;;  %v2538_v19 = vpop.f32.mrb[71].mxu1 }
 0x737   :  { %v5322_v47 = vpop.eup %5321  ;;  %5341 = vrcp.f32 %v2349_v16  ;;  %v2352_v59 = vadd.f32 1.0, %v5320_v39  ;;  %v2586_v28 = vmul.f32 %v6836_v8, %v2536_v1  ;;  %v2539_v16 = vadd.f32 %v6812_v9, %v2538_v19 }
 0x738   :  { %v5324_v48 = vpop.eup %5323  ;;  %v2355_v50 = vadd.f32 1.0, %v5322_v47  ;;  %5343 = vtanh.f32 %v2599_v52  ;;  %v2442_v52 = vadd.f32 %v6805_v37, %v6769_v14  ;;  %v2604_v25 = vadd.f32 %v2588_v51, %v2447_v21 }
 0x739   :  { %v6846_v4 = vpop.eup %5325  ;;  %5345 = vrcp.f32 %v2354_v6  ;;  %v2353_v57 = vadd.f32 1.0, %v5324_v48  ;;  %v2602_v35 = vadd.f32 %v2586_v28, %v2439_v10 }
 0x73a   :  { %v6852_v2 = vpop.eup %5327  ;;  %5347 = vrcp.f32 %v2352_v59  ;;  %v2589_v34 = vmul.f32 %v6846_v4, %v2547_v7 }
 0x73b   :  { %v6857_v39 = vpop.eup %5329  ;;  %5349 = vrcp.f32 %v2355_v50  ;;  %v2587_v56 = vmul.f32 %v6852_v2, %v2539_v16  ;;  %v4964_v14 = vpop.f32.mrb[72].mxu1 }
 0x73c   :  { %v6860_v6 = vpop.eup %5331  ;;  %5351 = vtanh.f32 %v2604_v25  ;;  %v2605_v47 = vadd.f32 %v2589_v34, %v2450_v20  ;;  %v2560_v21 = vadd.f32 %v6812_v9, %v4964_v14  ;;  %v2551_v51 = vpop.f32.mrb[73].mxu1  ;;  %v2463_v20 = vadd.f32 %v6805_v37, %v6772_v32 }
 0x73d   :  { %v6862_v1 = vpop.eup %5333  ;;  %5353 = vtanh.f32 %v2602_v35  ;;  %v2603_v55 = vadd.f32 %v2587_v56, %v2442_v52  ;;  %v2552_v10 = vadd.f32 %v6812_v9, %v2551_v51  ;;  %v4965_v48 = vpop.f32.mrb[74].mxu1  ;;  %v2455_v34 = vadd.f32 %v6805_v37, %v6775_v3 }
 0x73e   :  { %v6864_v59 = vpop.eup %5335  ;;  %5355 = vtanh.f32 %v2605_v47  ;;  %v2592_v28 = vmul.f32 %v6857_v39, %v2560_v21  ;;  %v2563_v16 = vadd.f32 %v6812_v9, %v4965_v48  ;;  %v2554_v52 = vpop.f32.mrb[75].mxu1  ;;  %v2466_v56 = vadd.f32 %v6805_v37, %v6778_v58 }
 0x73f   :  { %v6867_v50 = vpop.eup %5337  ;;  %5357 = vrcp.f32 %v2353_v57  ;;  %v2632_v7 = vsub.f32 %v6432_v5, %v6864_v59  ;;  %v2590_v57 = vmul.f32 %v6860_v6, %v2552_v10  ;;  %v2555_v5 = vadd.f32 %v6812_v9, %v2554_v52 }
 0x740   :  { %v6872_v19 = vpop.eup %5339  ;;  %5359 = vtanh.f32 %v2603_v55  ;;  %v2608_v47 = vadd.f32 %v2592_v28, %v2463_v20  ;;  %v2593_v55 = vmul.f32 %v6862_v1, %v2563_v16  ;;  %v2458_v3 = vadd.f32 %v6805_v37, %v6781_v17 }
 0x741   :  { %v6878_v25 = vpop.eup %5341  ;;  %2666 = vrot.lane.b32.xlu1 %v2632_v7, %s5574_s22  ;;  %v2633_v32 = vsub.f32 %v6423_v24, %v6872_v19  ;;  %v2606_v21 = vadd.f32 %v2590_v57, %v2455_v34  ;;  %v2630_v24 = vsub.f32 %v6426_v26, %v6867_v50 }
 0x742   :  { %v6887_v35 = vpop.eup %5343  ;;  %v2591_v51 = vmul.f32 %v6878_v25, %v2555_v5  ;;  %5361 = vtanh.f32 %v2608_v47  ;;  %v2609_v58 = vadd.f32 %v2593_v55, %v2466_v56 }
 0x743   :  { %v6892_v14 = vpop.eup %5345  ;;  %2668 = vrot.lane.b32.xlu0 %v2633_v32, %s5574_s22  ;;  %5363 = vtanh.f32 %v2606_v21  ;;  %v4968_v20 = vpop.f32.mrb[76].mxu1  ;;  %v2631_v17 = vsub.f32 %v6420_v36, %v6887_v35  ;;  %v2479_v36 = vadd.f32 %v6805_v37, %v6784_v46  ;;  %v2471_v21 = vadd.f32 %v6805_v37, %v6787_v22 }
 0x744   :  { %v6900_v10 = vpop.eup %5347  ;;  %v2607_v7 = vadd.f32 %v2591_v51, %v2458_v3  ;;  %5365 = vtanh.f32 %v2609_v58  ;;  %v2576_v16 = vadd.f32 %v6812_v9, %v4968_v20  ;;  %v2567_v26 = vpop.f32.mrb[77].mxu1  ;;  %v2482_v58 = vadd.f32 %v6805_v37, %v6790_v43 }
 0x745   :  { %v6902_v48 = vpop.eup %5349  ;;  %2662 = vrot.lane.b32.xlu1 %v2630_v24, %s5574_s22  ;;  %v2568_v34 = vadd.f32 %v6812_v9, %v2567_v26  ;;  %v4969_v57 = vpop.f32.mrb[78].mxu1  ;;  %v2474_v22 = vadd.f32 %v6805_v37, %v6793_v60 }
 0x746   :  { %v6907_v28 = vpop.eup %5351  ;;  %5367 = vtanh.f32 %v2607_v7  ;;  %v2596_v56 = vmul.f32 %v6892_v14, %v2576_v16  ;;  %v2579_v47 = vadd.f32 %v6812_v9, %v4969_v57  ;;  %v2570_v55 = vpop.f32.mrb[79].mxu1 }
 0x747   :  { %v6910_v52 = vpop.eup %5353  ;;  %2664 = vrot.lane.b32.xlu0 %v2631_v17, %s5574_s22  ;;  %v2636_v5 = vsub.f32 %v6478_v33, %v6907_v28  ;;  %v2594_v51 = vmul.f32 %v6900_v10, %v2568_v34  ;;  %v2571_v33 = vadd.f32 %v6812_v9, %v2570_v55 }
 0x748   :  { %v6916_v32 = vpop.eup %5355  ;;  %v2612_v7 = vadd.f32 %v2596_v56, %v2479_v36  ;;  %v2597_v20 = vmul.f32 %v6902_v48, %v2579_v47  ;;  %v2634_v9 = vsub.f32 %v6435_v29, %v6910_v52 }
 0x749   :  { %v6922_v3 = vpop.eup %5357  ;;  %2674 = vrot.lane.b32.xlu1 %v2636_v5, %s5574_s22  ;;  %v2637_v46 = vsub.f32 %v6463_v31, %v6916_v32  ;;  %v2610_v17 = vadd.f32 %v2594_v51, %v2471_v21 }
 0x74a   :  { %v6931_v24 = vpop.eup %5359  ;;  %v2595_v16 = vmul.f32 %v6922_v3, %v2571_v33  ;;  %v2613_v31 = vadd.f32 %v2597_v20, %v2482_v58 }
 0x74b   :  { %2676 = vrot.lane.b32.xlu0 %v2637_v46, %s5574_s22  ;;  %5369 = vtanh.f32 %v2610_v17  ;;  %v2635_v43 = vsub.f32 %v6429_v15, %v6931_v24 }
 0x74c   :  { %v2611_v26 = vadd.f32 %v2595_v16, %v2474_v22  ;;  %v6945_v34 = vpop.eup %5361  ;;  %5371 = vtanh.f32 %v2612_v7 }
 0x74d   :  { %2670 = vrot.lane.b32.xlu1 %v2634_v9, %s5574_s22  ;;  %v6947_v60 = vpop.eup %5363  ;;  %v2640_v37 = vsub.f32 %v6450_v49, %v6945_v34 }
 0x74e   :  { %5373 = vtanh.f32 %v2611_v26  ;;  %v6952_v29 = vpop.eup %5365  ;;  %v2638_v5 = vsub.f32 %v6440_v42, %v6947_v60 }
 0x74f   :  { %2672 = vrot.lane.b32.xlu0 %v2635_v43, %s5574_s22  ;;  %5375 = vtanh.f32 %v2613_v31  ;;  %v2641_v57 = vsub.f32 %v6455_v44, %v6952_v29 }
 0x750   :  { %v6957_v15 = vpop.eup %5367 }
 0x751   :  { %2682 = vrot.lane.b32.xlu1 %v2640_v37, %s5574_s22  ;;  %v2639_v49 = vsub.f32 %v6443_v30, %v6957_v15 }
 0x753   :  { %2684 = vrot.lane.b32.xlu0 %v2641_v57, %s5574_s22 }
 0x755   :  { %2678 = vrot.lane.b32.xlu1 %v2638_v5, %s5574_s22  ;;  %v6965_v36 = vpop.eup %5369 }
 0x756   :  { %v6968_v56 = vpop.eup %5371  ;;  %v2642_v44 = vsub.f32 %v6458_v18, %v6965_v36 }
 0x757   :  { %2680 = vrot.lane.b32.xlu0 %v2639_v49, %s5574_s22  ;;  %v2644_v30 = vsub.f32 %v6473_v61, %v6968_v56 }
 0x758   :  { %v6972_v47 = vpop.eup %5373 }
 0x759   :  { %2686 = vrot.lane.b32.xlu1 %v2642_v44, %s5574_s22  ;;  %v2643_v42 = vsub.f32 %v6488_v23, %v6972_v47  ;;  %v6977_v55 = vpop.eup %5375 }
 0x75a   :  { %v2645_v21 = vsub.f32 %v6507_v38, %v6977_v55 }
 0x75b   :  { %2688 = vrot.lane.b32.xlu0 %v2643_v42, %s5574_s22 }
 0x75d   :  { %2690 = vrot.lane.b32.xlu1 %v2644_v30, %s5574_s22 }
 0x75f   :  { %2692 = vrot.lane.b32.xlu0 %v2645_v21, %s5574_s22 }
 0x7b3   :  { %v2667_v18 = vpop.permute.xlu1 %2666 }
 0x7b4   :  { %v2712_v51 = vmul.f32 %v6796_v0, %v2667_v18 }
 0x7b5   :  { %v2669_v33 = vpop.permute.xlu0 %2668 }
 0x7b6   :  { %v2713_v23 = vmul.f32 %v6822_v63, %v2669_v33  ;;  %2746 = vrot.lane.b32.xlu1 %v2712_v51, %s5575_s2 }
 0x7b7   :  { %v2663_v46 = vpop.permute.xlu1 %2662 }
 0x7b8   :  { %v2710_v58 = vmul.f32 %v6798_v13, %v2663_v46  ;;  %2748 = vrot.lane.b32.xlu0 %v2713_v23, %s5575_s2 }
 0x7b9   :  { %v2665_v61 = vpop.permute.xlu0 %2664 }
 0x7ba   :  { %v2711_v7 = vmul.f32 %v6828_v62, %v2665_v61  ;;  %2742 = vrot.lane.b32.xlu1 %v2710_v58, %s5575_s2 }
 0x7bb   :  { %v2675_v38 = vpop.permute.xlu1 %2674 }
 0x7bc   :  { %v2716_v20 = vmul.f32 %v6833_v27, %v2675_v38  ;;  %2744 = vrot.lane.b32.xlu0 %v2711_v7, %s5575_s2 }
 0x7bd   :  { %v2677_v0 = vpop.permute.xlu0 %2676 }
 0x7be   :  { %v2717_v63 = vmul.f32 %v6846_v4, %v2677_v0  ;;  %2754 = vrot.lane.b32.xlu1 %v2716_v20, %s5575_s2 }
 0x7bf   :  { %v2671_v22 = vpop.permute.xlu1 %2670 }
 0x7c0   :  { %v2714_v13 = vmul.f32 %v6836_v8, %v2671_v22  ;;  %2756 = vrot.lane.b32.xlu0 %v2717_v63, %s5575_s2 }
 0x7c1   :  { %v2673_v17 = vpop.permute.xlu0 %2672 }
 0x7c2   :  { %v2715_v62 = vmul.f32 %v6852_v2, %v2673_v17  ;;  %2750 = vrot.lane.b32.xlu1 %v2714_v13, %s5575_s2  ;;  %v8020_v17 = vld [vmem:[#allocation13_spill] sm:$0xff] }
 0x7c3   :  { %v2683_v16 = vpop.permute.xlu1 %2682 }
 0x7c4   :  { %v2720_v27 = vmul.f32 %v6857_v39, %v2683_v16  ;;  %2752 = vrot.lane.b32.xlu0 %v2715_v62, %s5575_s2 }
 0x7c5   :  { %v2685_v9 = vpop.permute.xlu0 %2684 }
 0x7c6   :  { %v2721_v4 = vmul.f32 %v6862_v1, %v2685_v9  ;;  %2762 = vrot.lane.b32.xlu1 %v2720_v27, %s5575_s2  ;;  %v8021_v9 = vld [vmem:[#allocation14_spill] sm:$0xff] }
 0x7c7   :  { %v2679_v31 = vpop.permute.xlu1 %2678 }
 0x7c8   :  { %v2718_v8 = vmul.f32 %v6860_v6, %v2679_v31  ;;  %2764 = vrot.lane.b32.xlu0 %v2721_v4, %s5575_s2  ;;  %v8022_v31 = vld [vmem:[#allocation15_spill] sm:$0xff] }
 0x7c9   :  { %v2681_v26 = vpop.permute.xlu0 %2680 }
 0x7ca   :  { %v2719_v2 = vmul.f32 %v6878_v25, %v2681_v26  ;;  %2758 = vrot.lane.b32.xlu1 %v2718_v8, %s5575_s2 }
 0x7cb   :  { %v2687_v39 = vpop.permute.xlu1 %2686 }
 0x7cc   :  { %2760 = vrot.lane.b32.xlu0 %v2719_v2, %s5575_s2  ;;  %v2722_v43 = vmul.f32 %v6900_v10, %v2687_v39 }
 0x7cd   :  { %v2689_v37 = vpop.permute.xlu0 %2688 }
 0x7ce   :  { %v2723_v1 = vmul.f32 %v6922_v3, %v2689_v37  ;;  %2766 = vrot.lane.b32.xlu1 %v2722_v43, %s5575_s2  ;;  %v8023_v43 = vld [vmem:[#allocation16_spill] sm:$0xff] }
 0x7cf   :  { %v2691_v57 = vpop.permute.xlu1 %2690 }
 0x7d0   :  { %v2724_v6 = vmul.f32 %v6892_v14, %v2691_v57  ;;  %2768 = vrot.lane.b32.xlu0 %v2723_v1, %s5575_s2  ;;  %v8024_v57 = vld [vmem:[#allocation19_spill] sm:$0xff] }
 0x7d1   :  { %v2693_v5 = vpop.permute.xlu0 %2692 }
 0x7d2   :  { %v2725_v25 = vmul.f32 %v6902_v48, %v2693_v5  ;;  %2770 = vrot.lane.b32.xlu1 %v2724_v6, %s5575_s2 }
 0x7d4   :  { %2772 = vrot.lane.b32.xlu0 %v2725_v25, %s5575_s2 }
 0x828   :  { %v2747_v49 = vpop.permute.xlu1 %2746 }
 0x829   :  { %v7025_v23 = vadd.f32 %v6864_v59, %v2747_v49 }
 0x82a   :  { %v2749_v44 = vpop.permute.xlu0 %2748 }
 0x82b   :  { %v7028_v46 = vadd.f32 %v6872_v19, %v2749_v44  ;;  %v2808_v19 = vmul.f32 %v7025_v23, %v6391_v41 }
 0x82c   :  { %v2743_v10 = vpop.permute.xlu1 %2742 }
 0x82d   :  { %v7019_v14 = vadd.f32 %v6867_v50, %v2743_v10  ;;  %v2824_v27 = vsel %vm151_vm1, %v2808_v19, -inf  ;;  %v8025_v10 = vld [vmem:[#allocation17_spill] sm:$0xff] }
 0x82e   :  { %v2745_v42 = vpop.permute.xlu0 %2744 }
 0x82f   :  { %v7022_v33 = vadd.f32 %v6887_v35, %v2745_v42  ;;  %v2806_v7 = vmul.f32 %v7019_v14, %v6389_v45 }
 0x830   :  { %v2755_v30 = vpop.permute.xlu1 %2754 }
 0x831   :  { %v2807_v35 = vmul.f32 %v7022_v33, %v6383_v53  ;;  %v2822_v63 = vsel %vm151_vm1, %v2806_v7, -inf }
 0x832   :  { %v2757_v3 = vpop.permute.xlu0 %2756  ;;  %v2825_v1 = vmax.f32 %v2822_v63, %v2824_v27 }
 0x833   :  { %v7060_v22 = vadd.f32 %v6916_v32, %v2757_v3  ;;  %v7074_v32 = vadd.f32 %v6907_v28, %v2755_v30 }
 0x834   :  { %v2751_v21 = vpop.permute.xlu1 %2750 }
 0x835   :  { %v7036_v50 = vadd.f32 %v6910_v52, %v2751_v21  ;;  %v2809_v52 = vmul.f32 %v7028_v46, %v6393_v54  ;;  %v2813_v6 = vmul.f32 %v7060_v22, %v8024_v57 }
 0x836   :  { %v2753_v18 = vpop.permute.xlu0 %2752 }
 0x837   :  { %v7031_v58 = vadd.f32 %v6931_v24, %v2753_v18  ;;  %v2826_v2 = vsel %vm151_vm1, %v2809_v52, -inf  ;;  %v2834_v63 = vsel %vm151_vm1, %v2813_v6, -inf  ;;  %v5507_v6 = vld [vmem:[%s7940_s7] sm:$0xff]  }
 0x838   :  { %v2763_v51 = vpop.permute.xlu1 %2762 }
 0x839   :  { %v7046_v24 = vadd.f32 %v6945_v34, %v2763_v51  ;;  %v2810_v34 = vmul.f32 %v7036_v50, %v6403_v11 }
 0x83a   :  { %v2765_v48 = vpop.permute.xlu0 %2764 }
 0x83b   :  { %v7049_v20 = vadd.f32 %v6952_v29, %v2765_v48  ;;  %v2823_v29 = vsel %vm151_vm1, %v2807_v35, -inf  ;;  %v2816_v4 = vmul.f32 %v7046_v24, %v8021_v9  ;;  %v2828_v5 = vsel %vm151_vm1, %v2810_v34, -inf  ;;  %v8027_v35 = vld [vmem:[#allocation20_spill] sm:$0xff] }
 0x83c   :  { %v2759_v61 = vpop.permute.xlu1 %2758  ;;  %v2827_v28 = vmax.f32 %v2823_v29, %v2826_v2 }
 0x83d   :  { %v7041_v38 = vadd.f32 %v6947_v60, %v2759_v61  ;;  %v2811_v60 = vmul.f32 %v7031_v58, %v6405_v40  ;;  %v2817_v8 = vmul.f32 %v7049_v20, %v8022_v31  ;;  %v2839_v18 = vsel %vm151_vm1, %v2816_v4, -inf }
 0x83e   :  { %v2761_v59 = vpop.permute.xlu0 %2760 }
 0x83f   :  { %v7052_v0 = vadd.f32 %v6957_v15, %v2761_v59  ;;  %v2814_v15 = vmul.f32 %v7041_v38, %v6395_v12  ;;  %v2830_v39 = vsel %vm151_vm1, %v2811_v60, -inf  ;;  %v2841_v51 = vsel %vm151_vm1, %v2817_v8, -inf }
 0x840   :  { %v2767_v13 = vpop.permute.xlu1 %2766  ;;  %v2831_v21 = vmax.f32 %v2827_v28, %v2830_v39  ;;  %v7116_v28 = vpack.c.bf16 %v7022_v33, %v7019_v14 }
 0x841   :  { %v2815_v62 = vmul.f32 %v7052_v0, %v8020_v17  ;;  %v7070_v16 = vadd.f32 %v6965_v36, %v2767_v13  ;;  %v2837_v49 = vsel %vm151_vm1, %v2814_v15, -inf  ;;  %v8028_v13 = vld [vmem:[#allocation21_spill] sm:$0xff] }
 0x842   :  { %v2769_v26 = vpop.permute.xlu0 %2768  ;;  %v2840_v52 = vmax.f32 %v2837_v49, %v2839_v18  ;;  %v2835_v15 = vmax.f32 %v2831_v21, %v2834_v63  ;;  %v5509_v49 = vld [vmem:[%s7945_s12 + $0x8] sm:$0xff]   ;;  %v5512_v21 = vld [vmem:[%s7946_s13] sm:$0xff]   ;;  %v7149_v18 = vpack.c.bf16 %v7031_v58, %v7036_v50 }
 0x843   :  { %v2818_v36 = vmul.f32 %v7070_v16, %v8023_v43  ;;  %v7085_v37 = vadd.f32 %v6972_v47, %v2769_v26  ;;  %v2838_v44 = vsel %vm151_vm1, %v2815_v62, -inf  ;;  %v8026_v47 = vld [vmem:[#allocation18_spill] sm:$0xff] }
 0x844   :  { %v2771_v25 = vpop.permute.xlu1 %2770  ;;  %v2812_v3 = vmul.f32 %v7074_v32, %v8026_v47  ;;  %v2842_v60 = vmax.f32 %v2838_v44, %v2841_v51  ;;  %v5510_v44 = vld [vmem:[%s7940_s7 + $0x8] sm:$0xff]   ;;  %v8030_v51 = vld [vmem:[#allocation24_spill] sm:$0xff] }
 0x845   :  { %v2819_v42 = vmul.f32 %v7085_v37, %v8025_v10  ;;  %v7095_v30 = vadd.f32 %v6968_v56, %v2771_v25  ;;  %v2843_v61 = vsel %vm151_vm1, %v2818_v36, -inf  ;;  %v2829_v56 = vmax.f32 %v2825_v1, %v2828_v5  ;;  %v5508_v5 = vld [vmem:[%s7945_s12] sm:$0xff]  }
 0x846   :  { %v2773_v48 = vpop.permute.xlu0 %2772  ;;  %v2844_v62 = vmax.f32 %v2840_v52, %v2843_v61  ;;  %v2832_v4 = vsel %vm151_vm1, %v2812_v3, -inf  ;;  %v8029_v25 = vmov 0.0   ;;  %v5511_v3 = vld [vmem:[%s7944_s11] sm:$0xff]   ;;  %v5514_v61 = vld [vmem:[%s7946_s13 + $0x8] sm:$0xff]   ;;  %v7183_v52 = vpack.c.bf16 %v7049_v20, %v7046_v24 }
 0x847   :  { %v2845_v7 = vsel %vm151_vm1, %v2819_v42, -inf  ;;  %v2820_v59 = vmul.f32 %v7095_v30, %v8027_v35  ;;  %v7106_v19 = vadd.f32 %v6977_v55, %v2773_v48  ;;  %v2833_v26 = vmax.f32 %v2829_v56, %v2832_v4  ;;  %v5513_v48 = vld [vmem:[%s7944_s11 + $0x8] sm:$0xff]   ;;  %v7174_v56 = vld [vmem:[%s7947_s14] sm:$0xff]  }
 0x848   :  { %v2846_v27 = vmax.f32 %v2842_v60, %v2845_v7  ;;  %v7139_v42 = vpack.c.bf16 %v7028_v46, %v7025_v23  ;;  %v7165_v7 = vpack.c.bf16 %v7060_v22, %v7074_v32  ;;  %v7187_v60 = vpack.c.bf16 %v7085_v37, %v7070_v16 }
 0x849   :  { %v2847_v34 = vsel %vm151_vm1, %v2820_v59, -inf  ;;  %v2821_v29 = vmul.f32 %v7106_v19, %v8028_v13  ;;  %v2836_v39 = vmax.f32 %v2833_v26, %v2835_v15  ;;  %v7169_v59 = vpack.c.bf16 %v7052_v0, %v7041_v38  ;;  %v8031_v15 = vld [vmem:[#allocation25_spill] sm:$0xff] }
 0x84a   :  { %v2848_v55 = vmax.f32 %v2844_v62, %v2847_v34  ;;  %v7195_v63 = vpack.c.bf16 %v7106_v19, %v7095_v30 }
 0x84b   :  { %v2849_v8 = vsel %vm151_vm1, %v2821_v29, -inf }
 0x84c   :  { %v2850_v2 = vmax.f32 %v2846_v27, %v2849_v8 }
 0x84e   :  { %v2851_v36 = vmax.f32 %v2848_v55, %v2850_v2  ;;  %v5516_v55 = vld [vmem:[%s7941_s8] ss:$0 sm:$0xff] }
 0x850   :  { %v2852_v1 = vpack.c.bf16 %v2851_v36, %v2836_v39  ;;  %v8032_v39 = vld [vmem:[#allocation26_spill] sm:$0xff] }
 0x852   :  { %4983 = vmatmul.mubr.msk.bf16.vlgmr.msra.gmra.mrb[80].mxu1 %vm151_vm1, %v2852_v1  ;;  %4991 = vmatmul.mubr.msk.bf16.vlgmr.msra.gmra.mrb[52].mxu0 %vm151_vm1, %v2852_v1 }
 0x853   :  { %4995 = vmatpush3.bf16.msra.mxu1 %v5507_v6  ;;  %5003 = vmatpush3.bf16.msra.mxu0 %v5508_v5 }
 0x854   :  { %5006 = vmatprep.mubr.msk.bf16.mxu0 %vm151_vm1, %v7116_v28  ;;  %4996 = vmatprep.subr.bf16.mxu1 %v8029_v25 }
 0x855   :  { %5004 = vmatprep.subr.bf16.mxu0 %v5509_v49  ;;  %4998 = vmatprep.mubr.msk.bf16.mxu1 %vm5572_vm0, %v8029_v25 }
 0x857   :  { %4997 = vmatpush3.bf16.msra.mxu1 %v5510_v44  ;;  %5005 = vmatpush3.bf16.msra.mxu0 %v5509_v49 }
 0x858   :  { %5022 = vmatprep.subr.bf16.mxu0 %v5511_v3  ;;  %5042 = vmatprep.subr.bf16.mxu1 %v5512_v21 }
 0x85a   :  { %4999 = vmatmul.mubr.msk.bf16.vlgmr.msra.gmra.mrb[84].mxu1 %vm151_vm1, %v8030_v51  ;;  %5007 = vmatmul.mubr.msk.bf16.vlgmr.msra.gmra.mrb[56].mxu0 %vm151_vm1, %v7139_v42 }
 0x85b   :  { %5010 = vmatprep.mubr.msk.bf16.mxu0 %vm151_vm1, %v7149_v18  ;;  %5023 = vmatpush3.bf16.msra.mxu0 %v5511_v3 }
 0x85c   :  { %5024 = vmatprep.subr.bf16.mxu0 %v5513_v48  ;;  %5043 = vmatpush3.bf16.msra.mxu1 %v5512_v21 }
 0x85d   :  { %5044 = vmatprep.subr.bf16.mxu1 %v5514_v61 }
 0x85f   :  { %5025 = vmatpush3.bf16.msra.mxu0 %v5513_v48 }
 0x860   :  { %5045 = vmatpush3.bf16.msra.mxu1 %v5514_v61 }
 0x861   :  { %5062 = vmatprep.subr.bf16.mxu1 %v7174_v56 }
 0x862   :  { %5011 = vmatmul.mubr.msk.bf16.gmra.mrb[60].mxu0 %vm151_vm1, %v7165_v7 }
 0x863   :  { %5014 = vmatprep.mubr.msk.bf16.mxu0 %vm151_vm1, %v7169_v59 }
 0x86a   :  { %5015 = vmatmul.mubr.msk.bf16.gmra.mrb[64].mxu0 %vm151_vm1, %v7183_v52 }
 0x86b   :  { %5018 = vmatprep.mubr.msk.bf16.mxu0 %vm151_vm1, %v7187_v60 }
 0x872   :  { %5019 = vmatmul.mubr.msk.bf16.gmra.mrb[68].mxu0 %vm151_vm1, %v7195_v63 }
 0x925   :  { %v2935_v34 = vpop.f32.mrb[80].mxu1  ;;  %v2990_v29 = vpop.f32.mrb[52].mxu0 }
 0x926   :  { %v2936_v62 = vadd.f32 %v2935_v34, %v8031_v15  ;;  %v4984_v27 = vpop.f32.mrb[81].mxu1  ;;  %v4992_v4 = vpop.f32.mrb[53].mxu0 }
 0x927   :  { %v2938_v8 = vpop.f32.mrb[82].mxu1  ;;  %v2993_v26 = vpop.f32.mrb[54].mxu0 }
 0x928   :  { %v2942_v2 = vadd.f32 %v5516_v55, %v2936_v62  ;;  %v2939_v36 = vadd.f32 %v2938_v8, %v8032_v39  ;;  %v4985_v1 = vpop.f32.mrb[83].mxu1  ;;  %v4993_v6 = vpop.f32.mrb[55].mxu0  ;;  %v5517_v62 = vld [vmem:[%s7943_s10] ss:$0 sm:$0xff] }
 0x929   :  { %v5518_v8 = vld [vmem:[%s7942_s9] ss:$0 sm:$0xff] }
 0x92a   :  { %v4538_v5 = vmul.f32 -1.442695, %v2942_v2  ;;  %v2943_v25 = vadd.f32 %v5516_v55, %v2939_v36  ;;  %v2991_v55 = vadd.f32 %v5518_v8, %v2990_v29  ;;  %v2994_v1 = vadd.f32 %v5518_v8, %v2993_v26  ;;  %v8035_v8 = vld [vmem:[#allocation8_spill] sm:$0xff] }
 0x92c   :  { %5377 = vpow2.f32 %v4538_v5  ;;  %v4539_v49 = vmul.f32 -1.442695, %v2943_v25 }
 0x92d   :  { %v3031_v44 = vpop.f32.mrb[84].mxu1 }
 0x92e   :  { %5379 = vpow2.f32 %v4539_v49  ;;  %v5000_v3 = vpop.f32.mrb[85].mxu1  ;;  %v3032_v27 = vadd.f32 %v5517_v62, %v3031_v44  ;;  %v8034_v44 = vld [vmem:[#allocation23_spill] sm:$0xff] }
 0x92f   :  { %v3034_v21 = vpop.f32.mrb[86].mxu1  ;;  %v8033_v3 = vld [vmem:[#allocation22_spill] sm:$0xff] }
 0x930   :  { %v5001_v51 = vpop.f32.mrb[87].mxu1  ;;  %v3035_v39 = vadd.f32 %v5517_v62, %v3034_v21 }
 0x936   :  { %v5378_v48 = vpop.eup %5377 }
 0x937   :  { %v2950_v61 = vadd.f32 1.0, %v5378_v48 }
 0x938   :  { %v5380_v34 = vpop.eup %5379 }
 0x939   :  { %5381 = vrcp.f32 %v2950_v61  ;;  %v2951_v15 = vadd.f32 1.0, %v5380_v34 }
 0x93b   :  { %5383 = vrcp.f32 %v2951_v15 }
 0x943   :  { %v5382_v4 = vpop.eup %5381 }
 0x944   :  { %v3038_v2 = vmul.f32 %v5382_v4, %v3032_v27 }
 0x945   :  { %v5384_v36 = vpop.eup %5383 }
 0x946   :  { %v3040_v6 = vadd.f32 %v3038_v2, %v2991_v55  ;;  %v3039_v5 = vmul.f32 %v5384_v36, %v3035_v39  ;;  %v8036_v39 = vld [vmem:[#allocation10_spill] sm:$0xff] }
 0x948   :  { %5385 = vtanh.f32 %v3040_v6  ;;  %v3041_v25 = vadd.f32 %v3039_v5, %v2994_v1  ;;  %v8037_v6 = vld [vmem:[#allocation9_spill] sm:$0xff] }
 0x94a   :  { %5387 = vtanh.f32 %v3041_v25 }
 0x952   :  { %v5386_v49 = vpop.eup %5385 }
 0x953   :  { %v3044_v51 = vsub.f32 %v8033_v3, %v5386_v49 }
 0x954   :  { %v5388_v48 = vpop.eup %5387 }
 0x955   :  { %3048 = vrot.lane.b32.xlu1 %v3044_v51, %s5574_s22  ;;  %v3045_v61 = vsub.f32 %v8034_v44, %v5388_v48  ;;  %v8038_v44 = vld [vmem:[#allocation11_spill] sm:$0xff] }
 0x957   :  { %3050 = vrot.lane.b32.xlu0 %v3045_v61, %s5574_s22 }
 0x9c7   :  { %v3049_v29 = vpop.permute.xlu1 %3048 }
 0x9c8   :  { %v3054_v34 = vmul.f32 %v5382_v4, %v3049_v29 }
 0x9c9   :  { %v3051_v21 = vpop.permute.xlu0 %3050 }
 0x9ca   :  { %v3055_v15 = vmul.f32 %v5384_v36, %v3051_v21  ;;  %3058 = vrot.lane.b32.xlu1 %v3054_v34, %s5575_s2 }
 0x9cc   :  { %3060 = vrot.lane.b32.xlu0 %v3055_v15, %s5575_s2 }
 0xa3c   :  { %v3059_v26 = vpop.permute.xlu1 %3058 }
 0xa3d   :  { %v3064_v62 = vadd.f32 %v5386_v49, %v3059_v26 }
 0xa3e   :  { %v3061_v27 = vpop.permute.xlu0 %3060 }
 0xa3f   :  { %v3066_v55 = vmul.f32 %v3064_v62, %v8035_v8  ;;  %v3065_v2 = vadd.f32 %v5388_v48, %v3061_v27 }
 0xa41   :  { %4374 = vst.msk [vmem:[#allocation4] sm:$0xff] %vm151_vm1, %v3066_v55  ;;  %v7219_v1 = vmul.f32 %v3065_v2, %v8036_v39  ;;  %v3077_v5 = vrot.slane %v3066_v55, %v8037_v6  ;;  %v3070_v4 = vcombine.high %v3066_v55, %v3066_v55 }
 0xa43   :  { %4375 = vst.msk [vmem:[#allocation4 + $0x8] sm:$0xff] %vm151_vm1, %v7219_v1  ;;  %v3085_v36 = vcombine.high %v3077_v5, %v3077_v5  ;;  %v3093_v25 = vrot.slane %v3077_v5, %v8037_v6  ;;  %v3084_v49 = vrot.slane %v3070_v4, %v8037_v6  ;;  %v3126_v3 = vrot.slane %v7219_v1, %v8037_v6 }
 0xa44   :  { %v3119_v15 = vcombine.high %v7219_v1, %v7219_v1 }
 0xa45   :  { %v3107_v51 = vrot.slane %v3085_v36, %v8037_v6  ;;  %v3115_v48 = vcombine.high %v3093_v25, %v3093_v25  ;;  %v3171_v61 = vrot.slane %v3093_v25, %v8038_v44  ;;  %v3086_v29 = vcombine.high %v3084_v49, %v3084_v49 }
 0xa46   :  { %v3100_v34 = vrot.slane %v3084_v49, %v8037_v6  ;;  %v3134_v21 = vcombine.high %v3126_v3, %v3126_v3  ;;  %v3133_v13 = vrot.slane %v3119_v15, %v8037_v6 }
 0xa47   :  { %v3117_v26 = vcombine.high %v3107_v51, %v3107_v51  ;;  %v3175_v62 = vrot.slane %v3107_v51, %v8038_v44  ;;  %v3179_v27 = vrot.slane %v3115_v48, %v8038_v44  ;;  %v3114_v8 = vrot.slane %v3086_v29, %v8037_v6 }
 0xa48   :  { %v3187_v2 = vrot.slane %v3100_v34, %v8038_v44  ;;  %v3248_v5 = vmul.f32 %v3171_v61, %v3066_v55  ;;  %v3156_v49 = vrot.slane %v3134_v21, %v8037_v6  ;;  %v3116_v35 = vcombine.high %v3100_v34, %v3100_v34 }
 0xa49   :  { %v3183_v39 = vrot.slane %v3117_v26, %v8038_v44  ;;  %v3249_v4 = vmul.f32 %v3175_v62, %v3066_v55  ;;  %v3191_v36 = vrot.slane %v3114_v8, %v8038_v44  ;;  %v3118_v25 = vcombine.high %v3114_v8, %v3114_v8 }
 0xa4a   :  { %v3250_v43 = vmul.f32 %v3179_v27, %v3066_v55  ;;  %v3252_v48 = vmul.f32 %v3187_v2, %v3066_v55  ;;  %v3142_v29 = vrot.slane %v3126_v3, %v8037_v6  ;;  %v3207_v21 = vrot.slane %v3156_v49, %v8038_v44 }
 0xa4b   :  { %v3264_v10 = vpack.c.bf16 %v3249_v4, %v3248_v5  ;;  %v3251_v51 = vmul.f32 %v3183_v39, %v3066_v55  ;;  %v3253_v57 = vmul.f32 %v3191_v36, %v3066_v55  ;;  %v3199_v26 = vrot.slane %v3118_v25, %v8038_v44 }
 0xa4c   :  { %v3135_v8 = vcombine.high %v3133_v13, %v3133_v13  ;;  %v3195_v34 = vrot.slane %v3116_v35, %v8038_v44  ;;  %v3203_v3 = vrot.slane %v3142_v29, %v8038_v44  ;;  %v3257_v15 = vmul.f32 %v3207_v21, %v7219_v1 }
 0xa4d   :  { %5026 = vmatprep.mubr.msk.bf16.mxu0 %vm151_vm1, %v3264_v10  ;;  %5046 = vmatprep.mubr.msk.bf16.mxu1 %vm151_vm1, %v3264_v10  ;;  %v3265_v61 = vpack.c.bf16 %v3251_v51, %v3250_v43  ;;  %v3266_v62 = vpack.c.bf16 %v3253_v57, %v3252_v48  ;;  %v3255_v43 = vmul.f32 %v3199_v26, %v3066_v55  ;;  %v5519_v57 = vld [vmem:[%s7947_s14 + $0x8] sm:$0xff]  }
 0xa4e   :  { %v3166_v10 = vcombine.high %v3156_v49, %v3156_v49  ;;  %v3163_v27 = vrot.slane %v3135_v8, %v8037_v6  ;;  %v3254_v35 = vmul.f32 %v3195_v34, %v3066_v55  ;;  %v3164_v2 = vcombine.high %v3142_v29, %v3142_v29 }
 0xa4f   :  { %5027 = vmatmul.mubr.msk.bf16.vlgmr.msra.gmra.mrb[56].mxu0 %vm151_vm1, %v3265_v61  ;;  %5047 = vmatmul.mubr.msk.bf16.vlgmr.msra.gmra.mrb[88].mxu1 %vm151_vm1, %v3265_v61  ;;  %v3149_v39 = vrot.slane %v3133_v13, %v8037_v6 }
 0xa50   :  { %5063 = vmatpush3.bf16.msra.mxu1 %v7174_v56  ;;  %5030 = vmatprep.mubr.msk.bf16.mxu0 %vm151_vm1, %v3266_v62  ;;  %v3256_v56 = vmul.f32 %v3203_v3, %v7219_v1  ;;  %v3267_v5 = vpack.c.bf16 %v3255_v43, %v3254_v35  ;;  %v3215_v4 = vrot.slane %v3166_v10, %v8038_v44 }
 0xa51   :  { %5050 = vmatprep.mubr.msk.bf16.mxu1 %vm151_vm1, %v3266_v62  ;;  %5064 = vmatprep.subr.bf16.mxu1 %v5519_v57  ;;  %v3223_v25 = vrot.slane %v3163_v27, %v8038_v44  ;;  %v3211_v49 = vrot.slane %v3164_v2, %v8038_v44  ;;  %v3219_v55 = vrot.slane %v3149_v39, %v8038_v44 }
 0xa52   :  { %v3268_v36 = vpack.c.bf16 %v3257_v15, %v3256_v56  ;;  %v3259_v13 = vmul.f32 %v3215_v4, %v7219_v1  ;;  %v3167_v6 = vcombine.high %v3163_v27, %v3163_v27  ;;  %v3165_v29 = vcombine.high %v3149_v39, %v3149_v39 }
 0xa53   :  { %v3261_v51 = vmul.f32 %v3223_v25, %v7219_v1  ;;  %v3258_v48 = vmul.f32 %v3211_v49, %v7219_v1  ;;  %v3260_v61 = vmul.f32 %v3219_v55, %v7219_v1 }
 0xa54   :  { %5065 = vmatpush3.bf16.msra.mxu1 %v5519_v57  ;;  %v3231_v62 = vrot.slane %v3167_v6, %v8038_v44  ;;  %v3227_v8 = vrot.slane %v3165_v29, %v8038_v44 }
 0xa55   :  { %v3269_v26 = vpack.c.bf16 %v3259_v13, %v3258_v48  ;;  %v3270_v21 = vpack.c.bf16 %v3261_v51, %v3260_v61 }
 0xa56   :  { %v3263_v34 = vmul.f32 %v3231_v62, %v7219_v1  ;;  %v3262_v3 = vmul.f32 %v3227_v8, %v7219_v1 }
 0xa57   :  { %5031 = vmatmul.mubr.msk.bf16.gmra.mrb[60].mxu0 %vm151_vm1, %v3267_v5  ;;  %5051 = vmatmul.mubr.msk.bf16.gmra.mrb[92].mxu1 %vm151_vm1, %v3267_v5 }
 0xa58   :  { %5034 = vmatprep.mubr.msk.bf16.mxu0 %vm151_vm1, %v3268_v36  ;;  %5054 = vmatprep.mubr.msk.bf16.mxu1 %vm151_vm1, %v3268_v36  ;;  %v3271_v43 = vpack.c.bf16 %v3263_v34, %v3262_v3 }
 0xa5f   :  { %5035 = vmatmul.mubr.msk.bf16.gmra.mrb[64].mxu0 %vm151_vm1, %v3269_v26  ;;  %5055 = vmatmul.mubr.msk.bf16.gmra.mrb[96].mxu1 %vm151_vm1, %v3269_v26 }
 0xa60   :  { %5038 = vmatprep.mubr.msk.bf16.mxu0 %vm151_vm1, %v3270_v21  ;;  %5058 = vmatprep.mubr.msk.bf16.mxu1 %vm151_vm1, %v3270_v21 }
 0xa67   :  { %5039 = vmatmul.mubr.msk.bf16.gmra.mrb[68].mxu0 %vm151_vm1, %v3271_v43  ;;  %5059 = vmatmul.mubr.msk.bf16.gmra.mrb[100].mxu1 %vm151_vm1, %v3271_v43 }
 0xa68   :  { %5066 = vmatprep.mubr.msk.bf16.mxu1 %vm151_vm1, %v7116_v28 }
 0xa6f   :  { %5067 = vmatmul.mubr.msk.bf16.vlgmr.msra.gmra.mrb[104].mxu1 %vm151_vm1, %v7139_v42 }
 0xa70   :  { %5070 = vmatprep.mubr.msk.bf16.mxu1 %vm151_vm1, %v7149_v18  ;;  %v7303_v18 = vld [vmem:[%s7948_s15] ss:$0 sm:$0xff] }
 0xa77   :  { %5071 = vmatmul.mubr.msk.bf16.gmra.mrb[108].mxu1 %vm151_vm1, %v7165_v7 }
 0xa78   :  { %5074 = vmatprep.mubr.msk.bf16.mxu1 %vm151_vm1, %v7169_v59 }
 0xa7f   :  { %5075 = vmatmul.mubr.msk.bf16.gmra.mrb[112].mxu1 %vm151_vm1, %v7183_v52 }
 0xa80   :  { %5078 = vmatprep.mubr.msk.bf16.mxu1 %vm151_vm1, %v7187_v60 }
 0xa87   :  { %5079 = vmatmul.mubr.msk.bf16.gmra.mrb[116].mxu1 %vm151_vm1, %v7195_v63 }
 0xb22   :  { %v5028_v28 = vpop.f32.mrb[56].mxu0  ;;  %v7298_v42 = vpop.f32.mrb[88].mxu1 }
 0xb23   :  { %v3524_v7 = vadd.f32 %v7303_v18, %v5028_v28  ;;  %v3459_v59 = vpop.f32.mrb[57].mxu0  ;;  %v7306_v1 = vpop.f32.mrb[89].mxu1 }
 0xb24   :  { %v3522_v52 = vadd.f32 %v7303_v18, %v3459_v59  ;;  %v5029_v44 = vpop.f32.mrb[58].mxu0  ;;  %v7309_v60 = vpop.f32.mrb[90].mxu1 }
 0xb25   :  { %v4560_v57 = vmul.f32 -1.442695, %v3524_v7  ;;  %v3525_v63 = vadd.f32 %v7303_v18, %v5029_v44  ;;  %v3462_v10 = vpop.f32.mrb[59].mxu0  ;;  %v7312_v15 = vpop.f32.mrb[91].mxu1 }
 0xb26   :  { %v4558_v27 = vmul.f32 -1.442695, %v3522_v52  ;;  %v3523_v35 = vadd.f32 %v7303_v18, %v3462_v10 }
 0xb27   :  { %5389 = vpow2.f32 %v4560_v57  ;;  %v4561_v2 = vmul.f32 -1.442695, %v3525_v63 }
 0xb28   :  { %5391 = vpow2.f32 %v4558_v27  ;;  %v4559_v56 = vmul.f32 -1.442695, %v3523_v35 }
 0xb29   :  { %5393 = vpow2.f32 %v4561_v2 }
 0xb2a   :  { %v5032_v39 = vpop.f32.mrb[60].mxu0  ;;  %v7315_v5 = vpop.f32.mrb[92].mxu1  ;;  %5395 = vpow2.f32 %v4559_v56 }
 0xb2b   :  { %v3528_v4 = vadd.f32 %v7303_v18, %v5032_v39  ;;  %v3475_v36 = vpop.f32.mrb[61].mxu0  ;;  %v7318_v25 = vpop.f32.mrb[93].mxu1 }
 0xb2c   :  { %v3526_v49 = vadd.f32 %v7303_v18, %v3475_v36  ;;  %v5033_v55 = vpop.f32.mrb[62].mxu0  ;;  %v7321_v13 = vpop.f32.mrb[94].mxu1 }
 0xb2d   :  { %v4564_v6 = vmul.f32 -1.442695, %v3528_v4  ;;  %v3529_v51 = vadd.f32 %v7303_v18, %v5033_v55  ;;  %v3478_v48 = vpop.f32.mrb[63].mxu0  ;;  %v7324_v29 = vpop.f32.mrb[95].mxu1 }
 0xb2e   :  { %v4562_v61 = vmul.f32 -1.442695, %v3526_v49  ;;  %v3527_v26 = vadd.f32 %v7303_v18, %v3478_v48 }
 0xb2f   :  { %5397 = vpow2.f32 %v4564_v6  ;;  %v4565_v62 = vmul.f32 -1.442695, %v3529_v51 }
 0xb30   :  { %5399 = vpow2.f32 %v4562_v61  ;;  %v4563_v21 = vmul.f32 -1.442695, %v3527_v26 }
 0xb31   :  { %v5390_v8 = vpop.eup %5389  ;;  %5401 = vpow2.f32 %v4565_v62 }
 0xb32   :  { %v5392_v34 = vpop.eup %5391  ;;  %v3588_v3 = vadd.f32 1.0, %v5390_v8  ;;  %v5036_v43 = vpop.f32.mrb[64].mxu0  ;;  %5403 = vpow2.f32 %v4563_v21 }
 0xb33   :  { %v7327_v28 = vpop.f32.mrb[96].mxu1  ;;  %v3586_v7 = vadd.f32 1.0, %v5392_v34  ;;  %v3532_v59 = vadd.f32 %v7303_v18, %v5036_v43  ;;  %v3491_v52 = vpop.f32.mrb[65].mxu0 }
 0xb34   :  { %v7330_v44 = vpop.f32.mrb[97].mxu1  ;;  %v5394_v57 = vpop.eup %5393  ;;  %v3530_v63 = vadd.f32 %v7303_v18, %v3491_v52  ;;  %5405 = vrcp.f32 %v3588_v3 }
 0xb35   :  { %v5037_v10 = vpop.f32.mrb[66].mxu0  ;;  %v7333_v27 = vpop.f32.mrb[98].mxu1  ;;  %v4568_v35 = vmul.f32 -1.442695, %v3532_v59  ;;  %5407 = vrcp.f32 %v3586_v7  ;;  %v3589_v55 = vadd.f32 1.0, %v5394_v57 }
 0xb36   :  { %v3533_v2 = vadd.f32 %v7303_v18, %v5037_v10  ;;  %v3494_v56 = vpop.f32.mrb[67].mxu0  ;;  %v7336_v39 = vpop.f32.mrb[99].mxu1  ;;  %v4566_v36 = vmul.f32 -1.442695, %v3530_v63 }
 0xb37   :  { %v5396_v4 = vpop.eup %5395  ;;  %v3531_v49 = vadd.f32 %v7303_v18, %v3494_v56  ;;  %5409 = vpow2.f32 %v4568_v35 }
 0xb38   :  { %v4569_v6 = vmul.f32 -1.442695, %v3533_v2  ;;  %v3587_v61 = vadd.f32 1.0, %v5396_v4  ;;  %5411 = vpow2.f32 %v4566_v36 }
 0xb39   :  { %v4567_v51 = vmul.f32 -1.442695, %v3531_v49  ;;  %v5398_v48 = vpop.eup %5397 }
 0xb3a   :  { %v5400_v26 = vpop.eup %5399  ;;  %v3592_v62 = vadd.f32 1.0, %v5398_v48  ;;  %5413 = vpow2.f32 %v4569_v6  ;;  %v5040_v21 = vpop.f32.mrb[68].mxu0 }
 0xb3b   :  { %v7339_v8 = vpop.f32.mrb[100].mxu1  ;;  %v5402_v34 = vpop.eup %5401  ;;  %5415 = vrcp.f32 %v3589_v55  ;;  %v3590_v3 = vadd.f32 1.0, %v5400_v26  ;;  %v3536_v43 = vadd.f32 %v7303_v18, %v5040_v21 }
 0xb3c   :  { %v3507_v59 = vpop.f32.mrb[69].mxu0  ;;  %v7342_v7 = vpop.f32.mrb[101].mxu1  ;;  %5417 = vpow2.f32 %v4567_v51  ;;  %v3593_v36 = vadd.f32 1.0, %v5402_v34 }
 0xb3d   :  { %v3534_v52 = vadd.f32 %v7303_v18, %v3507_v59  ;;  %v5041_v57 = vpop.f32.mrb[70].mxu0  ;;  %v7345_v63 = vpop.f32.mrb[102].mxu1  ;;  %5419 = vrcp.f32 %v3587_v61  ;;  %v4572_v10 = vmul.f32 -1.442695, %v3536_v43 }
 0xb3e   :  { %v3537_v35 = vadd.f32 %v7303_v18, %v5041_v57  ;;  %v3510_v2 = vpop.f32.mrb[71].mxu0  ;;  %v7348_v56 = vpop.f32.mrb[103].mxu1  ;;  %5421 = vrcp.f32 %v3592_v62 }
 0xb3f   :  { %v5404_v4 = vpop.eup %5403  ;;  %v4570_v49 = vmul.f32 -1.442695, %v3534_v52  ;;  %v3535_v55 = vadd.f32 %v7303_v18, %v3510_v2  ;;  %5423 = vrcp.f32 %v3590_v3  ;;  %v7358_v18 = vld [vmem:[%s7950_s17] ss:$0 sm:$0xff]  ;;  %s5578_s17 = smov [#allocation4]  }
 0xb40   :  { %v4573_v6 = vmul.f32 -1.442695, %v3537_v35  ;;  %v7351_v51 = vpop.eup %5405  ;;  %5425 = vpow2.f32 %v4572_v10  ;;  %v3591_v61 = vadd.f32 1.0, %v5404_v4  ;;  %v7367_v4 = vld [vmem:[%s7949_s16] ss:$0 sm:$0xff]  ;;  %s5577_s16 = smov 64  }
 0xb41   :  { %v4571_v48 = vmul.f32 -1.442695, %v3535_v55  ;;  %v7353_v26 = vpop.eup %5407  ;;  %5427 = vpow2.f32 %v4570_v49  ;;  %v3672_v17 = vadd.f32 %v7367_v4, %v7312_v15  ;;  %v3693_v15 = vadd.f32 %v7367_v4, %v7315_v5 }
 0xb42   :  { %v5410_v21 = vpop.eup %5409  ;;  %5429 = vrcp.f32 %v3593_v36  ;;  %v5068_v43 = vpop.f32.mrb[104].mxu1  ;;  %v3677_v36 = vadd.f32 %v7367_v4, %v7298_v42  ;;  %v3680_v42 = vadd.f32 %v7367_v4, %v7309_v60 }
 0xb43   :  { %v5412_v59 = vpop.eup %5411  ;;  %v3596_v57 = vadd.f32 1.0, %v5410_v21  ;;  %5431 = vpow2.f32 %v4573_v6  ;;  %v3774_v62 = vadd.f32 %v7358_v18, %v5068_v43  ;;  %v3765_v34 = vpop.f32.mrb[105].mxu1  ;;  %v3669_v21 = vadd.f32 %v7367_v4, %v7306_v1 }
 0xb44   :  { %v5414_v3 = vpop.eup %5413  ;;  %v3594_v52 = vadd.f32 1.0, %v5412_v59  ;;  %5433 = vpow2.f32 %v4571_v48  ;;  %v3766_v10 = vadd.f32 %v7358_v18, %v3765_v34  ;;  %v5069_v35 = vpop.f32.mrb[106].mxu1 }
 0xb45   :  { %v7362_v2 = vpop.eup %5415  ;;  %5435 = vrcp.f32 %v3591_v61  ;;  %v3830_v49 = vmul.f32 %v7351_v51, %v3774_v62  ;;  %v3777_v55 = vadd.f32 %v7358_v18, %v5069_v35  ;;  %v3768_v6 = vpop.f32.mrb[107].mxu1  ;;  %v3597_v43 = vadd.f32 1.0, %v5414_v3 }
 0xb46   :  { %v5418_v48 = vpop.eup %5417  ;;  %v3828_v59 = vmul.f32 %v7353_v26, %v3766_v10  ;;  %v3769_v34 = vadd.f32 %v7358_v18, %v3768_v6  ;;  %5437 = vrcp.f32 %v3596_v57 }
 0xb47   :  { %v7377_v47 = vpop.eup %5419  ;;  %v3846_v61 = vadd.f32 %v3830_v49, %v3677_v36  ;;  %v3831_v62 = vmul.f32 %v7362_v2, %v3777_v55  ;;  %5439 = vrcp.f32 %v3594_v52  ;;  %v3595_v6 = vadd.f32 1.0, %v5418_v48 }
 0xb48   :  { %v7382_v35 = vpop.eup %5421  ;;  %v3844_v1 = vadd.f32 %v3828_v59, %v3669_v21  ;;  %v3829_v3 = vmul.f32 %v7377_v47, %v3769_v34 }
 0xb49   :  { %v7387_v10 = vpop.eup %5423  ;;  %5441 = vtanh.f32 %v3846_v61  ;;  %v3847_v12 = vadd.f32 %v3831_v62, %v3680_v42  ;;  %v3685_v61 = vadd.f32 %v7367_v4, %v7318_v25 }
 0xb4a   :  { %v5426_v31 = vpop.eup %5425  ;;  %5443 = vrcp.f32 %v3597_v43  ;;  %v3845_v60 = vadd.f32 %v3829_v3, %v3672_v17  ;;  %v5072_v57 = vpop.f32.mrb[108].mxu1 }
 0xb4b   :  { %v5428_v36 = vpop.eup %5427  ;;  %5445 = vtanh.f32 %v3844_v1  ;;  %v3790_v49 = vadd.f32 %v7358_v18, %v5072_v57  ;;  %v3781_v55 = vpop.f32.mrb[109].mxu1  ;;  %v3600_v59 = vadd.f32 1.0, %v5426_v31  ;;  %v3688_v57 = vadd.f32 %v7367_v4, %v7324_v29 }
 0xb4c   :  { %v7390_v9 = vpop.eup %5429  ;;  %5447 = vtanh.f32 %v3845_v60  ;;  %v3782_v52 = vadd.f32 %v7358_v18, %v3781_v55  ;;  %v5073_v48 = vpop.f32.mrb[110].mxu1  ;;  %v3598_v62 = vadd.f32 1.0, %v5428_v36 }
 0xb4d   :  { %v5432_v21 = vpop.eup %5431  ;;  %5449 = vrcp.f32 %v3595_v6  ;;  %v3834_v17 = vmul.f32 %v7382_v35, %v3790_v49  ;;  %v3793_v43 = vadd.f32 %v7358_v18, %v5073_v48  ;;  %v3784_v34 = vpop.f32.mrb[111].mxu1  ;;  %v3696_v6 = vadd.f32 %v7367_v4, %v7321_v13 }
 0xb4e   :  { %v5434_v42 = vpop.eup %5433  ;;  %v3832_v1 = vmul.f32 %v7387_v10, %v3782_v52  ;;  %v3785_v5 = vadd.f32 %v7358_v18, %v3784_v34  ;;  %5451 = vtanh.f32 %v3847_v12  ;;  %v3601_v49 = vadd.f32 1.0, %v5432_v21 }
 0xb4f   :  { %v7401_v3 = vpop.eup %5435  ;;  %v7405_v31 = vadd.f32 %v3834_v17, %v3693_v15  ;;  %v3835_v60 = vmul.f32 %v7390_v9, %v3793_v43  ;;  %5453 = vrcp.f32 %v3600_v59  ;;  %v3599_v52 = vadd.f32 1.0, %v5434_v42 }
 0xb50   :  { %v3848_v25 = vadd.f32 %v3832_v1, %v3685_v61  ;;  %v3833_v36 = vmul.f32 %v7401_v3, %v3785_v5  ;;  %v7411_v55 = vpop.eup %5437  ;;  %5455 = vrcp.f32 %v3598_v62  ;;  %v3709_v62 = vadd.f32 %v7367_v4, %v7327_v28 }
 0xb51   :  { %v7413_v48 = vadd.f32 %v3835_v60, %v3696_v6  ;;  %v7415_v34 = vpop.eup %5439 }
 0xb52   :  { %v3849_v12 = vadd.f32 %v3833_v36, %v3688_v57  ;;  %v5076_v13 = vpop.f32.mrb[112].mxu1  ;;  %5457 = vtanh.f32 %v3848_v25  ;;  %v3701_v57 = vadd.f32 %v7367_v4, %v7330_v44  ;;  %v3704_v44 = vadd.f32 %v7367_v4, %v7336_v39 }
 0xb53   :  { %v7417_v15 = vpop.eup %5441  ;;  %v3806_v29 = vadd.f32 %v7358_v18, %v5076_v13  ;;  %v3797_v21 = vpop.f32.mrb[113].mxu1  ;;  %5459 = vrcp.f32 %v3601_v49  ;;  %v3712_v49 = vadd.f32 %v7367_v4, %v7333_v27 }
 0xb54   :  { %v7420_v17 = vpop.eup %5443  ;;  %v3798_v43 = vadd.f32 %v7358_v18, %v3797_v21  ;;  %v5077_v59 = vpop.f32.mrb[114].mxu1  ;;  %v3878_v42 = vsub.f32 %v7025_v23, %v7417_v15  ;;  %5461 = vrcp.f32 %v3599_v52 }
 0xb55   :  { %v7425_v61 = vpop.eup %5445  ;;  %v3838_v1 = vmul.f32 %v7411_v55, %v3806_v29  ;;  %v3809_v5 = vadd.f32 %v7358_v18, %v5077_v59  ;;  %v3800_v6 = vpop.f32.mrb[115].mxu1  ;;  %5463 = vtanh.f32 %v3849_v12 }
 0xb56   :  { %v7431_v60 = vpop.eup %5447  ;;  %v3836_v23 = vmul.f32 %v7415_v34, %v3798_v43  ;;  %v3801_v25 = vadd.f32 %v7358_v18, %v3800_v6  ;;  %3912 = vrot.lane.b32.xlu1 %v3878_v42, %s5574_s22  ;;  %v3876_v21 = vsub.f32 %v7019_v14, %v7425_v61 }
 0xb57   :  { %v7440_v28 = vpop.eup %5449  ;;  %v3854_v36 = vadd.f32 %v3838_v1, %v3709_v62  ;;  %v3839_v52 = vmul.f32 %v7420_v17, %v3809_v5  ;;  %v3877_v13 = vsub.f32 %v7022_v33, %v7431_v60 }
 0xb58   :  { %v3852_v29 = vadd.f32 %v3836_v23, %v3701_v57  ;;  %v3837_v27 = vmul.f32 %v7440_v28, %v3801_v25  ;;  %v7450_v43 = vpop.eup %5451 }
 0xb59   :  { %5465 = vtanh.f32 %v3854_v36  ;;  %v3855_v59 = vadd.f32 %v3839_v52, %v3712_v49  ;;  %3910 = vrot.lane.b32.xlu0 %v3877_v13, %s5574_s22  ;;  %v7454_v33 = vpop.eup %5453  ;;  %v3879_v6 = vsub.f32 %v7028_v46, %v7450_v43  ;;  %v3725_v49 = vadd.f32 %v7367_v4, %v7339_v8 }
 0xb5a   :  { %5467 = vtanh.f32 %v3852_v29  ;;  %v3853_v12 = vadd.f32 %v3837_v27, %v3704_v44  ;;  %v5080_v42 = vpop.f32.mrb[116].mxu1  ;;  %3908 = vrot.lane.b32.xlu1 %v3876_v21, %s5574_s22  ;;  %v7457_v1 = vpop.eup %5455  ;;  %v3717_v13 = vadd.f32 %v7367_v4, %v7342_v7  ;;  %v3728_v8 = vadd.f32 %v7367_v4, %v7345_v63 }
 0xb5b   :  { %5469 = vtanh.f32 %v3855_v59  ;;  %v3822_v39 = vadd.f32 %v7358_v18, %v5080_v42  ;;  %v3813_v62 = vpop.f32.mrb[117].mxu1  ;;  %v3720_v7 = vadd.f32 %v7367_v4, %v7348_v56 }
 0xb5c   :  { %v3814_v14 = vadd.f32 %v7358_v18, %v3813_v62  ;;  %v5081_v5 = vpop.f32.mrb[118].mxu1  ;;  %v7462_v57 = vpop.eup %5457  ;;  %5471 = vtanh.f32 %v7405_v31 }
 0xb5d   :  { %v3842_v23 = vmul.f32 %v7454_v33, %v3822_v39  ;;  %v3825_v25 = vadd.f32 %v7358_v18, %v5081_v5  ;;  %v3816_v36 = vpop.f32.mrb[119].mxu1  ;;  %v7468_v52 = vpop.eup %5459  ;;  %5473 = vtanh.f32 %v3853_v12 }
 0xb5e   :  { %v3840_v44 = vmul.f32 %v7457_v1, %v3814_v14  ;;  %v3817_v46 = vadd.f32 %v7358_v18, %v3816_v36  ;;  %3914 = vrot.lane.b32.xlu1 %v3879_v6, %s5574_s22  ;;  %v7476_v29 = vpop.eup %5461  ;;  %v3880_v18 = vsub.f32 %v7036_v50, %v7462_v57  ;;  %5475 = vtanh.f32 %v7413_v48 }
 0xb5f   :  { %v3858_v27 = vadd.f32 %v3842_v23, %v3725_v49  ;;  %v3843_v21 = vmul.f32 %v7468_v52, %v3825_v25  ;;  %v7486_v42 = vpop.eup %5463 }
 0xb60   :  { %v3856_v59 = vadd.f32 %v3840_v44, %v3717_v13  ;;  %v3841_v31 = vmul.f32 %v7476_v29, %v3817_v46  ;;  %v3881_v4 = vsub.f32 %v7031_v58, %v7486_v42 }
 0xb61   :  { %v3859_v39 = vadd.f32 %v3843_v21, %v3728_v8  ;;  %5477 = vtanh.f32 %v3858_v27 }
 0xb62   :  { %v3857_v62 = vadd.f32 %v3841_v31, %v3720_v7  ;;  %3916 = vrot.lane.b32.xlu1 %v3880_v18, %s5574_s22  ;;  %5479 = vtanh.f32 %v3856_v59 }
 0xb63   :  { %v7490_v63 = vpop.eup %5465 }
 0xb64   :  { %v7492_v12 = vpop.eup %5467  ;;  %v3886_v56 = vsub.f32 %v7046_v24, %v7490_v63  ;;  %5481 = vtanh.f32 %v3857_v62 }
 0xb65   :  { %v7498_v50 = vpop.eup %5469  ;;  %v3884_v5 = vsub.f32 %v7041_v38, %v7492_v12  ;;  %5483 = vtanh.f32 %v3859_v39 }
 0xb66   :  { %3928 = vrot.lane.b32.xlu0 %v3886_v56, %s5574_s22  ;;  %3918 = vrot.lane.b32.xlu1 %v3881_v4, %s5574_s22  ;;  %v7502_v48 = vpop.eup %5471  ;;  %v3887_v14 = vsub.f32 %v7049_v20, %v7498_v50 }
 0xb67   :  { %v7508_v6 = vpop.eup %5473  ;;  %v3882_v49 = vsub.f32 %v7074_v32, %v7502_v48 }
 0xb68   :  { %v7512_v58 = vpop.eup %5475  ;;  %v3885_v24 = vsub.f32 %v7052_v0, %v7508_v6 }
 0xb69   :  { %v3883_v20 = vsub.f32 %v7060_v22, %v7512_v58 }
 0xb6a   :  { %3930 = vrot.lane.b32.xlu0 %v3887_v14, %s5574_s22  ;;  %3924 = vrot.lane.b32.xlu1 %v3884_v5, %s5574_s22 }
 0xb6b   :  { %v7518_v23 = vpop.eup %5477 }
 0xb6c   :  { %v3890_v38 = vsub.f32 %v7095_v30, %v7518_v23  ;;  %v7526_v25 = vpop.eup %5479 }
 0xb6d   :  { %v3888_v0 = vsub.f32 %v7070_v16, %v7526_v25 }
 0xb6e   :  { %3926 = vrot.lane.b32.xlu0 %v3885_v24, %s5574_s22  ;;  %3920 = vrot.lane.b32.xlu1 %v3882_v49, %s5574_s22  ;;  %v7532_v32 = vpop.eup %5481 }
 0xb6f   :  { %v3889_v36 = vsub.f32 %v7085_v37, %v7532_v32  ;;  %v7537_v30 = vpop.eup %5483 }
 0xb70   :  { %v3891_v22 = vsub.f32 %v7106_v19, %v7537_v30 }
 0xb72   :  { %3936 = vrot.lane.b32.xlu0 %v3890_v38, %s5574_s22  ;;  %3922 = vrot.lane.b32.xlu1 %v3883_v20, %s5574_s22 }
 0xb76   :  { %3932 = vrot.lane.b32.xlu0 %v3888_v0, %s5574_s22 }
 0xb7a   :  { %3934 = vrot.lane.b32.xlu0 %v3889_v36, %s5574_s22 }
 0xb7e   :  { %3938 = vrot.lane.b32.xlu0 %v3891_v22, %s5574_s22 }
 0xbc8   :  { %v3913_v13 = vpop.permute.xlu1 %3912 }
 0xbc9   :  { %v3958_v44 = vmul.f32 %v7351_v51, %v3913_v13 }
 0xbcb   :  { %v3911_v16 = vpop.permute.xlu0 %3910  ;;  %3992 = vrot.lane.b32.xlu1 %v3958_v44, %s5575_s2 }
 0xbcc   :  { %v3957_v46 = vmul.f32 %v7377_v47, %v3911_v16  ;;  %v3909_v8 = vpop.permute.xlu1 %3908 }
 0xbcd   :  { %v3956_v37 = vmul.f32 %v7353_v26, %v3909_v8 }
 0xbce   :  { %3990 = vrot.lane.b32.xlu0 %v3957_v46, %s5575_s2 }
 0xbcf   :  { %3988 = vrot.lane.b32.xlu1 %v3956_v37, %s5575_s2 }
 0xbd0   :  { %v3915_v27 = vpop.permute.xlu1 %3914 }
 0xbd1   :  { %v3959_v19 = vmul.f32 %v7362_v2, %v3915_v27 }
 0xbd3   :  { %3994 = vrot.lane.b32.xlu1 %v3959_v19, %s5575_s2 }
 0xbd4   :  { %v3917_v21 = vpop.permute.xlu1 %3916 }
 0xbd5   :  { %v3960_v51 = vmul.f32 %v7387_v10, %v3917_v21 }
 0xbd7   :  { %3996 = vrot.lane.b32.xlu1 %v3960_v51, %s5575_s2 }
 0xbd8   :  { %v3929_v7 = vpop.permute.xlu0 %3928  ;;  %v3919_v59 = vpop.permute.xlu1 %3918 }
 0xbd9   :  { %v3966_v47 = vmul.f32 %v7411_v55, %v3929_v7  ;;  %v3961_v26 = vmul.f32 %v7401_v3, %v3919_v59 }
 0xbdb   :  { %4008 = vrot.lane.b32.xlu0 %v3966_v47, %s5575_s2  ;;  %3998 = vrot.lane.b32.xlu1 %v3961_v26, %s5575_s2 }
 0xbdc   :  { %v3931_v31 = vpop.permute.xlu0 %3930  ;;  %v3925_v18 = vpop.permute.xlu1 %3924 }
 0xbdd   :  { %v3967_v2 = vmul.f32 %v7420_v17, %v3931_v31  ;;  %v3964_v39 = vmul.f32 %v7415_v34, %v3925_v18 }
 0xbdf   :  { %4010 = vrot.lane.b32.xlu0 %v3967_v2, %s5575_s2  ;;  %4004 = vrot.lane.b32.xlu1 %v3964_v39, %s5575_s2 }
 0xbe0   :  { %v3927_v10 = vpop.permute.xlu0 %3926  ;;  %v3921_v62 = vpop.permute.xlu1 %3920 }
 0xbe1   :  { %v3965_v55 = vmul.f32 %v7440_v28, %v3927_v10  ;;  %v3962_v3 = vmul.f32 %v7382_v35, %v3921_v62 }
 0xbe3   :  { %4006 = vrot.lane.b32.xlu0 %v3965_v55, %s5575_s2  ;;  %4000 = vrot.lane.b32.xlu1 %v3962_v3, %s5575_s2 }
 0xbe4   :  { %v3937_v56 = vpop.permute.xlu0 %3936  ;;  %v3923_v4 = vpop.permute.xlu1 %3922 }
 0xbe5   :  { %v3970_v17 = vmul.f32 %v7454_v33, %v3937_v56  ;;  %v3963_v34 = vmul.f32 %v7390_v9, %v3923_v4 }
 0xbe7   :  { %4016 = vrot.lane.b32.xlu0 %v3970_v17, %s5575_s2  ;;  %4002 = vrot.lane.b32.xlu1 %v3963_v34, %s5575_s2 }
 0xbe8   :  { %v3933_v14 = vpop.permute.xlu0 %3932 }
 0xbe9   :  { %v3968_v5 = vmul.f32 %v7457_v1, %v3933_v14 }
 0xbeb   :  { %4012 = vrot.lane.b32.xlu0 %v3968_v5, %s5575_s2 }
 0xbec   :  { %v3935_v35 = vpop.permute.xlu0 %3934 }
 0xbed   :  { %v3969_v28 = vmul.f32 %v7476_v29, %v3935_v35 }
 0xbef   :  { %4014 = vrot.lane.b32.xlu0 %v3969_v28, %s5575_s2 }
 0xbf0   :  { %v3939_v24 = vpop.permute.xlu0 %3938 }
 0xbf1   :  { %v3971_v49 = vmul.f32 %v7468_v52, %v3939_v24 }
 0xbf3   :  { %4018 = vrot.lane.b32.xlu0 %v3971_v49, %s5575_s2 }
 0xc3d   :  { %v3993_v9 = vpop.permute.xlu1 %3992 }
 0xc3e   :  { %v4038_v33 = vadd.f32 %v7417_v15, %v3993_v9 }
 0xc40   :  { %v7577_v38 = vmul.f32 %v4038_v33, %v6391_v41  ;;  %v3991_v20 = vpop.permute.xlu0 %3990 }
 0xc41   :  { %v4037_v1 = vadd.f32 %v7431_v60, %v3991_v20  ;;  %v3989_v0 = vpop.permute.xlu1 %3988 }
 0xc42   :  { %v4036_v36 = vadd.f32 %v7425_v61, %v3989_v0  ;;  %v4269_v52 = vrot.slane %v7577_v38, 3  ;;  %v4125_v13 = vrot.slane %v7577_v38, 7  ;;  %v4305_v8 = vrot.slane %v7577_v38, 4 }
 0xc43   :  { %v7582_v29 = vmul.f32 %v4037_v1, %v6383_v53  ;;  %v4341_v21 = vrot.slane %v7577_v38, 5  ;;  %v4237_v51 = vrot.slane %v7577_v38, 2  ;;  %v4087_v39 = vrot.slane %v7577_v38, 6 }
 0xc44   :  { %v7585_v22 = vmul.f32 %v4036_v36, %v6389_v45 }
 0xc45   :  { %v3995_v15 = vpop.permute.xlu1 %3994  ;;  %v4267_v41 = vrot.slane %v7582_v29, 4  ;;  %v4161_v60 = vrot.slane %v7582_v29, 1  ;;  %v4303_v44 = vrot.slane %v7582_v29, 5  ;;  %v4198_v27 = vrot.slane %v7582_v29, 2 }
 0xc46   :  { %v4039_v61 = vadd.f32 %v7450_v43, %v3995_v15  ;;  %v4266_v53 = vrot.slane %v7585_v22, 5  ;;  %v4123_v45 = vrot.slane %v7585_v22, 1  ;;  %v4160_v16 = vrot.slane %v7585_v22, 2 }
 0xc47   :  { %v4302_v46 = vrot.slane %v7585_v22, 6  ;;  %v4197_v37 = vrot.slane %v7585_v22, 3  ;;  %v4200_v43 = vrot.slane %v7577_v38, 1  ;;  %v4338_v26 = vrot.slane %v7585_v22, 7 }
 0xc48   :  { %v7601_v19 = vmul.f32 %v4039_v61, %v6393_v54  ;;  %v4268_v59 = vsel %vm4085_vm2, %v4267_v41, %v4266_v53  ;;  %v4124_v47 = vsel %vm4085_vm2, %v7582_v29, %v4123_v45  ;;  %v4339_v31 = vrot.slane %v7582_v29, 6  ;;  %v8039_v41 = vld [vmem:[#allocation14_spill] sm:$0xff] }
 0xc49   :  { %v3997_v7 = vpop.permute.xlu1 %3996  ;;  %v4162_v18 = vsel %vm4085_vm2, %v4161_v60, %v4160_v16  ;;  %v4304_v2 = vsel %vm4085_vm2, %v4303_v44, %v4302_v46  ;;  %v4199_v3 = vsel %vm4085_vm2, %v4198_v27, %v4197_v37  ;;  %v4126_v4 = vsel %vm4088_vm3, %v4125_v13, %v4124_v47  ;;  %v8041_v47 = vld [vmem:[#allocation12_spill] sm:$0xff] }
 0xc4a   :  { %v4040_v54 = vadd.f32 %v7462_v57, %v3997_v7  ;;  %v4271_v10 = vrot.slane %v7601_v19, 2  ;;  %v4127_v62 = vrot.slane %v7601_v19, 6  ;;  %v4164_v55 = vrot.slane %v7601_v19, 7 }
 0xc4b   :  { %v4270_v57 = vsel %vm4088_vm3, %v4269_v52, %v4268_v59  ;;  %v4307_v17 = vrot.slane %v7601_v19, 3  ;;  %v4163_v5 = vsel %vm4088_vm3, %v7577_v38, %v4162_v18  ;;  %v4306_v35 = vsel %vm4088_vm3, %v4305_v8, %v4304_v2  ;;  %v8040_v59 = vld [vmem:[#allocation15_spill] sm:$0xff] }
 0xc4c   :  { %v7620_v56 = vmul.f32 %v4040_v54, %v6403_v11  ;;  %v4201_v28 = vsel %vm4088_vm3, %v4200_v43, %v4199_v3  ;;  %v4340_v24 = vsel %vm4085_vm2, %v4339_v31, %v4338_v26  ;;  %v4272_v20 = vsel %vm4091_vm4, %v4271_v10, %v4270_v57 }
 0xc4d   :  { %v4009_v34 = vpop.permute.xlu0 %4008  ;;  %v3999_v14 = vpop.permute.xlu1 %3998  ;;  %v4128_v1 = vsel %vm4091_vm4, %v4127_v62, %v4126_v4  ;;  %v4165_v0 = vsel %vm4091_vm4, %v4164_v55, %v4163_v5  ;;  %v4308_v15 = vsel %vm4091_vm4, %v4307_v17, %v4306_v35  ;;  %v4202_v61 = vsel %vm4091_vm4, %v7601_v19, %v4201_v28  ;;  %v8042_v35 = vld [vmem:[#allocation13_spill] sm:$0xff] }
 0xc4e   :  { %v4046_v11 = vadd.f32 %v7490_v63, %v4009_v34  ;;  %v4041_v49 = vadd.f32 %v7486_v42, %v3999_v14  ;;  %v4273_v9 = vrot.slane %v7620_v56, 1  ;;  %v4129_v33 = vrot.slane %v7620_v56, 5 }
 0xc4f   :  { %v4166_v36 = vrot.slane %v7620_v56, 6  ;;  %v4309_v63 = vrot.slane %v7620_v56, 2  ;;  %v4203_v42 = vrot.slane %v7620_v56, 7  ;;  %v4342_v53 = vsel %vm4088_vm3, %v4341_v21, %v4340_v24  ;;  %v8043_v24 = vld [vmem:[#allocation18_spill] sm:$0xff] }
 0xc50   :  { %v7639_v52 = vmul.f32 %v4041_v49, %v6405_v40  ;;  %v7645_v13 = vmul.f32 %v4046_v11, %v8039_v41  ;;  %v4343_v45 = vrot.slane %v7601_v19, 4  ;;  %v4274_v46 = vsel %vm4094_vm5, %v4273_v9, %v4272_v20 }
 0xc51   :  { %v4011_v60 = vpop.permute.xlu0 %4010  ;;  %v4005_v44 = vpop.permute.xlu1 %4004  ;;  %v4130_v8 = vsel %vm4094_vm5, %v4129_v33, %v4128_v1  ;;  %v4167_v27 = vsel %vm4094_vm5, %v4166_v36, %v4165_v0  ;;  %v4345_v4 = vrot.slane %v7620_v56, 3 }
 0xc52   :  { %v4047_v40 = vadd.f32 %v7498_v50, %v4011_v60  ;;  %v4044_v16 = vadd.f32 %v7492_v12, %v4005_v44  ;;  %v4131_v37 = vrot.slane %v7639_v52, 4  ;;  %v4168_v43 = vrot.slane %v7639_v52, 5 }
 0xc53   :  { %v4311_v7 = vrot.slane %v7639_v52, 1  ;;  %v4310_v12 = vsel %vm4094_vm5, %v4309_v63, %v4308_v15  ;;  %v4204_v50 = vsel %vm4094_vm5, %v4203_v42, %v4202_v61  ;;  %v4275_v18 = vsel %vm4097_vm6, %v7639_v52, %v4274_v46 }
 0xc54   :  { %v7660_v21 = vmul.f32 %v4047_v40, %v8040_v59  ;;  %v7663_v26 = vmul.f32 %v4044_v16, %v8041_v47  ;;  %v4283_v2 = vrot.slane %v7645_v13, 3  ;;  %v4205_v10 = vrot.slane %v7639_v52, 6  ;;  %v8045_v16 = vld [vmem:[#allocation20_spill] sm:$0xff] }
 0xc55   :  { %v4007_v31 = vpop.permute.xlu0 %4006  ;;  %v4001_v54 = vpop.permute.xlu1 %4000  ;;  %v4344_v62 = vsel %vm4091_vm4, %v4343_v45, %v4342_v53  ;;  %v4139_v57 = vrot.slane %v7645_v13, 7  ;;  %v4132_v17 = vsel %vm4097_vm6, %v4131_v37, %v4130_v8  ;;  %v4169_v34 = vsel %vm4097_vm6, %v4168_v43, %v4167_v27  ;;  %v8044_v53 = vld [vmem:[#allocation19_spill] sm:$0xff] }
 0xc56   :  { %v4045_v55 = vadd.f32 %v7508_v6, %v4007_v31  ;;  %v4042_v3 = vadd.f32 %v7502_v48, %v4001_v54  ;;  %v4312_v14 = vsel %vm4097_vm6, %v4311_v7, %v4310_v12  ;;  %v4347_v5 = vrot.slane %v7639_v52, 2 }
 0xc57   :  { %v4280_v48 = vrot.slane %v7663_v26, 5  ;;  %v4285_v11 = vrot.slane %v7660_v21, 2  ;;  %v4137_v33 = vrot.slane %v7663_v26, 1  ;;  %v4141_v20 = vrot.slane %v7660_v21, 6 }
 0xc58   :  { %v7681_v28 = vmul.f32 %v4045_v55, %v8042_v35  ;;  %v7684_v6 = vmul.f32 %v4042_v3, %v8043_v24  ;;  %v4206_v1 = vsel %vm4097_vm6, %v4205_v10, %v4204_v50  ;;  %v4174_v0 = vrot.slane %v7663_v26, 2 }
 0xc59   :  { %v4017_v49 = vpop.permute.xlu0 %4016  ;;  %v4003_v9 = vpop.permute.xlu1 %4002  ;;  %v4178_v63 = vrot.slane %v7660_v21, 7  ;;  %v4346_v42 = vsel %vm4094_vm5, %v4345_v4, %v4344_v62  ;;  %v4319_v40 = vrot.slane %v7645_v13, 4  ;;  %v4321_v10 = vrot.slane %v7660_v21, 3  ;;  %v8046_v62 = vld [vmem:[#allocation16_spill] sm:$0xff] }
 0xc5a   :  { %v4050_v36 = vadd.f32 %v7518_v23, %v4017_v49  ;;  %v4043_v15 = vadd.f32 %v7512_v58, %v4003_v9  ;;  %v4276_v41 = vrot.slane %v7684_v6, 7  ;;  %v4281_v60 = vrot.slane %v7681_v28, 4 }
 0xc5b   :  { %v4138_v44 = vsel %vm4085_vm2, %v7681_v28, %v4137_v33  ;;  %v4348_v61 = vsel %vm4097_vm6, %v4347_v5, %v4346_v42  ;;  %v4133_v23 = vrot.slane %v7684_v6, 3  ;;  %v4316_v58 = vrot.slane %v7663_v26, 6 }
 0xc5c   :  { %v7702_v45 = vmul.f32 %v4043_v15, %v8044_v53  ;;  %v7708_v46 = vmul.f32 %v4050_v36, %v8045_v16  ;;  %v4170_v37 = vrot.slane %v7684_v6, 4  ;;  %v4282_v27 = vsel %vm4085_vm2, %v4281_v60, %v4280_v48  ;;  %v8047_v36 = vld [vmem:[#allocation17_spill] sm:$0xff] }
 0xc5d   :  { %v4013_v8 = vpop.permute.xlu0 %4012  ;;  %v4140_v43 = vsel %vm4088_vm3, %v4139_v57, %v4138_v44  ;;  %v4277_v50 = vsel %vm4100_vm7, %v4276_v41, %v4275_v18  ;;  %v4313_v31 = vsel %vm4100_vm7, %v7684_v6, %v4312_v14  ;;  %v4134_v3 = vsel %vm4100_vm7, %v4133_v23, %v4132_v17 }
 0xc5e   :  { %v4048_v7 = vadd.f32 %v7526_v25, %v4013_v8  ;;  %v4278_v59 = vrot.slane %v7702_v45, 6  ;;  %v4135_v47 = vrot.slane %v7702_v45, 2  ;;  %v4172_v12 = vrot.slane %v7702_v45, 3 }
 0xc5f   :  { %v4314_v54 = vrot.slane %v7702_v45, 7  ;;  %v4284_v57 = vsel %vm4088_vm3, %v4283_v2, %v4282_v27  ;;  %v4171_v18 = vsel %vm4100_vm7, %v4170_v37, %v4169_v34  ;;  %v4290_v14 = vrot.slane %v7708_v46, 7 }
 0xc60   :  { %v7723_v55 = vmul.f32 %v4048_v7, %v8046_v62  ;;  %v4279_v25 = vsel %vm4103_vm8, %v4278_v59, %v4277_v50  ;;  %v4142_v5 = vsel %vm4091_vm4, %v4141_v20, %v4140_v43  ;;  %v4207_v35 = vrot.slane %v7684_v6, 5  ;;  %v8048_v7 = vld [vmem:[#allocation21_spill] sm:$0xff] }
 0xc61   :  { %v4015_v4 = vpop.permute.xlu0 %4014  ;;  %4294 = vrot.lane.b32.xlu1 %v4279_v25, %s5574_s22  ;;  %v4136_v48 = vsel %vm4103_vm8, %v4135_v47, %v4134_v3  ;;  %v4173_v49 = vsel %vm4103_vm8, %v4172_v12, %v4171_v18  ;;  %v4286_v2 = vsel %vm4091_vm4, %v4285_v11, %v4284_v57  ;;  %v4315_v9 = vsel %vm4103_vm8, %v4314_v54, %v4313_v31 }
 0xc62   :  { %v4049_v24 = vadd.f32 %v7532_v32, %v4015_v4  ;;  %v4287_v17 = vrot.slane %v7723_v55, 1  ;;  %v4143_v34 = vrot.slane %v7723_v55, 5  ;;  %v4175_v33 = vrot.slane %v7681_v28, 1 }
 0xc63   :  { %v4147_v32 = vrot.slane %v7708_v46, 3  ;;  %v4349_v42 = vrot.slane %v7684_v6, 1  ;;  %v4208_v11 = vsel %vm4100_vm7, %v4207_v35, %v4206_v1  ;;  %v4209_v60 = vrot.slane %v7702_v45, 4 }
 0xc64   :  { %v7742_v20 = vmul.f32 %v4049_v24, %v8047_v36  ;;  %v4288_v15 = vsel %vm4094_vm5, %v4287_v17, %v4286_v2  ;;  %v4176_v44 = vsel %vm4085_vm2, %v4175_v33, %v4174_v0  ;;  %v4317_v53 = vrot.slane %v7681_v28, 5 }
 0xc65   :  { %v4019_v41 = vpop.permute.xlu0 %4018  ;;  %4151 = vrot.lane.b32.xlu1 %v4136_v48, %s5574_s22  ;;  %v4177_v8 = vsel %vm4088_vm3, %v7645_v13, %v4176_v44  ;;  %v4180_v37 = vrot.slane %v7723_v55, 6  ;;  %v4144_v1 = vsel %vm4094_vm5, %v4143_v34, %v4142_v5  ;;  %v4184_v0 = vrot.slane %v7708_v46, 4 }
 0xc66   :  { %v4051_v23 = vadd.f32 %v7537_v30, %v4019_v41  ;;  %v4145_v16 = vrot.slane %v7742_v20, 4  ;;  %v4289_v27 = vsel %vm4097_vm6, %v7742_v20, %v4288_v15  ;;  %v4182_v43 = vrot.slane %v7742_v20, 5 }
 0xc67   :  { %v4350_v30 = vsel %vm4100_vm7, %v4349_v42, %v4348_v61  ;;  %v4318_v47 = vsel %vm4085_vm2, %v4317_v53, %v4316_v58  ;;  %v4323_v12 = vrot.slane %v7723_v55, 2  ;;  %v4179_v31 = vsel %vm4091_vm4, %v4178_v63, %v4177_v8 }
 0xc68   :  { %v7763_v59 = vmul.f32 %v4051_v23, %v8048_v7  ;;  %v4146_v50 = vsel %vm4097_vm6, %v4145_v16, %v4144_v1  ;;  %v4320_v54 = vsel %vm4088_vm3, %v4319_v40, %v4318_v47  ;;  %v4325_v62 = vrot.slane %v7742_v20, 1 }
 0xc69   :  { %4188 = vrot.lane.b32.xlu1 %v4173_v49, %s5577_s16  ;;  %v4291_v25 = vsel %vm4100_vm7, %v4290_v14, %v4289_v27  ;;  %v4181_v3 = vsel %vm4094_vm5, %v4180_v37, %v4179_v31  ;;  %v4322_v4 = vsel %vm4091_vm4, %v4321_v10, %v4320_v54  ;;  %v4211_v18 = vrot.slane %v7663_v26, 3 }
 0xc6a   :  { %v4292_v61 = vrot.slane %v7763_v59, 6  ;;  %v4149_v58 = vrot.slane %v7763_v59, 2  ;;  %v4183_v57 = vsel %vm4097_vm6, %v4182_v43, %v4181_v3  ;;  %v4212_v63 = vrot.slane %v7681_v28, 2 }
 0xc6b   :  { %v4148_v5 = vsel %vm4100_vm7, %v4147_v32, %v4146_v50  ;;  %v4186_v14 = vrot.slane %v7763_v59, 3  ;;  %v4324_v35 = vsel %vm4094_vm5, %v4323_v12, %v4322_v4  ;;  %v4328_v10 = vrot.slane %v7763_v59, 7 }
 0xc6c   :  { %v4293_v40 = vsel %vm4103_vm8, %v4292_v61, %v4291_v25  ;;  %v4326_v24 = vsel %vm4097_vm6, %v4325_v62, %v4324_v35  ;;  %v4213_v48 = vsel %vm4085_vm2, %v4212_v63, %v4211_v18  ;;  %v4214_v49 = vrot.slane %v7645_v13, 1 }
 0xc6d   :  { %4296 = vrot.lane.b32.xlu0 %v4293_v40, %s5574_s22  ;;  %4330 = vrot.lane.b32.xlu1 %v4315_v9, %s5577_s16  ;;  %v4150_v17 = vsel %vm4103_vm8, %v4149_v58, %v4148_v5  ;;  %v4210_v2 = vsel %vm4103_vm8, %v4209_v60, %v4208_v11  ;;  %v4185_v34 = vsel %vm4100_vm7, %v4184_v0, %v4183_v57  ;;  %v4217_v9 = vrot.slane %v7723_v55, 7 }
 0xc6e   :  { %v4351_v33 = vsel %vm4103_vm8, %v7702_v45, %v4350_v30  ;;  %v4215_v36 = vsel %vm4088_vm3, %v4214_v49, %v4213_v48  ;;  %v4352_v15 = vrot.slane %v7663_v26, 7  ;;  %v4353_v32 = vrot.slane %v7681_v28, 6 }
 0xc6f   :  { %v4187_v42 = vsel %vm4103_vm8, %v4186_v14, %v4185_v34  ;;  %v4327_v41 = vsel %vm4100_vm7, %v7708_v46, %v4326_v24  ;;  %v4219_v11 = vrot.slane %v7742_v20, 6  ;;  %v4355_v60 = vrot.slane %v7645_v13, 5 }
 0xc70   :  { %v4329_v44 = vsel %vm4103_vm8, %v4328_v10, %v4327_v41  ;;  %v4221_v53 = vrot.slane %v7708_v46, 5  ;;  %v4223_v23 = vrot.slane %v7763_v59, 4  ;;  %v4354_v16 = vsel %vm4085_vm2, %v4353_v32, %v4352_v15 }
 0xc71   :  { %4153 = vrot.lane.b32.xlu0 %v4150_v17, %s5574_s22  ;;  %4225 = vrot.lane.b32.xlu1 %v4210_v2, %s5575_s2  ;;  %v4216_v8 = vsel %vm4091_vm4, %v7660_v21, %v4215_v36  ;;  %v4356_v37 = vsel %vm4088_vm3, %v4355_v60, %v4354_v16  ;;  %v4234_v27 = vrot.slane %v7585_v22, 4  ;;  %v4235_v1 = vrot.slane %v7582_v29, 3  ;;  %s4393_s22 = sshll.u32 %s5578_s17, 4  ;;  %s4394_s22 = int_to_ptr.vmem [resolvable:$true] %s4393_s22 }
 0xc72   :  { %v4218_v43 = vsel %vm4094_vm5, %v4217_v9, %v4216_v8  ;;  %v4357_v0 = vrot.slane %v7660_v21, 4  ;;  %v4359_v7 = vrot.slane %v7723_v55, 3  ;;  %v4239_v30 = vrot.slane %v7601_v19, 1  ;;  %s5523_s26 = scalar_lea.vmem %s4394_s22, 256  ;;  %p5528_p1 = scmp.lt.s32.totalorder %s4394_s22, %s4394_s22 }
 0xc73   :  { %v4220_v47 = vsel %vm4097_vm6, %v4219_v11, %v4218_v43  ;;  %v4361_v12 = vrot.slane %v7742_v20, 2  ;;  %v4236_v50 = vsel %vm4085_vm2, %v4235_v1, %v4234_v27  ;;  %v4242_v31 = vrot.slane %v7639_v52, 7  ;;  %p5524_p0 = scmp.ne.s32.totalorder %s4394_s22, %s5523_s26  ;;  %p5529_p2 = scmp.lt.s32.totalorder %s5523_s26, %s5523_s26 }
 0xc74   :  { %v4358_v54 = vsel %vm4091_vm4, %v4357_v0, %v4356_v37  ;;  %v4238_v62 = vsel %vm4088_vm3, %v4237_v51, %v4236_v50  ;;  %v4244_v25 = vrot.slane %v7684_v6, 6  ;;  %v4084_v61 = vrot.slane %v7582_v29, 7 }
 0xc75   :  { %4190 = vrot.lane.b32.xlu0 %v4187_v42, %s5577_s16  ;;  %4366 = vrot.lane.b32.xlu1 %v4351_v33, %s5575_s2  ;;  %v4240_v58 = vsel %vm4091_vm4, %v4239_v30, %v4238_v62  ;;  %v4246_v3 = vrot.slane %v7702_v45, 5  ;;  %v4090_v57 = vrot.slane %v7601_v19, 5  ;;  %v4093_v4 = vrot.slane %v7620_v56, 4  ;;  %p5530_p3 = por %p5529_p2, %p5528_p1 }
 0xc76   :  { %v4360_v18 = vsel %vm4094_vm5, %v4359_v7, %v4358_v54  ;;  %v4241_v63 = vsel %vm4094_vm5, %v7620_v56, %v4240_v58  ;;  %v4086_v51 = vsel %vm4085_vm2, %v4084_v61, %v7585_v22  ;;  %v4096_v40 = vrot.slane %v7639_v52, 3 }
 0xc77   :  { %v4362_v29 = vsel %vm4097_vm6, %v4361_v12, %v4360_v18  ;;  %v4243_v5 = vsel %vm4097_vm6, %v4242_v31, %v4241_v63  ;;  %v4089_v19 = vsel %vm4088_vm3, %v4087_v39, %v4086_v51  ;;  %v4099_v14 = vrot.slane %v7684_v6, 2  ;;  %p5531_p4 = pnand %p5530_p3, %p5524_p0 }
 0xc78   :  { %v4363_v56 = vrot.slane %v7708_v46, 1  ;;  %v4245_v22 = vsel %vm4100_vm7, %v4244_v25, %v4243_v5  ;;  %v4092_v52 = vsel %vm4091_vm4, %v4090_v57, %v4089_v19  ;;  %v4102_v35 = vrot.slane %v7702_v45, 1 }
 0xc79   :  { %4332 = vrot.lane.b32.xlu0 %v4329_v44, %s5577_s16  ;;  %v4222_v24 = vsel %vm4100_vm7, %v4221_v53, %v4220_v47  ;;  %v4247_v10 = vsel %vm4103_vm8, %v4246_v3, %v4245_v22  ;;  %v4095_v38 = vsel %vm4094_vm5, %v4093_v4, %v4092_v52  ;;  %v4249_v39 = vrot.slane %v7681_v28, 3 }
 0xc7a   :  { %5534 = shalt.err (!%p5531_p4)
}
 0xc7b   :  { %s5535_s12 = scalar_lea.hbm %s7952_s19, 256 }
 0xc7c   :  { %p5536_p5 = scmp.ne.s32.totalorder %s7952_s19, %s5535_s12  ;;  %p5539_p6 = scmp.lt.u32.totalorder %s5535_s12, %s7952_s19 }
 0xc7e   :  { %p5541_p7 = pnand %p5539_p6, %p5536_p5 }
 0xc80   :  { %5544 = shalt.err (!%p5541_p7)
}
 0xc81   :  { %s5579_s0 = smov 128   ;;  %s5580_s25 = smov 8   ;;  %v4224_v6 = vsel %vm4103_vm8, %v4223_v23, %v4222_v24  ;;  %v4364_v45 = vsel %vm4100_vm7, %v4363_v56, %v4362_v29  ;;  %4264 = vst.msk [vmem:[#allocation2 + $0x8] sm:$0xff] %vm151_vm1, %v4247_v10  ;;  %v4098_v48 = vsel %vm4097_vm6, %v4096_v40, %v4095_v38  ;;  %v4251_v49 = vrot.slane %v7645_v13, 2 }
 0xc82   :  { %4399 = dma.vmem_to_hbm [thread:$0]  %s4394_s22, 256, %s7952_s19, [#allocation5], %s5579_s0, %s5579_s0, %s5580_s25   ;;  %v4101_v17 = vsel %vm4100_vm7, %v4099_v14, %v4098_v48  ;;  %v4253_v2 = vrot.slane %v7660_v21, 1  ;;  %v4248_v34 = vrot.slane %v7663_v26, 4  ;;  %v4105_v33 = vrot.slane %v7681_v28, 7 }
 0xc83   :  { %4227 = vrot.lane.b32.xlu0 %v4224_v6, %s5575_s2  ;;  %v4104_v36 = vsel %vm4103_vm8, %v4102_v35, %v4101_v17  ;;  %v4256_v9 = vrot.slane %v7742_v20, 7  ;;  %v4107_v15 = vrot.slane %v7645_v13, 6  ;;  %v4111_v32 = vrot.slane %v7723_v55, 4  ;;  %s5581_s19 = smov [#allocation2]  }
 0xc84   :  { %4121 = vst.msk [vmem:[#allocation2] sm:$0xff] %vm151_vm1, %v4104_v36  ;;  %v4250_v42 = vsel %vm4085_vm2, %v4249_v39, %v4248_v34  ;;  %v4109_v41 = vrot.slane %v7660_v21, 5  ;;  %v4113_v11 = vrot.slane %v7742_v20, 3  ;;  %v4106_v28 = vsel %vm4085_vm2, %v4105_v33, %v7663_v26 }
 0xc85   :  { %v4365_v60 = vsel %vm4103_vm8, %v7763_v59, %v4364_v45  ;;  %v4252_v44 = vsel %vm4088_vm3, %v4251_v49, %v4250_v42  ;;  %v4108_v13 = vsel %vm4088_vm3, %v4107_v15, %v4106_v28  ;;  %v4260_v53 = vrot.slane %v7763_v59, 5 }
 0xc86   :  { %v4254_v23 = vsel %vm4091_vm4, %v4253_v2, %v4252_v44  ;;  %v4117_v16 = vrot.slane %v7763_v59, 1  ;;  %v4110_v21 = vsel %vm4091_vm4, %v4109_v41, %v4108_v13  ;;  %v4258_v20 = vrot.slane %v7708_v46, 6 }
 0xc87   :  { %4368 = vrot.lane.b32.xlu0 %v4365_v60, %s5575_s2  ;;  %v4255_v26 = vsel %vm4094_vm5, %v7723_v55, %v4254_v23  ;;  %v4115_v8 = vrot.slane %v7708_v46, 2  ;;  %v4112_v37 = vsel %vm4094_vm5, %v4111_v32, %v4110_v21  ;;  %vm4157_vm9 = vcmask 523520   ;;  %s4381_s2 = sshll.u32 %s5581_s19, 4  ;;  %s4382_s2 = int_to_ptr.vmem [resolvable:$true] %s4381_s2 }
 0xc88   :  { %v4257_v27 = vsel %vm4097_vm6, %v4256_v9, %v4255_v26  ;;  %v4114_v1 = vsel %vm4097_vm6, %v4113_v11, %v4112_v37  ;;  %vm4194_vm10 = vcmask 785920   ;;  %vm4231_vm11 = vcmask 1048320   ;;  %s5545_s13 = scalar_lea.vmem %s4382_s2, 512  ;;  %p5550_p9 = scmp.lt.s32.totalorder %s4382_s2, %s4382_s2 }
 0xc89   :  { %v4259_v43 = vsel %vm4100_vm7, %v4258_v20, %v4257_v27  ;;  %v4116_v59 = vsel %vm4100_vm7, %v4115_v8, %v4114_v1  ;;  %p5546_p8 = scmp.ne.s32.totalorder %s4382_s2, %s5545_s13  ;;  %p5551_p10 = scmp.lt.s32.totalorder %s5545_s13, %s5545_s13 }
 0xc8a   :  { %v4261_v0 = vsel %vm4103_vm8, %v4260_v53, %v4259_v43  ;;  %v4118_v7 = vsel %vm4103_vm8, %v4117_v16, %v4116_v59 }
 0xc8b   :  { %4265 = vst.msk [vmem:[#allocation2 + $0x18] sm:$0xff] %vm151_vm1, %v4261_v0  ;;  %4122 = vst.msk [vmem:[#allocation2 + $0x10] sm:$0xff] %vm151_vm1, %v4118_v7  ;;  %p5552_p11 = por %p5551_p10, %p5550_p9 }
 0xc8d   :  { %p5553_p12 = pnand %p5552_p11, %p5546_p8 }
 0xcd3   :  { %v4295_v46 = vpop.permute.xlu1 %4294 }
 0xcd4   :  { %4300 = vst.msk [vmem:[#allocation2 + $0x8] sm:$0xff] %vm4157_vm9, %v4295_v46 }
 0xcd7   :  { %v4152_v55 = vpop.permute.xlu1 %4151 }
 0xcd8   :  { %4158 = vst.msk [vmem:[#allocation2] sm:$0xff] %vm4157_vm9, %v4152_v55 }
 0xcdb   :  { %v4189_v30 = vpop.permute.xlu1 %4188 }
 0xcdc   :  { %4195 = vst.msk [vmem:[#allocation2] sm:$0xff] %vm4194_vm10, %v4189_v30 }
 0xcdf   :  { %v4297_v47 = vpop.permute.xlu0 %4296  ;;  %v4331_v12 = vpop.permute.xlu1 %4330 }
 0xce0   :  { %4301 = vst.msk [vmem:[#allocation2 + $0x18] sm:$0xff] %vm4157_vm9, %v4297_v47 }
 0xce1   :  { %4336 = vst.msk [vmem:[#allocation2 + $0x8] sm:$0xff] %vm4194_vm10, %v4331_v12 }
 0xce3   :  { %v4154_v50 = vpop.permute.xlu0 %4153  ;;  %v4226_v31 = vpop.permute.xlu1 %4225 }
 0xce4   :  { %4159 = vst.msk [vmem:[#allocation2 + $0x10] sm:$0xff] %vm4157_vm9, %v4154_v50 }
 0xce5   :  { %4232 = vst.msk [vmem:[#allocation2] sm:$0xff] %vm4231_vm11, %v4226_v31 }
 0xce7   :  { %v4191_v54 = vpop.permute.xlu0 %4190  ;;  %v4367_v62 = vpop.permute.xlu1 %4366 }
 0xce8   :  { %4196 = vst.msk [vmem:[#allocation2 + $0x10] sm:$0xff] %vm4194_vm10, %v4191_v54 }
 0xce9   :  { %4372 = vst.msk [vmem:[#allocation2 + $0x8] sm:$0xff] %vm4231_vm11, %v4367_v62 }
 0xceb   :  { %v4333_v25 = vpop.permute.xlu0 %4332 }
 0xcec   :  { %4337 = vst.msk [vmem:[#allocation2 + $0x18] sm:$0xff] %vm4194_vm10, %v4333_v25 }
 0xcf5   :  { %v4228_v61 = vpop.permute.xlu0 %4227 }
 0xcf6   :  { %4233 = vst.msk [vmem:[#allocation2 + $0x10] sm:$0xff] %vm4231_vm11, %v4228_v61 }
 0xcf9   :  { %v4369_v58 = vpop.permute.xlu0 %4368 }
 0xcfa   :  { %4373 = vst.msk [vmem:[#allocation2 + $0x18] sm:$0xff] %vm4231_vm11, %v4369_v58 }
 0xcfb   :  { %5556 = shalt.err (!%p5553_p12)
}
 0xcfc   :  { %s5557_s24 = scalar_lea.hbm %s7951_s18, 512 }
 0xcfd   :  { %p5558_p13 = scmp.ne.s32.totalorder %s7951_s18, %s5557_s24  ;;  %p5561_p0 = scmp.lt.u32.totalorder %s5557_s24, %s7951_s18 }
 0xcff   :  { %p5563_p1 = pnand %p5561_p0, %p5558_p13 }
 0xd01   :  { %5566 = shalt.err (!%p5563_p1)
}
 0xd02   :  { %s5582_s21 = smov 256   ;;  %s5583_s15 = smov 16  }
 0xd03   :  { %4387 = dma.vmem_to_hbm [thread:$0]  %s4382_s2, 512, %s7951_s18, [#allocation3], %s5582_s21, %s5582_s21, %s5583_s15  }
 0xd04   :  { %5567 = dma.done.wait [#allocation3], 512  }
 0xd05   :  { %5568 = vsyncadd [#allocation3], 4294966784 }
 0xd06   :  { %5569 = dma.done.wait [#allocation5], 256  }
 0xd07   :  { %5570 = vsyncadd [#allocation5], 4294967040 }
 0xd08   :  { %4406 = vsyncpa [#allocation3], 1 }
 0xd09   :  { %4407 = vsyncpa [#allocation5], 1 }

</bundles_post_ra>
